<compile_context>
chip_gen: v5e
topology: v5e:2x2
jax: 0.10.0
libtpu: 0.0.40
codegen_flags: <defaults>
</compile_context>

<pallas_src>
import functools
import jax
import jax.numpy as jnp
from jax import lax
from jax.experimental import pallas as pl
from jax.experimental.pallas import tpu as pltpu


# ------------------------------------------------------------------ tiling constants
TM_MAX = 256          # M tile (rows of the patch matrix)
TN_MAX = 256          # N tile (output channels); 128 is preferable on v5e
TK_MAX = 512          # K tile (contraction)
VMEM_LIMIT_BYTES = 48 * 1024 * 1024   # leave headroom on v7x's 64 MiB VMEM


def _round_up(x, m):
    return (x + m - 1) // m * m


# ------------------------------------------------------------------ conv GEMM kernel

def _conv_gemm_kernel(a_ref, b_ref, bias_ref, o_ref, *, apply_leaky, negative_slope):
    k = pl.program_id(2)

    @pl.when(k == 0)
    def _():
        o_ref[...] = jnp.zeros_like(o_ref)

    # bf16 x bf16 -> f32 accumulation on the MXU; o_ref block is resident across K.
    o_ref[...] += jnp.dot(a_ref[...], b_ref[...],
                          preferred_element_type=jnp.float32)

    @pl.when(k == pl.num_programs(2) - 1)
    def _():
        y = o_ref[...] + bias_ref[...]
        if apply_leaky:
            y = jnp.where(y >= 0, y, negative_slope * y)
        o_ref[...] = y


def conv_gemm(a, b, bias, *, apply_leaky, negative_slope=0.2):
    """a: (M, K) patches, b: (K, N) weights, bias: (N,).

    Returns the PADDED (m_pad, n_pad) float32 result; padded rows/cols are
    bias-only (zero when bias is zero).  Caller slices to (M, N)."""
    M, K = a.shape
    K2, N = b.shape
    assert K == K2

    tm = min(TM_MAX, _round_up(M, 8))
    tn = min(TN_MAX, _round_up(N, 128))
    tk = min(TK_MAX, _round_up(K, 128))
    m_pad = _round_up(M, tm)
    n_pad = _round_up(N, tn)
    k_pad = _round_up(K, tk)

    a = a.astype(jnp.bfloat16)
    b = b.astype(jnp.bfloat16)
    if (m_pad, k_pad) != (M, K):
        a = jnp.pad(a, ((0, m_pad - M), (0, k_pad - K)))
    if (k_pad, n_pad) != (K, N):
        b = jnp.pad(b, ((0, k_pad - K), (0, n_pad - N)))
    bias2 = jnp.pad(bias.astype(jnp.float32), (0, n_pad - N)).reshape(1, n_pad)

    kernel = functools.partial(_conv_gemm_kernel, apply_leaky=apply_leaky,
                               negative_slope=negative_slope)
    return pl.pallas_call(
        kernel,
        out_shape=jax.ShapeDtypeStruct((m_pad, n_pad), jnp.float32),
        grid_spec=pltpu.PrefetchScalarGridSpec(
            num_scalar_prefetch=0,
            grid=(m_pad // tm, n_pad // tn, k_pad // tk),
            in_specs=[
                pl.BlockSpec((tm, tk), lambda i, j, k: (i, k)),
                pl.BlockSpec((tk, tn), lambda i, j, k: (k, j)),
                pl.BlockSpec((1, tn), lambda i, j, k: (0, j)),
            ],
            out_specs=pl.BlockSpec((tm, tn), lambda i, j, k: (i, j)),
        ),
        compiler_params=pltpu.CompilerParams(
            dimension_semantics=("parallel", "parallel", "arbitrary"),
            vmem_limit_bytes=VMEM_LIMIT_BYTES),
    )(a, b, bias2)


# ------------------------------------------------------------------ BatchNorm + LeakyReLU

def _bn_stats_kernel(x_ref, sum_ref, sq_ref):
    @pl.when(pl.program_id(0) == 0)
    def _():
        sum_ref[...] = jnp.zeros_like(sum_ref)
        sq_ref[...] = jnp.zeros_like(sq_ref)
    x = x_ref[...]
    sum_ref[...] += jnp.sum(x, axis=0, keepdims=True)
    sq_ref[...] += jnp.sum(x * x, axis=0, keepdims=True)


def _bn_apply_kernel(x_ref, sum_ref, sq_ref, gamma_ref, beta_ref, o_ref, *,
                     count, eps, negative_slope):
    mean = sum_ref[...] * (1.0 / count)
    var = sq_ref[...] * (1.0 / count) - mean * mean
    scale = lax.rsqrt(var + eps) * gamma_ref[...]
    y = (x_ref[...] - mean) * scale + beta_ref[...]
    o_ref[...] = jnp.where(y >= 0, y, negative_slope * y)


def bn_leaky(x, gamma, beta, count, *, eps=1e-5, negative_slope=0.2):
    """x: (m_pad, C) where rows >= `count` are zero padding (they contribute 0 to the
    sums); training-mode BatchNorm (biased var over `count` rows) fused with LeakyReLU."""
    m_in, C = x.shape
    tm = min(TM_MAX, _round_up(m_in, 8))
    m_pad = _round_up(m_in, tm)
    if m_pad != m_in:
        x = jnp.pad(x, ((0, m_pad - m_in), (0, 0)))
    gamma2 = gamma.reshape(1, C).astype(jnp.float32)
    beta2 = beta.reshape(1, C).astype(jnp.float32)
    grid = (m_pad // tm,)

    sums, sqs = pl.pallas_call(
        _bn_stats_kernel,
        out_shape=(jax.ShapeDtypeStruct((1, C), jnp.float32),
                   jax.ShapeDtypeStruct((1, C), jnp.float32)),
        grid_spec=pltpu.PrefetchScalarGridSpec(
            num_scalar_prefetch=0,
            grid=grid,
            in_specs=[pl.BlockSpec((tm, C), lambda i: (i, 0))],
            out_specs=[pl.BlockSpec((1, C), lambda i: (0, 0)),
                       pl.BlockSpec((1, C), lambda i: (0, 0))],
        ),
        compiler_params=pltpu.CompilerParams(
            dimension_semantics=("arbitrary",),
            vmem_limit_bytes=VMEM_LIMIT_BYTES),
    )(x)

    kernel = functools.partial(_bn_apply_kernel, count=float(count), eps=eps,
                               negative_slope=negative_slope)
    y = pl.pallas_call(
        kernel,
        out_shape=jax.ShapeDtypeStruct((m_pad, C), jnp.float32),
        grid_spec=pltpu.PrefetchScalarGridSpec(
            num_scalar_prefetch=0,
            grid=grid,
            in_specs=[pl.BlockSpec((tm, C), lambda i: (i, 0)),
                      pl.BlockSpec((1, C), lambda i: (0, 0)),
                      pl.BlockSpec((1, C), lambda i: (0, 0)),
                      pl.BlockSpec((1, C), lambda i: (0, 0)),
                      pl.BlockSpec((1, C), lambda i: (0, 0))],
            out_specs=pl.BlockSpec((tm, C), lambda i: (i, 0)),
        ),
        compiler_params=pltpu.CompilerParams(
            dimension_semantics=("parallel",),
            vmem_limit_bytes=VMEM_LIMIT_BYTES),
    )(x, sums, sqs, gamma2, beta2)
    return y[:m_in] if m_pad != m_in else y


# ------------------------------------------------------------------ JAX glue (channels-last)

def im2col_nhwc(x, kh, kw, stride, pad):
    """x: (N, H, W, C) -> ((N*Ho*Wo, kh*kw*C), Ho, Wo). Patch K-order = (i, j, Cin)."""
    xp = jnp.pad(x, ((0, 0), (pad, pad), (pad, pad), (0, 0)))
    n, hp, wp, c = xp.shape
    ho = (hp - kh) // stride + 1
    wo = (wp - kw) // stride + 1
    cols = []
    for i in range(kh):
        for j in range(kw):
            cols.append(xp[:, i:i + stride * ho:stride, j:j + stride * wo:stride, :])
    col = jnp.stack(cols, axis=3)            # (N, Ho, Wo, kh*kw, C)
    return col.reshape(n * ho * wo, kh * kw * c), ho, wo


def discriminator_forward(x, params, use_sigmoid=False):
    """PatchGAN discriminator forward. x: (N, Cin, H, W) float32 (NCHW, like PyTorch)."""
    padw = 2  # ceil((4 - 1) / 2)
    n = x.shape[0]
    h = jnp.transpose(x, (0, 2, 3, 1))       # NCHW -> NHWC once at entry
    for layer in params:
        w = layer["w"]                        # (Cout, Cin, kh, kw) like PyTorch
        cout, cin, kh, kwid = w.shape
        # bf16 patches (halves HBM traffic into the GEMM; f32 accumulation inside).
        a, ho, wo = im2col_nhwc(h.astype(jnp.bfloat16), kh, kwid, layer["stride"], padw)
        # (kh, kw, Cin, Cout) ordering matches the patch K-order above.
        b = jnp.transpose(w, (2, 3, 1, 0)).reshape(kh * kwid * cin, cout)
        bias = layer.get("b")
        if bias is None:
            bias = jnp.zeros((cout,), jnp.float32)
        has_bn = "gamma" in layer
        m_real = n * ho * wo

        y = conv_gemm(a, b, bias, apply_leaky=(layer["leaky"] and not has_bn))
        if has_bn:
            # BN conv layers have zero bias, so padded rows of y are exactly zero and
            # do not perturb the sum/sumsq statistics (count = real M).
            if y.shape[1] != cout:
                y = y[:, :cout]
            y = bn_leaky(y, layer["gamma"], layer["beta"], m_real)
        h = y[:m_real, :cout].reshape(n, ho, wo, cout)   # stays NHWC, no transpose
    out = jnp.transpose(h, (0, 3, 1, 2))     # NHWC -> NCHW for the public API
    if use_sigmoid:
        out = jax.nn.sigmoid(out)
    return out


# ------------------------------------------------------------------ params (deterministic)

def build_params(key, input_nc=3, ndf=64, n_layers=3):
    """Mirrors Discriminator.__init__ (BatchNorm2d => middle convs have no bias)."""
    state = {"key": key}

    def nxt():
        state["key"], sub = jax.random.split(state["key"])
        return sub

    def conv_w(cout, cin):
        return (0.02 * jax.random.normal(nxt(), (cout, cin, 4, 4))).astype(jnp.float32)

    params = []
    # conv(input_nc -> ndf, stride 2) + bias + LeakyReLU
    params.append(dict(w=conv_w(ndf, input_nc),
                       b=(0.01 * jax.random.normal(nxt(), (ndf,))).astype(jnp.float32),
                       stride=2, leaky=True))
    nf_mult = 1
    for nl in range(1, n_layers):
        nf_prev, nf_mult = nf_mult, min(2 ** nl, 8)
        params.append(dict(w=conv_w(ndf * nf_mult, ndf * nf_prev),
                           gamma=(1.0 + 0.1 * jax.random.normal(nxt(), (ndf * nf_mult,))).astype(jnp.float32),
                           beta=(0.1 * jax.random.normal(nxt(), (ndf * nf_mult,))).astype(jnp.float32),
                           stride=2, leaky=True))
    nf_prev, nf_mult = nf_mult, min(2 ** n_layers, 8)
    params.append(dict(w=conv_w(ndf * nf_mult, ndf * nf_prev),
                       gamma=(1.0 + 0.1 * jax.random.normal(nxt(), (ndf * nf_mult,))).astype(jnp.float32),
                       beta=(0.1 * jax.random.normal(nxt(), (ndf * nf_mult,))).astype(jnp.float32),
                       stride=1, leaky=True))
    # final conv(ndf*nf_mult -> 1, stride 1) + bias, no activation (use_sigmoid=False)
    params.append(dict(w=conv_w(1, ndf * nf_mult),
                       b=(0.01 * jax.random.normal(nxt(), (1,))).astype(jnp.float32),
                       stride=1, leaky=False))
    return params


# ------------------------------------------------------------------ pure-JAX reference

def reference_forward(x, params, use_sigmoid=False):
    h = x
    for layer in params:
        h = lax.conv_general_dilated(
            h, layer["w"], window_strides=(layer["stride"],) * 2,
            padding=((2, 2), (2, 2)),
            dimension_numbers=("NCHW", "OIHW", "NCHW"),
            precision=lax.Precision.HIGHEST)
        if layer.get("b") is not None:
            h = h + layer["b"].reshape(1, -1, 1, 1)
        if "gamma" in layer:
            mean = jnp.mean(h, axis=(0, 2, 3), keepdims=True)
            var = jnp.mean((h - mean) ** 2, axis=(0, 2, 3), keepdims=True)
            h = (h - mean) * lax.rsqrt(var + 1e-5) \
                * layer["gamma"].reshape(1, -1, 1, 1) + layer["beta"].reshape(1, -1, 1, 1)
        if layer["leaky"]:
            h = jnp.where(h >= 0, h, 0.2 * h)
    if use_sigmoid:
        h = jax.nn.sigmoid(h)
    return h


# ------------------------------------------------------------------ main

if __name__ == "__main__":
    key = jax.random.PRNGKey(0)
    k_params, k_x = jax.random.split(key)

    params = build_params(k_params, input_nc=3, ndf=64, n_layers=3)
    x = jax.random.normal(k_x, (2, 3, 16, 16), jnp.float32)   # small NCHW input

    fwd = jax.jit(lambda inp: discriminator_forward(inp, params))
    out = jax.block_until_ready(fwd(x))                       # -> (2, 1, 5, 5)

    ref = jax.block_until_ready(reference_forward(x, params))
    assert out.shape == ref.shape == (2, 1, 5, 5), (out.shape, ref.shape)
    max_err = float(jnp.max(jnp.abs(out - ref)))
    # bf16 MXU inputs (f32 accumulation) vs an f32 HIGHEST-precision reference across
    # 5 conv layers -> allow a slightly looser tolerance than pure-f32.
    assert max_err < 8e-2, f"mismatch vs reference: {max_err}"

    print("KERNEL_OK")
</pallas_src>

<mosaic_0001>
module attributes {stable_mosaic.version = 11 : i64} {
  func.func @_conv_gemm_kernel(%arg0: i32, %arg1: i32, %arg2: i32, %arg3: memref<168x128xbf16, #tpu.memory_space<vmem>>, %arg4: memref<128x128xbf16, #tpu.memory_space<vmem>>, %arg5: memref<1x128xf32, #tpu.memory_space<vmem>>, %arg6: memref<168x128xf32, #tpu.memory_space<vmem>>) attributes {dimension_semantics = [#tpu.dimension_semantics<parallel>, #tpu.dimension_semantics<parallel>, #tpu.dimension_semantics<arbitrary>], iteration_bounds = array<i64: 1, 1, 1>, scalar_prefetch = 0 : i64, scratch_operands = 0 : i64, tpu.core_type = #tpu.core_type<tc>, window_params = [{transform_indices = @transform_0, window_bounds = array<i64: 168, 128>}, {transform_indices = @transform_1, window_bounds = array<i64: 128, 128>}, {transform_indices = @transform_2, window_bounds = array<i64: 1, 128>}, {transform_indices = @transform_3, window_bounds = array<i64: 168, 128>}]} {
    %c0_i32 = arith.constant 0 : i32
    %0 = arith.cmpi eq, %arg2, %c0_i32 : i32
    %1 = arith.extui %0 : i1 to i32
    %c0_i32_0 = arith.constant 0 : i32
    %2 = arith.cmpi ne, %1, %c0_i32_0 : i32
    scf.if %2 {
      %cst_10 = arith.constant 0.000000e+00 : f32
      %12 = vector.broadcast %cst_10 : f32 to vector<168x128xf32>
      %c0_11 = arith.constant 0 : index
      %c0_12 = arith.constant 0 : index
      %13 = vector.load %arg6[%c0_11, %c0_12] : memref<168x128xf32, #tpu.memory_space<vmem>>, vector<168x128xf32>
      tpu.vector_store %arg6[%c0_11, %c0_12], %12 {strides = array<i32>} : memref<168x128xf32, #tpu.memory_space<vmem>>, vector<168x128xf32>,
    } else {
    }
    %c0 = arith.constant 0 : index
    %c0_1 = arith.constant 0 : index
    %3 = vector.load %arg6[%c0, %c0_1] : memref<168x128xf32, #tpu.memory_space<vmem>>, vector<168x128xf32>
    %c0_2 = arith.constant 0 : index
    %c0_3 = arith.constant 0 : index
    %4 = vector.load %arg3[%c0_2, %c0_3] : memref<168x128xbf16, #tpu.memory_space<vmem>>, vector<168x128xbf16>
    %c0_4 = arith.constant 0 : index
    %c0_5 = arith.constant 0 : index
    %5 = vector.load %arg4[%c0_4, %c0_5] : memref<128x128xbf16, #tpu.memory_space<vmem>>, vector<128x128xbf16>
    %cst = arith.constant dense<0.000000e+00> : vector<168x128xf32>
    %6 = tpu.matmul %4, %5, %cst {dimension_numbers = #tpu.dot_dimension_numbers<[1], [0], [0], [1], [0, 0, 1, 1], [], []>} : vector<168x128xbf16>, vector<128x128xbf16>, vector<168x128xf32> -> vector<168x128xf32>
    %7 = arith.addf %3, %6 : vector<168x128xf32>
    %c0_6 = arith.constant 0 : index
    %c0_7 = arith.constant 0 : index
    %8 = vector.load %arg6[%c0_6, %c0_7] : memref<168x128xf32, #tpu.memory_space<vmem>>, vector<168x128xf32>
    tpu.vector_store %arg6[%c0_6, %c0_7], %7 {strides = array<i32>} : memref<168x128xf32, #tpu.memory_space<vmem>>, vector<168x128xf32>,
    %c0_i32_8 = arith.constant 0 : i32
    %9 = arith.cmpi eq, %arg2, %c0_i32_8 : i32
    %10 = arith.extui %9 : i1 to i32
    %c0_i32_9 = arith.constant 0 : i32
    %11 = arith.cmpi ne, %10, %c0_i32_9 : i32
    scf.if %11 {
      %c0_10 = arith.constant 0 : index
      %c0_11 = arith.constant 0 : index
      %12 = vector.load %arg6[%c0_10, %c0_11] : memref<168x128xf32, #tpu.memory_space<vmem>>, vector<168x128xf32>
      %c0_12 = arith.constant 0 : index
      %c0_13 = arith.constant 0 : index
      %13 = vector.load %arg5[%c0_12, %c0_13] : memref<1x128xf32, #tpu.memory_space<vmem>>, vector<1x128xf32>
      %14 = vector.broadcast %13 : vector<1x128xf32> to vector<168x128xf32>
      %15 = arith.addf %12, %14 : vector<168x128xf32>
      %cst_14 = arith.constant 0.000000e+00 : f32
      %16 = vector.broadcast %cst_14 : f32 to vector<168x128xf32>
      %17 = arith.cmpf oge, %15, %16 : vector<168x128xf32>
      %cst_15 = arith.constant 2.000000e-01 : f32
      %18 = vector.broadcast %cst_15 : f32 to vector<168x128xf32>
      %19 = arith.mulf %18, %15 : vector<168x128xf32>
      %20 = arith.select %17, %15, %19 : vector<168x128xi1>, vector<168x128xf32>
      %c0_16 = arith.constant 0 : index
      %c0_17 = arith.constant 0 : index
      %21 = vector.load %arg6[%c0_16, %c0_17] : memref<168x128xf32, #tpu.memory_space<vmem>>, vector<168x128xf32>
      tpu.vector_store %arg6[%c0_16, %c0_17], %20 {strides = array<i32>} : memref<168x128xf32, #tpu.memory_space<vmem>>, vector<168x128xf32>,
    } else {
    }
    return
  }
  func.func @transform_0(%arg0: i32, %arg1: i32, %arg2: i32) -> (i32, i32) {
    %c0_i32 = arith.constant 0 : i32
    return %arg0, %arg2 : i32, i32
  }
  func.func @transform_1(%arg0: i32, %arg1: i32, %arg2: i32) -> (i32, i32) {
    %c0_i32 = arith.constant 0 : i32
    return %arg2, %arg1 : i32, i32
  }
  func.func @transform_2(%arg0: i32, %arg1: i32, %arg2: i32) -> (i32, i32) {
    %c0_i32 = arith.constant 0 : i32
    %c0_i32_0 = arith.constant 0 : i32
    return %c0_i32, %arg1 : i32, i32
  }
  func.func @transform_3(%arg0: i32, %arg1: i32, %arg2: i32) -> (i32, i32) {
    %c0_i32 = arith.constant 0 : i32
    return %arg0, %arg1 : i32, i32
  }
}

module attributes {stable_mosaic.version = 11 : i64} {
  func.func @_bn_apply_kernel(%arg0: i32, %arg1: memref<56x128xf32, #tpu.memory_space<vmem>>, %arg2: memref<1x128xf32, #tpu.memory_space<vmem>>, %arg3: memref<1x128xf32, #tpu.memory_space<vmem>>, %arg4: memref<1x128xf32, #tpu.memory_space<vmem>>, %arg5: memref<1x128xf32, #tpu.memory_space<vmem>>, %arg6: memref<56x128xf32, #tpu.memory_space<vmem>>) attributes {dimension_semantics = [#tpu.dimension_semantics<parallel>], iteration_bounds = array<i64: 1>, scalar_prefetch = 0 : i64, scratch_operands = 0 : i64, tpu.core_type = #tpu.core_type<tc>, window_params = [{transform_indices = @transform_0, window_bounds = array<i64: 56, 128>}, {pipeline_mode = #tpu.pipeline_mode<synchronous>, transform_indices = @transform_1, window_bounds = array<i64: 1, 128>}, {pipeline_mode = #tpu.pipeline_mode<synchronous>, transform_indices = @transform_2, window_bounds = array<i64: 1, 128>}, {pipeline_mode = #tpu.pipeline_mode<synchronous>, transform_indices = @transform_3, window_bounds = array<i64: 1, 128>}, {pipeline_mode = #tpu.pipeline_mode<synchronous>, transform_indices = @transform_4, window_bounds = array<i64: 1, 128>}, {transform_indices = @transform_5, window_bounds = array<i64: 56, 128>}]} {
    %c0 = arith.constant 0 : index
    %c0_0 = arith.constant 0 : index
    %0 = vector.load %arg2[%c0, %c0_0] : memref<1x128xf32, #tpu.memory_space<vmem>>, vector<1x128xf32>
    %cst = arith.constant 2.000000e-02 : f32
    %1 = vector.broadcast %cst : f32 to vector<1x128xf32>
    %2 = arith.mulf %0, %1 : vector<1x128xf32>
    %c0_1 = arith.constant 0 : index
    %c0_2 = arith.constant 0 : index
    %3 = vector.load %arg3[%c0_1, %c0_2] : memref<1x128xf32, #tpu.memory_space<vmem>>, vector<1x128xf32>
    %cst_3 = arith.constant 2.000000e-02 : f32
    %4 = vector.broadcast %cst_3 : f32 to vector<1x128xf32>
    %5 = arith.mulf %3, %4 : vector<1x128xf32>
    %6 = arith.mulf %2, %2 : vector<1x128xf32>
    %7 = arith.subf %5, %6 : vector<1x128xf32>
    %cst_4 = arith.constant 9.99999974E-6 : f32
    %8 = vector.broadcast %cst_4 : f32 to vector<1x128xf32>
    %9 = arith.addf %7, %8 : vector<1x128xf32>
    %10 = math.rsqrt %9 : vector<1x128xf32>
    %c0_5 = arith.constant 0 : index
    %c0_6 = arith.constant 0 : index
    %11 = vector.load %arg4[%c0_5, %c0_6] : memref<1x128xf32, #tpu.memory_space<vmem>>, vector<1x128xf32>
    %12 = arith.mulf %10, %11 : vector<1x128xf32>
    %c0_7 = arith.constant 0 : index
    %c0_8 = arith.constant 0 : index
    %13 = vector.load %arg1[%c0_7, %c0_8] : memref<56x128xf32, #tpu.memory_space<vmem>>, vector<56x128xf32>
    %14 = vector.broadcast %2 : vector<1x128xf32> to vector<56x128xf32>
    %15 = arith.subf %13, %14 : vector<56x128xf32>
    %16 = vector.broadcast %12 : vector<1x128xf32> to vector<56x128xf32>
    %17 = arith.mulf %15, %16 : vector<56x128xf32>
    %c0_9 = arith.constant 0 : index
    %c0_10 = arith.constant 0 : index
    %18 = vector.load %arg5[%c0_9, %c0_10] : memref<1x128xf32, #tpu.memory_space<vmem>>, vector<1x128xf32>
    %19 = vector.broadcast %18 : vector<1x128xf32> to vector<56x128xf32>
    %20 = arith.addf %17, %19 : vector<56x128xf32>
    %cst_11 = arith.constant 0.000000e+00 : f32
    %21 = vector.broadcast %cst_11 : f32 to vector<56x128xf32>
    %22 = arith.cmpf oge, %20, %21 : vector<56x128xf32>
    %cst_12 = arith.constant 2.000000e-01 : f32
    %23 = vector.broadcast %cst_12 : f32 to vector<56x128xf32>
    %24 = arith.mulf %23, %20 : vector<56x128xf32>
    %25 = arith.select %22, %20, %24 : vector<56x128xi1>, vector<56x128xf32>
    %c0_13 = arith.constant 0 : index
    %c0_14 = arith.constant 0 : index
    %26 = vector.load %arg6[%c0_13, %c0_14] : memref<56x128xf32, #tpu.memory_space<vmem>>, vector<56x128xf32>
    tpu.vector_store %arg6[%c0_13, %c0_14], %25 {strides = array<i32>} : memref<56x128xf32, #tpu.memory_space<vmem>>, vector<56x128xf32>,
    return
  }
  func.func @transform_0(%arg0: i32) -> (i32, i32) {
    %c0_i32 = arith.constant 0 : i32
    %c0_i32_0 = arith.constant 0 : i32
    return %arg0, %c0_i32 : i32, i32
  }
  func.func @transform_1(%arg0: i32) -> (i32, i32) {
    %c0_i32 = arith.constant 0 : i32
    %c0_i32_0 = arith.constant 0 : i32
    %c0_i32_1 = arith.constant 0 : i32
    return %c0_i32, %c0_i32_0 : i32, i32
  }
  func.func @transform_2(%arg0: i32) -> (i32, i32) {
    %c0_i32 = arith.constant 0 : i32
    %c0_i32_0 = arith.constant 0 : i32
    %c0_i32_1 = arith.constant 0 : i32
    return %c0_i32, %c0_i32_0 : i32, i32
  }
  func.func @transform_3(%arg0: i32) -> (i32, i32) {
    %c0_i32 = arith.constant 0 : i32
    %c0_i32_0 = arith.constant 0 : i32
    %c0_i32_1 = arith.constant 0 : i32
    return %c0_i32, %c0_i32_0 : i32, i32
  }
  func.func @transform_4(%arg0: i32) -> (i32, i32) {
    %c0_i32 = arith.constant 0 : i32
    %c0_i32_0 = arith.constant 0 : i32
    %c0_i32_1 = arith.constant 0 : i32
    return %c0_i32, %c0_i32_0 : i32, i32
  }
  func.func @transform_5(%arg0: i32) -> (i32, i32) {
    %c0_i32 = arith.constant 0 : i32
    %c0_i32_0 = arith.constant 0 : i32
    return %arg0, %c0_i32 : i32, i32
  }
}

module attributes {stable_mosaic.version = 11 : i64} {
  func.func @_conv_gemm_kernel(%arg0: i32, %arg1: i32, %arg2: i32, %arg3: memref<56x512xbf16, #tpu.memory_space<vmem>>, %arg4: memref<512x128xbf16, #tpu.memory_space<vmem>>, %arg5: memref<1x128xf32, #tpu.memory_space<vmem>>, %arg6: memref<56x128xf32, #tpu.memory_space<vmem>>) attributes {dimension_semantics = [#tpu.dimension_semantics<parallel>, #tpu.dimension_semantics<parallel>, #tpu.dimension_semantics<arbitrary>], iteration_bounds = array<i64: 1, 1, 2>, scalar_prefetch = 0 : i64, scratch_operands = 0 : i64, tpu.core_type = #tpu.core_type<tc>, window_params = [{transform_indices = @transform_0, window_bounds = array<i64: 56, 512>}, {transform_indices = @transform_1, window_bounds = array<i64: 512, 128>}, {transform_indices = @transform_2, window_bounds = array<i64: 1, 128>}, {transform_indices = @transform_3, window_bounds = array<i64: 56, 128>}]} {
    %c0_i32 = arith.constant 0 : i32
    %0 = arith.cmpi eq, %arg2, %c0_i32 : i32
    %1 = arith.extui %0 : i1 to i32
    %c0_i32_0 = arith.constant 0 : i32
    %2 = arith.cmpi ne, %1, %c0_i32_0 : i32
    scf.if %2 {
      %cst_9 = arith.constant 0.000000e+00 : f32
      %12 = vector.broadcast %cst_9 : f32 to vector<56x128xf32>
      %c0_10 = arith.constant 0 : index
      %c0_11 = arith.constant 0 : index
      %13 = vector.load %arg6[%c0_10, %c0_11] : memref<56x128xf32, #tpu.memory_space<vmem>>, vector<56x128xf32>
      tpu.vector_store %arg6[%c0_10, %c0_11], %12 {strides = array<i32>} : memref<56x128xf32, #tpu.memory_space<vmem>>, vector<56x128xf32>,
    } else {
    }
    %c0 = arith.constant 0 : index
    %c0_1 = arith.constant 0 : index
    %3 = vector.load %arg6[%c0, %c0_1] : memref<56x128xf32, #tpu.memory_space<vmem>>, vector<56x128xf32>
    %c0_2 = arith.constant 0 : index
    %c0_3 = arith.constant 0 : index
    %4 = vector.load %arg3[%c0_2, %c0_3] : memref<56x512xbf16, #tpu.memory_space<vmem>>, vector<56x512xbf16>
    %c0_4 = arith.constant 0 : index
    %c0_5 = arith.constant 0 : index
    %5 = vector.load %arg4[%c0_4, %c0_5] : memref<512x128xbf16, #tpu.memory_space<vmem>>, vector<512x128xbf16>
    %cst = arith.constant dense<0.000000e+00> : vector<56x128xf32>
    %6 = tpu.matmul %4, %5, %cst {dimension_numbers = #tpu.dot_dimension_numbers<[1], [0], [0], [1], [0, 0, 1, 1], [], []>} : vector<56x512xbf16>, vector<512x128xbf16>, vector<56x128xf32> -> vector<56x128xf32>
    %7 = arith.addf %3, %6 : vector<56x128xf32>
    %c0_6 = arith.constant 0 : index
    %c0_7 = arith.constant 0 : index
    %8 = vector.load %arg6[%c0_6, %c0_7] : memref<56x128xf32, #tpu.memory_space<vmem>>, vector<56x128xf32>
    tpu.vector_store %arg6[%c0_6, %c0_7], %7 {strides = array<i32>} : memref<56x128xf32, #tpu.memory_space<vmem>>, vector<56x128xf32>,
    %c1_i32 = arith.constant 1 : i32
    %9 = arith.cmpi eq, %arg2, %c1_i32 : i32
    %10 = arith.extui %9 : i1 to i32
    %c0_i32_8 = arith.constant 0 : i32
    %11 = arith.cmpi ne, %10, %c0_i32_8 : i32
    scf.if %11 {
      %c0_9 = arith.constant 0 : index
      %c0_10 = arith.constant 0 : index
      %12 = vector.load %arg6[%c0_9, %c0_10] : memref<56x128xf32, #tpu.memory_space<vmem>>, vector<56x128xf32>
      %c0_11 = arith.constant 0 : index
      %c0_12 = arith.constant 0 : index
      %13 = vector.load %arg5[%c0_11, %c0_12] : memref<1x128xf32, #tpu.memory_space<vmem>>, vector<1x128xf32>
      %14 = vector.broadcast %13 : vector<1x128xf32> to vector<56x128xf32>
      %15 = arith.addf %12, %14 : vector<56x128xf32>
      %c0_13 = arith.constant 0 : index
      %c0_14 = arith.constant 0 : index
      %16 = vector.load %arg6[%c0_13, %c0_14] : memref<56x128xf32, #tpu.memory_space<vmem>>, vector<56x128xf32>
      tpu.vector_store %arg6[%c0_13, %c0_14], %15 {strides = array<i32>} : memref<56x128xf32, #tpu.memory_space<vmem>>, vector<56x128xf32>,
    } else {
    }
    return
  }
  func.func @transform_0(%arg0: i32, %arg1: i32, %arg2: i32) -> (i32, i32) {
    %c0_i32 = arith.constant 0 : i32
    return %arg0, %arg2 : i32, i32
  }
  func.func @transform_1(%arg0: i32, %arg1: i32, %arg2: i32) -> (i32, i32) {
    %c0_i32 = arith.constant 0 : i32
    return %arg2, %arg1 : i32, i32
  }
  func.func @transform_2(%arg0: i32, %arg1: i32, %arg2: i32) -> (i32, i32) {
    %c0_i32 = arith.constant 0 : i32
    %c0_i32_0 = arith.constant 0 : i32
    return %c0_i32, %arg1 : i32, i32
  }
  func.func @transform_3(%arg0: i32, %arg1: i32, %arg2: i32) -> (i32, i32) {
    %c0_i32 = arith.constant 0 : i32
    return %arg0, %arg1 : i32, i32
  }
}

module attributes {stable_mosaic.version = 11 : i64} {
  func.func @_bn_stats_kernel(%arg0: i32, %arg1: memref<56x128xf32, #tpu.memory_space<vmem>>, %arg2: memref<1x128xf32, #tpu.memory_space<vmem>>, %arg3: memref<1x128xf32, #tpu.memory_space<vmem>>) attributes {dimension_semantics = [#tpu.dimension_semantics<arbitrary>], iteration_bounds = array<i64: 1>, scalar_prefetch = 0 : i64, scratch_operands = 0 : i64, tpu.core_type = #tpu.core_type<tc>, window_params = [{transform_indices = @transform_0, window_bounds = array<i64: 56, 128>}, {pipeline_mode = #tpu.pipeline_mode<synchronous>, transform_indices = @transform_1, window_bounds = array<i64: 1, 128>}, {pipeline_mode = #tpu.pipeline_mode<synchronous>, transform_indices = @transform_2, window_bounds = array<i64: 1, 128>}]} {
    %c0_i32 = arith.constant 0 : i32
    %0 = arith.cmpi eq, %arg0, %c0_i32 : i32
    %1 = arith.extui %0 : i1 to i32
    %c0_i32_0 = arith.constant 0 : i32
    %2 = arith.cmpi ne, %1, %c0_i32_0 : i32
    scf.if %2 {
      %cst_11 = arith.constant 0.000000e+00 : f32
      %15 = vector.broadcast %cst_11 : f32 to vector<1x128xf32>
      %c0_12 = arith.constant 0 : index
      %c0_13 = arith.constant 0 : index
      %16 = vector.load %arg2[%c0_12, %c0_13] : memref<1x128xf32, #tpu.memory_space<vmem>>, vector<1x128xf32>
      tpu.vector_store %arg2[%c0_12, %c0_13], %15 {strides = array<i32>} : memref<1x128xf32, #tpu.memory_space<vmem>>, vector<1x128xf32>,
      %cst_14 = arith.constant 0.000000e+00 : f32
      %17 = vector.broadcast %cst_14 : f32 to vector<1x128xf32>
      %c0_15 = arith.constant 0 : index
      %c0_16 = arith.constant 0 : index
      %18 = vector.load %arg3[%c0_15, %c0_16] : memref<1x128xf32, #tpu.memory_space<vmem>>, vector<1x128xf32>
      tpu.vector_store %arg3[%c0_15, %c0_16], %17 {strides = array<i32>} : memref<1x128xf32, #tpu.memory_space<vmem>>, vector<1x128xf32>,
    } else {
    }
    %c0 = arith.constant 0 : index
    %c0_1 = arith.constant 0 : index
    %3 = vector.load %arg1[%c0, %c0_1] : memref<56x128xf32, #tpu.memory_space<vmem>>, vector<56x128xf32>
    %c0_2 = arith.constant 0 : index
    %c0_3 = arith.constant 0 : index
    %4 = vector.load %arg2[%c0_2, %c0_3] : memref<1x128xf32, #tpu.memory_space<vmem>>, vector<1x128xf32>
    %cst = arith.constant dense<0.000000e+00> : vector<128xf32>
    %5 = vector.multi_reduction <add>, %3, %cst [0] : vector<56x128xf32> to vector<128xf32>
    %6 = vector.shape_cast %5 : vector<128xf32> to vector<1x128xf32>
    %7 = arith.addf %4, %6 : vector<1x128xf32>
    %c0_4 = arith.constant 0 : index
    %c0_5 = arith.constant 0 : index
    %8 = vector.load %arg2[%c0_4, %c0_5] : memref<1x128xf32, #tpu.memory_space<vmem>>, vector<1x128xf32>
    tpu.vector_store %arg2[%c0_4, %c0_5], %7 {strides = array<i32>} : memref<1x128xf32, #tpu.memory_space<vmem>>, vector<1x128xf32>,
    %c0_6 = arith.constant 0 : index
    %c0_7 = arith.constant 0 : index
    %9 = vector.load %arg3[%c0_6, %c0_7] : memref<1x128xf32, #tpu.memory_space<vmem>>, vector<1x128xf32>
    %10 = arith.mulf %3, %3 : vector<56x128xf32>
    %cst_8 = arith.constant dense<0.000000e+00> : vector<128xf32>
    %11 = vector.multi_reduction <add>, %10, %cst_8 [0] : vector<56x128xf32> to vector<128xf32>
    %12 = vector.shape_cast %11 : vector<128xf32> to vector<1x128xf32>
    %13 = arith.addf %9, %12 : vector<1x128xf32>
    %c0_9 = arith.constant 0 : index
    %c0_10 = arith.constant 0 : index
    %14 = vector.load %arg3[%c0_9, %c0_10] : memref<1x128xf32, #tpu.memory_space<vmem>>, vector<1x128xf32>
    tpu.vector_store %arg3[%c0_9, %c0_10], %13 {strides = array<i32>} : memref<1x128xf32, #tpu.memory_space<vmem>>, vector<1x128xf32>,
    return
  }
  func.func @transform_0(%arg0: i32) -> (i32, i32) {
    %c0_i32 = arith.constant 0 : i32
    %c0_i32_0 = arith.constant 0 : i32
    return %arg0, %c0_i32 : i32, i32
  }
  func.func @transform_1(%arg0: i32) -> (i32, i32) {
    %c0_i32 = arith.constant 0 : i32
    %c0_i32_0 = arith.constant 0 : i32
    %c0_i32_1 = arith.constant 0 : i32
    return %c0_i32, %c0_i32_0 : i32, i32
  }
  func.func @transform_2(%arg0: i32) -> (i32, i32) {
    %c0_i32 = arith.constant 0 : i32
    %c0_i32_0 = arith.constant 0 : i32
    %c0_i32_1 = arith.constant 0 : i32
    return %c0_i32, %c0_i32_0 : i32, i32
  }
}

module attributes {stable_mosaic.version = 11 : i64} {
  func.func @_conv_gemm_kernel(%arg0: i32, %arg1: i32, %arg2: i32, %arg3: memref<24x512xbf16, #tpu.memory_space<vmem>>, %arg4: memref<512x256xbf16, #tpu.memory_space<vmem>>, %arg5: memref<1x256xf32, #tpu.memory_space<vmem>>, %arg6: memref<24x256xf32, #tpu.memory_space<vmem>>) attributes {dimension_semantics = [#tpu.dimension_semantics<parallel>, #tpu.dimension_semantics<parallel>, #tpu.dimension_semantics<arbitrary>], iteration_bounds = array<i64: 1, 1, 4>, scalar_prefetch = 0 : i64, scratch_operands = 0 : i64, tpu.core_type = #tpu.core_type<tc>, window_params = [{transform_indices = @transform_0, window_bounds = array<i64: 24, 512>}, {transform_indices = @transform_1, window_bounds = array<i64: 512, 256>}, {transform_indices = @transform_2, window_bounds = array<i64: 1, 256>}, {transform_indices = @transform_3, window_bounds = array<i64: 24, 256>}]} {
    %c0_i32 = arith.constant 0 : i32
    %0 = arith.cmpi eq, %arg2, %c0_i32 : i32
    %1 = arith.extui %0 : i1 to i32
    %c0_i32_0 = arith.constant 0 : i32
    %2 = arith.cmpi ne, %1, %c0_i32_0 : i32
    scf.if %2 {
      %cst_9 = arith.constant 0.000000e+00 : f32
      %12 = vector.broadcast %cst_9 : f32 to vector<24x256xf32>
      %c0_10 = arith.constant 0 : index
      %c0_11 = arith.constant 0 : index
      %13 = vector.load %arg6[%c0_10, %c0_11] : memref<24x256xf32, #tpu.memory_space<vmem>>, vector<24x256xf32>
      tpu.vector_store %arg6[%c0_10, %c0_11], %12 {strides = array<i32>} : memref<24x256xf32, #tpu.memory_space<vmem>>, vector<24x256xf32>,
    } else {
    }
    %c0 = arith.constant 0 : index
    %c0_1 = arith.constant 0 : index
    %3 = vector.load %arg6[%c0, %c0_1] : memref<24x256xf32, #tpu.memory_space<vmem>>, vector<24x256xf32>
    %c0_2 = arith.constant 0 : index
    %c0_3 = arith.constant 0 : index
    %4 = vector.load %arg3[%c0_2, %c0_3] : memref<24x512xbf16, #tpu.memory_space<vmem>>, vector<24x512xbf16>
    %c0_4 = arith.constant 0 : index
    %c0_5 = arith.constant 0 : index
    %5 = vector.load %arg4[%c0_4, %c0_5] : memref<512x256xbf16, #tpu.memory_space<vmem>>, vector<512x256xbf16>
    %cst = arith.constant dense<0.000000e+00> : vector<24x256xf32>
    %6 = tpu.matmul %4, %5, %cst {dimension_numbers = #tpu.dot_dimension_numbers<[1], [0], [0], [1], [0, 0, 1, 1], [], []>} : vector<24x512xbf16>, vector<512x256xbf16>, vector<24x256xf32> -> vector<24x256xf32>
    %7 = arith.addf %3, %6 : vector<24x256xf32>
    %c0_6 = arith.constant 0 : index
    %c0_7 = arith.constant 0 : index
    %8 = vector.load %arg6[%c0_6, %c0_7] : memref<24x256xf32, #tpu.memory_space<vmem>>, vector<24x256xf32>
    tpu.vector_store %arg6[%c0_6, %c0_7], %7 {strides = array<i32>} : memref<24x256xf32, #tpu.memory_space<vmem>>, vector<24x256xf32>,
    %c3_i32 = arith.constant 3 : i32
    %9 = arith.cmpi eq, %arg2, %c3_i32 : i32
    %10 = arith.extui %9 : i1 to i32
    %c0_i32_8 = arith.constant 0 : i32
    %11 = arith.cmpi ne, %10, %c0_i32_8 : i32
    scf.if %11 {
      %c0_9 = arith.constant 0 : index
      %c0_10 = arith.constant 0 : index
      %12 = vector.load %arg6[%c0_9, %c0_10] : memref<24x256xf32, #tpu.memory_space<vmem>>, vector<24x256xf32>
      %c0_11 = arith.constant 0 : index
      %c0_12 = arith.constant 0 : index
      %13 = vector.load %arg5[%c0_11, %c0_12] : memref<1x256xf32, #tpu.memory_space<vmem>>, vector<1x256xf32>
      %14 = vector.broadcast %13 : vector<1x256xf32> to vector<24x256xf32>
      %15 = arith.addf %12, %14 : vector<24x256xf32>
      %c0_13 = arith.constant 0 : index
      %c0_14 = arith.constant 0 : index
      %16 = vector.load %arg6[%c0_13, %c0_14] : memref<24x256xf32, #tpu.memory_space<vmem>>, vector<24x256xf32>
      tpu.vector_store %arg6[%c0_13, %c0_14], %15 {strides = array<i32>} : memref<24x256xf32, #tpu.memory_space<vmem>>, vector<24x256xf32>,
    } else {
    }
    return
  }
  func.func @transform_0(%arg0: i32, %arg1: i32, %arg2: i32) -> (i32, i32) {
    %c0_i32 = arith.constant 0 : i32
    return %arg0, %arg2 : i32, i32
  }
  func.func @transform_1(%arg0: i32, %arg1: i32, %arg2: i32) -> (i32, i32) {
    %c0_i32 = arith.constant 0 : i32
    return %arg2, %arg1 : i32, i32
  }
  func.func @transform_2(%arg0: i32, %arg1: i32, %arg2: i32) -> (i32, i32) {
    %c0_i32 = arith.constant 0 : i32
    %c0_i32_0 = arith.constant 0 : i32
    return %c0_i32, %arg1 : i32, i32
  }
  func.func @transform_3(%arg0: i32, %arg1: i32, %arg2: i32) -> (i32, i32) {
    %c0_i32 = arith.constant 0 : i32
    return %arg0, %arg1 : i32, i32
  }
}

module attributes {stable_mosaic.version = 11 : i64} {
  func.func @_bn_stats_kernel(%arg0: i32, %arg1: memref<24x256xf32, #tpu.memory_space<vmem>>, %arg2: memref<1x256xf32, #tpu.memory_space<vmem>>, %arg3: memref<1x256xf32, #tpu.memory_space<vmem>>) attributes {dimension_semantics = [#tpu.dimension_semantics<arbitrary>], iteration_bounds = array<i64: 1>, scalar_prefetch = 0 : i64, scratch_operands = 0 : i64, tpu.core_type = #tpu.core_type<tc>, window_params = [{transform_indices = @transform_0, window_bounds = array<i64: 24, 256>}, {pipeline_mode = #tpu.pipeline_mode<synchronous>, transform_indices = @transform_1, window_bounds = array<i64: 1, 256>}, {pipeline_mode = #tpu.pipeline_mode<synchronous>, transform_indices = @transform_2, window_bounds = array<i64: 1, 256>}]} {
    %c0_i32 = arith.constant 0 : i32
    %0 = arith.cmpi eq, %arg0, %c0_i32 : i32
    %1 = arith.extui %0 : i1 to i32
    %c0_i32_0 = arith.constant 0 : i32
    %2 = arith.cmpi ne, %1, %c0_i32_0 : i32
    scf.if %2 {
      %cst_11 = arith.constant 0.000000e+00 : f32
      %15 = vector.broadcast %cst_11 : f32 to vector<1x256xf32>
      %c0_12 = arith.constant 0 : index
      %c0_13 = arith.constant 0 : index
      %16 = vector.load %arg2[%c0_12, %c0_13] : memref<1x256xf32, #tpu.memory_space<vmem>>, vector<1x256xf32>
      tpu.vector_store %arg2[%c0_12, %c0_13], %15 {strides = array<i32>} : memref<1x256xf32, #tpu.memory_space<vmem>>, vector<1x256xf32>,
      %cst_14 = arith.constant 0.000000e+00 : f32
      %17 = vector.broadcast %cst_14 : f32 to vector<1x256xf32>
      %c0_15 = arith.constant 0 : index
      %c0_16 = arith.constant 0 : index
      %18 = vector.load %arg3[%c0_15, %c0_16] : memref<1x256xf32, #tpu.memory_space<vmem>>, vector<1x256xf32>
      tpu.vector_store %arg3[%c0_15, %c0_16], %17 {strides = array<i32>} : memref<1x256xf32, #tpu.memory_space<vmem>>, vector<1x256xf32>,
    } else {
    }
    %c0 = arith.constant 0 : index
    %c0_1 = arith.constant 0 : index
    %3 = vector.load %arg1[%c0, %c0_1] : memref<24x256xf32, #tpu.memory_space<vmem>>, vector<24x256xf32>
    %c0_2 = arith.constant 0 : index
    %c0_3 = arith.constant 0 : index
    %4 = vector.load %arg2[%c0_2, %c0_3] : memref<1x256xf32, #tpu.memory_space<vmem>>, vector<1x256xf32>
    %cst = arith.constant dense<0.000000e+00> : vector<256xf32>
    %5 = vector.multi_reduction <add>, %3, %cst [0] : vector<24x256xf32> to vector<256xf32>
    %6 = vector.shape_cast %5 : vector<256xf32> to vector<1x256xf32>
    %7 = arith.addf %4, %6 : vector<1x256xf32>
    %c0_4 = arith.constant 0 : index
    %c0_5 = arith.constant 0 : index
    %8 = vector.load %arg2[%c0_4, %c0_5] : memref<1x256xf32, #tpu.memory_space<vmem>>, vector<1x256xf32>
    tpu.vector_store %arg2[%c0_4, %c0_5], %7 {strides = array<i32>} : memref<1x256xf32, #tpu.memory_space<vmem>>, vector<1x256xf32>,
    %c0_6 = arith.constant 0 : index
    %c0_7 = arith.constant 0 : index
    %9 = vector.load %arg3[%c0_6, %c0_7] : memref<1x256xf32, #tpu.memory_space<vmem>>, vector<1x256xf32>
    %10 = arith.mulf %3, %3 : vector<24x256xf32>
    %cst_8 = arith.constant dense<0.000000e+00> : vector<256xf32>
    %11 = vector.multi_reduction <add>, %10, %cst_8 [0] : vector<24x256xf32> to vector<256xf32>
    %12 = vector.shape_cast %11 : vector<256xf32> to vector<1x256xf32>
    %13 = arith.addf %9, %12 : vector<1x256xf32>
    %c0_9 = arith.constant 0 : index
    %c0_10 = arith.constant 0 : index
    %14 = vector.load %arg3[%c0_9, %c0_10] : memref<1x256xf32, #tpu.memory_space<vmem>>, vector<1x256xf32>
    tpu.vector_store %arg3[%c0_9, %c0_10], %13 {strides = array<i32>} : memref<1x256xf32, #tpu.memory_space<vmem>>, vector<1x256xf32>,
    return
  }
  func.func @transform_0(%arg0: i32) -> (i32, i32) {
    %c0_i32 = arith.constant 0 : i32
    %c0_i32_0 = arith.constant 0 : i32
    return %arg0, %c0_i32 : i32, i32
  }
  func.func @transform_1(%arg0: i32) -> (i32, i32) {
    %c0_i32 = arith.constant 0 : i32
    %c0_i32_0 = arith.constant 0 : i32
    %c0_i32_1 = arith.constant 0 : i32
    return %c0_i32, %c0_i32_0 : i32, i32
  }
  func.func @transform_2(%arg0: i32) -> (i32, i32) {
    %c0_i32 = arith.constant 0 : i32
    %c0_i32_0 = arith.constant 0 : i32
    %c0_i32_1 = arith.constant 0 : i32
    return %c0_i32, %c0_i32_0 : i32, i32
  }
}

module attributes {stable_mosaic.version = 11 : i64} {
  func.func @_bn_apply_kernel(%arg0: i32, %arg1: memref<24x256xf32, #tpu.memory_space<vmem>>, %arg2: memref<1x256xf32, #tpu.memory_space<vmem>>, %arg3: memref<1x256xf32, #tpu.memory_space<vmem>>, %arg4: memref<1x256xf32, #tpu.memory_space<vmem>>, %arg5: memref<1x256xf32, #tpu.memory_space<vmem>>, %arg6: memref<24x256xf32, #tpu.memory_space<vmem>>) attributes {dimension_semantics = [#tpu.dimension_semantics<parallel>], iteration_bounds = array<i64: 1>, scalar_prefetch = 0 : i64, scratch_operands = 0 : i64, tpu.core_type = #tpu.core_type<tc>, window_params = [{transform_indices = @transform_0, window_bounds = array<i64: 24, 256>}, {pipeline_mode = #tpu.pipeline_mode<synchronous>, transform_indices = @transform_1, window_bounds = array<i64: 1, 256>}, {pipeline_mode = #tpu.pipeline_mode<synchronous>, transform_indices = @transform_2, window_bounds = array<i64: 1, 256>}, {pipeline_mode = #tpu.pipeline_mode<synchronous>, transform_indices = @transform_3, window_bounds = array<i64: 1, 256>}, {pipeline_mode = #tpu.pipeline_mode<synchronous>, transform_indices = @transform_4, window_bounds = array<i64: 1, 256>}, {transform_indices = @transform_5, window_bounds = array<i64: 24, 256>}]} {
    %c0 = arith.constant 0 : index
    %c0_0 = arith.constant 0 : index
    %0 = vector.load %arg2[%c0, %c0_0] : memref<1x256xf32, #tpu.memory_space<vmem>>, vector<1x256xf32>
    %cst = arith.constant 0.055555556 : f32
    %1 = vector.broadcast %cst : f32 to vector<1x256xf32>
    %2 = arith.mulf %0, %1 : vector<1x256xf32>
    %c0_1 = arith.constant 0 : index
    %c0_2 = arith.constant 0 : index
    %3 = vector.load %arg3[%c0_1, %c0_2] : memref<1x256xf32, #tpu.memory_space<vmem>>, vector<1x256xf32>
    %cst_3 = arith.constant 0.055555556 : f32
    %4 = vector.broadcast %cst_3 : f32 to vector<1x256xf32>
    %5 = arith.mulf %3, %4 : vector<1x256xf32>
    %6 = arith.mulf %2, %2 : vector<1x256xf32>
    %7 = arith.subf %5, %6 : vector<1x256xf32>
    %cst_4 = arith.constant 9.99999974E-6 : f32
    %8 = vector.broadcast %cst_4 : f32 to vector<1x256xf32>
    %9 = arith.addf %7, %8 : vector<1x256xf32>
    %10 = math.rsqrt %9 : vector<1x256xf32>
    %c0_5 = arith.constant 0 : index
    %c0_6 = arith.constant 0 : index
    %11 = vector.load %arg4[%c0_5, %c0_6] : memref<1x256xf32, #tpu.memory_space<vmem>>, vector<1x256xf32>
    %12 = arith.mulf %10, %11 : vector<1x256xf32>
    %c0_7 = arith.constant 0 : index
    %c0_8 = arith.constant 0 : index
    %13 = vector.load %arg1[%c0_7, %c0_8] : memref<24x256xf32, #tpu.memory_space<vmem>>, vector<24x256xf32>
    %14 = vector.broadcast %2 : vector<1x256xf32> to vector<24x256xf32>
    %15 = arith.subf %13, %14 : vector<24x256xf32>
    %16 = vector.broadcast %12 : vector<1x256xf32> to vector<24x256xf32>
    %17 = arith.mulf %15, %16 : vector<24x256xf32>
    %c0_9 = arith.constant 0 : index
    %c0_10 = arith.constant 0 : index
    %18 = vector.load %arg5[%c0_9, %c0_10] : memref<1x256xf32, #tpu.memory_space<vmem>>, vector<1x256xf32>
    %19 = vector.broadcast %18 : vector<1x256xf32> to vector<24x256xf32>
    %20 = arith.addf %17, %19 : vector<24x256xf32>
    %cst_11 = arith.constant 0.000000e+00 : f32
    %21 = vector.broadcast %cst_11 : f32 to vector<24x256xf32>
    %22 = arith.cmpf oge, %20, %21 : vector<24x256xf32>
    %cst_12 = arith.constant 2.000000e-01 : f32
    %23 = vector.broadcast %cst_12 : f32 to vector<24x256xf32>
    %24 = arith.mulf %23, %20 : vector<24x256xf32>
    %25 = arith.select %22, %20, %24 : vector<24x256xi1>, vector<24x256xf32>
    %c0_13 = arith.constant 0 : index
    %c0_14 = arith.constant 0 : index
    %26 = vector.load %arg6[%c0_13, %c0_14] : memref<24x256xf32, #tpu.memory_space<vmem>>, vector<24x256xf32>
    tpu.vector_store %arg6[%c0_13, %c0_14], %25 {strides = array<i32>} : memref<24x256xf32, #tpu.memory_space<vmem>>, vector<24x256xf32>,
    return
  }
  func.func @transform_0(%arg0: i32) -> (i32, i32) {
    %c0_i32 = arith.constant 0 : i32
    %c0_i32_0 = arith.constant 0 : i32
    return %arg0, %c0_i32 : i32, i32
  }
  func.func @transform_1(%arg0: i32) -> (i32, i32) {
    %c0_i32 = arith.constant 0 : i32
    %c0_i32_0 = arith.constant 0 : i32
    %c0_i32_1 = arith.constant 0 : i32
    return %c0_i32, %c0_i32_0 : i32, i32
  }
  func.func @transform_2(%arg0: i32) -> (i32, i32) {
    %c0_i32 = arith.constant 0 : i32
    %c0_i32_0 = arith.constant 0 : i32
    %c0_i32_1 = arith.constant 0 : i32
    return %c0_i32, %c0_i32_0 : i32, i32
  }
  func.func @transform_3(%arg0: i32) -> (i32, i32) {
    %c0_i32 = arith.constant 0 : i32
    %c0_i32_0 = arith.constant 0 : i32
    %c0_i32_1 = arith.constant 0 : i32
    return %c0_i32, %c0_i32_0 : i32, i32
  }
  func.func @transform_4(%arg0: i32) -> (i32, i32) {
    %c0_i32 = arith.constant 0 : i32
    %c0_i32_0 = arith.constant 0 : i32
    %c0_i32_1 = arith.constant 0 : i32
    return %c0_i32, %c0_i32_0 : i32, i32
  }
  func.func @transform_5(%arg0: i32) -> (i32, i32) {
    %c0_i32 = arith.constant 0 : i32
    %c0_i32_0 = arith.constant 0 : i32
    return %arg0, %c0_i32 : i32, i32
  }
}

module attributes {stable_mosaic.version = 11 : i64} {
  func.func @_bn_stats_kernel(%arg0: i32, %arg1: memref<32x512xf32, #tpu.memory_space<vmem>>, %arg2: memref<1x512xf32, #tpu.memory_space<vmem>>, %arg3: memref<1x512xf32, #tpu.memory_space<vmem>>) attributes {dimension_semantics = [#tpu.dimension_semantics<arbitrary>], iteration_bounds = array<i64: 1>, scalar_prefetch = 0 : i64, scratch_operands = 0 : i64, tpu.core_type = #tpu.core_type<tc>, window_params = [{transform_indices = @transform_0, window_bounds = array<i64: 32, 512>}, {pipeline_mode = #tpu.pipeline_mode<synchronous>, transform_indices = @transform_1, window_bounds = array<i64: 1, 512>}, {pipeline_mode = #tpu.pipeline_mode<synchronous>, transform_indices = @transform_2, window_bounds = array<i64: 1, 512>}]} {
    %c0_i32 = arith.constant 0 : i32
    %0 = arith.cmpi eq, %arg0, %c0_i32 : i32
    %1 = arith.extui %0 : i1 to i32
    %c0_i32_0 = arith.constant 0 : i32
    %2 = arith.cmpi ne, %1, %c0_i32_0 : i32
    scf.if %2 {
      %cst_11 = arith.constant 0.000000e+00 : f32
      %15 = vector.broadcast %cst_11 : f32 to vector<1x512xf32>
      %c0_12 = arith.constant 0 : index
      %c0_13 = arith.constant 0 : index
      %16 = vector.load %arg2[%c0_12, %c0_13] : memref<1x512xf32, #tpu.memory_space<vmem>>, vector<1x512xf32>
      tpu.vector_store %arg2[%c0_12, %c0_13], %15 {strides = array<i32>} : memref<1x512xf32, #tpu.memory_space<vmem>>, vector<1x512xf32>,
      %cst_14 = arith.constant 0.000000e+00 : f32
      %17 = vector.broadcast %cst_14 : f32 to vector<1x512xf32>
      %c0_15 = arith.constant 0 : index
      %c0_16 = arith.constant 0 : index
      %18 = vector.load %arg3[%c0_15, %c0_16] : memref<1x512xf32, #tpu.memory_space<vmem>>, vector<1x512xf32>
      tpu.vector_store %arg3[%c0_15, %c0_16], %17 {strides = array<i32>} : memref<1x512xf32, #tpu.memory_space<vmem>>, vector<1x512xf32>,
    } else {
    }
    %c0 = arith.constant 0 : index
    %c0_1 = arith.constant 0 : index
    %3 = vector.load %arg1[%c0, %c0_1] : memref<32x512xf32, #tpu.memory_space<vmem>>, vector<32x512xf32>
    %c0_2 = arith.constant 0 : index
    %c0_3 = arith.constant 0 : index
    %4 = vector.load %arg2[%c0_2, %c0_3] : memref<1x512xf32, #tpu.memory_space<vmem>>, vector<1x512xf32>
    %cst = arith.constant dense<0.000000e+00> : vector<512xf32>
    %5 = vector.multi_reduction <add>, %3, %cst [0] : vector<32x512xf32> to vector<512xf32>
    %6 = vector.shape_cast %5 : vector<512xf32> to vector<1x512xf32>
    %7 = arith.addf %4, %6 : vector<1x512xf32>
    %c0_4 = arith.constant 0 : index
    %c0_5 = arith.constant 0 : index
    %8 = vector.load %arg2[%c0_4, %c0_5] : memref<1x512xf32, #tpu.memory_space<vmem>>, vector<1x512xf32>
    tpu.vector_store %arg2[%c0_4, %c0_5], %7 {strides = array<i32>} : memref<1x512xf32, #tpu.memory_space<vmem>>, vector<1x512xf32>,
    %c0_6 = arith.constant 0 : index
    %c0_7 = arith.constant 0 : index
    %9 = vector.load %arg3[%c0_6, %c0_7] : memref<1x512xf32, #tpu.memory_space<vmem>>, vector<1x512xf32>
    %10 = arith.mulf %3, %3 : vector<32x512xf32>
    %cst_8 = arith.constant dense<0.000000e+00> : vector<512xf32>
    %11 = vector.multi_reduction <add>, %10, %cst_8 [0] : vector<32x512xf32> to vector<512xf32>
    %12 = vector.shape_cast %11 : vector<512xf32> to vector<1x512xf32>
    %13 = arith.addf %9, %12 : vector<1x512xf32>
    %c0_9 = arith.constant 0 : index
    %c0_10 = arith.constant 0 : index
    %14 = vector.load %arg3[%c0_9, %c0_10] : memref<1x512xf32, #tpu.memory_space<vmem>>, vector<1x512xf32>
    tpu.vector_store %arg3[%c0_9, %c0_10], %13 {strides = array<i32>} : memref<1x512xf32, #tpu.memory_space<vmem>>, vector<1x512xf32>,
    return
  }
  func.func @transform_0(%arg0: i32) -> (i32, i32) {
    %c0_i32 = arith.constant 0 : i32
    %c0_i32_0 = arith.constant 0 : i32
    return %arg0, %c0_i32 : i32, i32
  }
  func.func @transform_1(%arg0: i32) -> (i32, i32) {
    %c0_i32 = arith.constant 0 : i32
    %c0_i32_0 = arith.constant 0 : i32
    %c0_i32_1 = arith.constant 0 : i32
    return %c0_i32, %c0_i32_0 : i32, i32
  }
  func.func @transform_2(%arg0: i32) -> (i32, i32) {
    %c0_i32 = arith.constant 0 : i32
    %c0_i32_0 = arith.constant 0 : i32
    %c0_i32_1 = arith.constant 0 : i32
    return %c0_i32, %c0_i32_0 : i32, i32
  }
}

module attributes {stable_mosaic.version = 11 : i64} {
  func.func @_conv_gemm_kernel(%arg0: i32, %arg1: i32, %arg2: i32, %arg3: memref<32x512xbf16, #tpu.memory_space<vmem>>, %arg4: memref<512x256xbf16, #tpu.memory_space<vmem>>, %arg5: memref<1x256xf32, #tpu.memory_space<vmem>>, %arg6: memref<32x256xf32, #tpu.memory_space<vmem>>) attributes {dimension_semantics = [#tpu.dimension_semantics<parallel>, #tpu.dimension_semantics<parallel>, #tpu.dimension_semantics<arbitrary>], iteration_bounds = array<i64: 1, 2, 8>, scalar_prefetch = 0 : i64, scratch_operands = 0 : i64, tpu.core_type = #tpu.core_type<tc>, window_params = [{transform_indices = @transform_0, window_bounds = array<i64: 32, 512>}, {transform_indices = @transform_1, window_bounds = array<i64: 512, 256>}, {transform_indices = @transform_2, window_bounds = array<i64: 1, 256>}, {transform_indices = @transform_3, window_bounds = array<i64: 32, 256>}]} {
    %c0_i32 = arith.constant 0 : i32
    %0 = arith.cmpi eq, %arg2, %c0_i32 : i32
    %1 = arith.extui %0 : i1 to i32
    %c0_i32_0 = arith.constant 0 : i32
    %2 = arith.cmpi ne, %1, %c0_i32_0 : i32
    scf.if %2 {
      %cst_9 = arith.constant 0.000000e+00 : f32
      %12 = vector.broadcast %cst_9 : f32 to vector<32x256xf32>
      %c0_10 = arith.constant 0 : index
      %c0_11 = arith.constant 0 : index
      %13 = vector.load %arg6[%c0_10, %c0_11] : memref<32x256xf32, #tpu.memory_space<vmem>>, vector<32x256xf32>
      tpu.vector_store %arg6[%c0_10, %c0_11], %12 {strides = array<i32>} : memref<32x256xf32, #tpu.memory_space<vmem>>, vector<32x256xf32>,
    } else {
    }
    %c0 = arith.constant 0 : index
    %c0_1 = arith.constant 0 : index
    %3 = vector.load %arg6[%c0, %c0_1] : memref<32x256xf32, #tpu.memory_space<vmem>>, vector<32x256xf32>
    %c0_2 = arith.constant 0 : index
    %c0_3 = arith.constant 0 : index
    %4 = vector.load %arg3[%c0_2, %c0_3] : memref<32x512xbf16, #tpu.memory_space<vmem>>, vector<32x512xbf16>
    %c0_4 = arith.constant 0 : index
    %c0_5 = arith.constant 0 : index
    %5 = vector.load %arg4[%c0_4, %c0_5] : memref<512x256xbf16, #tpu.memory_space<vmem>>, vector<512x256xbf16>
    %cst = arith.constant dense<0.000000e+00> : vector<32x256xf32>
    %6 = tpu.matmul %4, %5, %cst {dimension_numbers = #tpu.dot_dimension_numbers<[1], [0], [0], [1], [0, 0, 1, 1], [], []>} : vector<32x512xbf16>, vector<512x256xbf16>, vector<32x256xf32> -> vector<32x256xf32>
    %7 = arith.addf %3, %6 : vector<32x256xf32>
    %c0_6 = arith.constant 0 : index
    %c0_7 = arith.constant 0 : index
    %8 = vector.load %arg6[%c0_6, %c0_7] : memref<32x256xf32, #tpu.memory_space<vmem>>, vector<32x256xf32>
    tpu.vector_store %arg6[%c0_6, %c0_7], %7 {strides = array<i32>} : memref<32x256xf32, #tpu.memory_space<vmem>>, vector<32x256xf32>,
    %c7_i32 = arith.constant 7 : i32
    %9 = arith.cmpi eq, %arg2, %c7_i32 : i32
    %10 = arith.extui %9 : i1 to i32
    %c0_i32_8 = arith.constant 0 : i32
    %11 = arith.cmpi ne, %10, %c0_i32_8 : i32
    scf.if %11 {
      %c0_9 = arith.constant 0 : index
      %c0_10 = arith.constant 0 : index
      %12 = vector.load %arg6[%c0_9, %c0_10] : memref<32x256xf32, #tpu.memory_space<vmem>>, vector<32x256xf32>
      %c0_11 = arith.constant 0 : index
      %c0_12 = arith.constant 0 : index
      %13 = vector.load %arg5[%c0_11, %c0_12] : memref<1x256xf32, #tpu.memory_space<vmem>>, vector<1x256xf32>
      %14 = vector.broadcast %13 : vector<1x256xf32> to vector<32x256xf32>
      %15 = arith.addf %12, %14 : vector<32x256xf32>
      %c0_13 = arith.constant 0 : index
      %c0_14 = arith.constant 0 : index
      %16 = vector.load %arg6[%c0_13, %c0_14] : memref<32x256xf32, #tpu.memory_space<vmem>>, vector<32x256xf32>
      tpu.vector_store %arg6[%c0_13, %c0_14], %15 {strides = array<i32>} : memref<32x256xf32, #tpu.memory_space<vmem>>, vector<32x256xf32>,
    } else {
    }
    return
  }
  func.func @transform_0(%arg0: i32, %arg1: i32, %arg2: i32) -> (i32, i32) {
    %c0_i32 = arith.constant 0 : i32
    return %arg0, %arg2 : i32, i32
  }
  func.func @transform_1(%arg0: i32, %arg1: i32, %arg2: i32) -> (i32, i32) {
    %c0_i32 = arith.constant 0 : i32
    return %arg2, %arg1 : i32, i32
  }
  func.func @transform_2(%arg0: i32, %arg1: i32, %arg2: i32) -> (i32, i32) {
    %c0_i32 = arith.constant 0 : i32
    %c0_i32_0 = arith.constant 0 : i32
    return %c0_i32, %arg1 : i32, i32
  }
  func.func @transform_3(%arg0: i32, %arg1: i32, %arg2: i32) -> (i32, i32) {
    %c0_i32 = arith.constant 0 : i32
    return %arg0, %arg1 : i32, i32
  }
}

module attributes {stable_mosaic.version = 11 : i64} {
  func.func @_bn_apply_kernel(%arg0: i32, %arg1: memref<32x512xf32, #tpu.memory_space<vmem>>, %arg2: memref<1x512xf32, #tpu.memory_space<vmem>>, %arg3: memref<1x512xf32, #tpu.memory_space<vmem>>, %arg4: memref<1x512xf32, #tpu.memory_space<vmem>>, %arg5: memref<1x512xf32, #tpu.memory_space<vmem>>, %arg6: memref<32x512xf32, #tpu.memory_space<vmem>>) attributes {dimension_semantics = [#tpu.dimension_semantics<parallel>], iteration_bounds = array<i64: 1>, scalar_prefetch = 0 : i64, scratch_operands = 0 : i64, tpu.core_type = #tpu.core_type<tc>, window_params = [{transform_indices = @transform_0, window_bounds = array<i64: 32, 512>}, {pipeline_mode = #tpu.pipeline_mode<synchronous>, transform_indices = @transform_1, window_bounds = array<i64: 1, 512>}, {pipeline_mode = #tpu.pipeline_mode<synchronous>, transform_indices = @transform_2, window_bounds = array<i64: 1, 512>}, {pipeline_mode = #tpu.pipeline_mode<synchronous>, transform_indices = @transform_3, window_bounds = array<i64: 1, 512>}, {pipeline_mode = #tpu.pipeline_mode<synchronous>, transform_indices = @transform_4, window_bounds = array<i64: 1, 512>}, {transform_indices = @transform_5, window_bounds = array<i64: 32, 512>}]} {
    %c0 = arith.constant 0 : index
    %c0_0 = arith.constant 0 : index
    %0 = vector.load %arg2[%c0, %c0_0] : memref<1x512xf32, #tpu.memory_space<vmem>>, vector<1x512xf32>
    %cst = arith.constant 3.125000e-02 : f32
    %1 = vector.broadcast %cst : f32 to vector<1x512xf32>
    %2 = arith.mulf %0, %1 : vector<1x512xf32>
    %c0_1 = arith.constant 0 : index
    %c0_2 = arith.constant 0 : index
    %3 = vector.load %arg3[%c0_1, %c0_2] : memref<1x512xf32, #tpu.memory_space<vmem>>, vector<1x512xf32>
    %cst_3 = arith.constant 3.125000e-02 : f32
    %4 = vector.broadcast %cst_3 : f32 to vector<1x512xf32>
    %5 = arith.mulf %3, %4 : vector<1x512xf32>
    %6 = arith.mulf %2, %2 : vector<1x512xf32>
    %7 = arith.subf %5, %6 : vector<1x512xf32>
    %cst_4 = arith.constant 9.99999974E-6 : f32
    %8 = vector.broadcast %cst_4 : f32 to vector<1x512xf32>
    %9 = arith.addf %7, %8 : vector<1x512xf32>
    %10 = math.rsqrt %9 : vector<1x512xf32>
    %c0_5 = arith.constant 0 : index
    %c0_6 = arith.constant 0 : index
    %11 = vector.load %arg4[%c0_5, %c0_6] : memref<1x512xf32, #tpu.memory_space<vmem>>, vector<1x512xf32>
    %12 = arith.mulf %10, %11 : vector<1x512xf32>
    %c0_7 = arith.constant 0 : index
    %c0_8 = arith.constant 0 : index
    %13 = vector.load %arg1[%c0_7, %c0_8] : memref<32x512xf32, #tpu.memory_space<vmem>>, vector<32x512xf32>
    %14 = vector.broadcast %2 : vector<1x512xf32> to vector<32x512xf32>
    %15 = arith.subf %13, %14 : vector<32x512xf32>
    %16 = vector.broadcast %12 : vector<1x512xf32> to vector<32x512xf32>
    %17 = arith.mulf %15, %16 : vector<32x512xf32>
    %c0_9 = arith.constant 0 : index
    %c0_10 = arith.constant 0 : index
    %18 = vector.load %arg5[%c0_9, %c0_10] : memref<1x512xf32, #tpu.memory_space<vmem>>, vector<1x512xf32>
    %19 = vector.broadcast %18 : vector<1x512xf32> to vector<32x512xf32>
    %20 = arith.addf %17, %19 : vector<32x512xf32>
    %cst_11 = arith.constant 0.000000e+00 : f32
    %21 = vector.broadcast %cst_11 : f32 to vector<32x512xf32>
    %22 = arith.cmpf oge, %20, %21 : vector<32x512xf32>
    %cst_12 = arith.constant 2.000000e-01 : f32
    %23 = vector.broadcast %cst_12 : f32 to vector<32x512xf32>
    %24 = arith.mulf %23, %20 : vector<32x512xf32>
    %25 = arith.select %22, %20, %24 : vector<32x512xi1>, vector<32x512xf32>
    %c0_13 = arith.constant 0 : index
    %c0_14 = arith.constant 0 : index
    %26 = vector.load %arg6[%c0_13, %c0_14] : memref<32x512xf32, #tpu.memory_space<vmem>>, vector<32x512xf32>
    tpu.vector_store %arg6[%c0_13, %c0_14], %25 {strides = array<i32>} : memref<32x512xf32, #tpu.memory_space<vmem>>, vector<32x512xf32>,
    return
  }
  func.func @transform_0(%arg0: i32) -> (i32, i32) {
    %c0_i32 = arith.constant 0 : i32
    %c0_i32_0 = arith.constant 0 : i32
    return %arg0, %c0_i32 : i32, i32
  }
  func.func @transform_1(%arg0: i32) -> (i32, i32) {
    %c0_i32 = arith.constant 0 : i32
    %c0_i32_0 = arith.constant 0 : i32
    %c0_i32_1 = arith.constant 0 : i32
    return %c0_i32, %c0_i32_0 : i32, i32
  }
  func.func @transform_2(%arg0: i32) -> (i32, i32) {
    %c0_i32 = arith.constant 0 : i32
    %c0_i32_0 = arith.constant 0 : i32
    %c0_i32_1 = arith.constant 0 : i32
    return %c0_i32, %c0_i32_0 : i32, i32
  }
  func.func @transform_3(%arg0: i32) -> (i32, i32) {
    %c0_i32 = arith.constant 0 : i32
    %c0_i32_0 = arith.constant 0 : i32
    %c0_i32_1 = arith.constant 0 : i32
    return %c0_i32, %c0_i32_0 : i32, i32
  }
  func.func @transform_4(%arg0: i32) -> (i32, i32) {
    %c0_i32 = arith.constant 0 : i32
    %c0_i32_0 = arith.constant 0 : i32
    %c0_i32_1 = arith.constant 0 : i32
    return %c0_i32, %c0_i32_0 : i32, i32
  }
  func.func @transform_5(%arg0: i32) -> (i32, i32) {
    %c0_i32 = arith.constant 0 : i32
    %c0_i32_0 = arith.constant 0 : i32
    return %arg0, %c0_i32 : i32, i32
  }
}

module attributes {stable_mosaic.version = 11 : i64} {
  func.func @_conv_gemm_kernel(%arg0: i32, %arg1: i32, %arg2: i32, %arg3: memref<56x512xbf16, #tpu.memory_space<vmem>>, %arg4: memref<512x128xbf16, #tpu.memory_space<vmem>>, %arg5: memref<1x128xf32, #tpu.memory_space<vmem>>, %arg6: memref<56x128xf32, #tpu.memory_space<vmem>>) attributes {dimension_semantics = [#tpu.dimension_semantics<parallel>, #tpu.dimension_semantics<parallel>, #tpu.dimension_semantics<arbitrary>], iteration_bounds = array<i64: 1, 1, 16>, scalar_prefetch = 0 : i64, scratch_operands = 0 : i64, tpu.core_type = #tpu.core_type<tc>, window_params = [{transform_indices = @transform_0, window_bounds = array<i64: 56, 512>}, {transform_indices = @transform_1, window_bounds = array<i64: 512, 128>}, {transform_indices = @transform_2, window_bounds = array<i64: 1, 128>}, {transform_indices = @transform_3, window_bounds = array<i64: 56, 128>}]} {
    %c0_i32 = arith.constant 0 : i32
    %0 = arith.cmpi eq, %arg2, %c0_i32 : i32
    %1 = arith.extui %0 : i1 to i32
    %c0_i32_0 = arith.constant 0 : i32
    %2 = arith.cmpi ne, %1, %c0_i32_0 : i32
    scf.if %2 {
      %cst_9 = arith.constant 0.000000e+00 : f32
      %12 = vector.broadcast %cst_9 : f32 to vector<56x128xf32>
      %c0_10 = arith.constant 0 : index
      %c0_11 = arith.constant 0 : index
      %13 = vector.load %arg6[%c0_10, %c0_11] : memref<56x128xf32, #tpu.memory_space<vmem>>, vector<56x128xf32>
      tpu.vector_store %arg6[%c0_10, %c0_11], %12 {strides = array<i32>} : memref<56x128xf32, #tpu.memory_space<vmem>>, vector<56x128xf32>,
    } else {
    }
    %c0 = arith.constant 0 : index
    %c0_1 = arith.constant 0 : index
    %3 = vector.load %arg6[%c0, %c0_1] : memref<56x128xf32, #tpu.memory_space<vmem>>, vector<56x128xf32>
    %c0_2 = arith.constant 0 : index
    %c0_3 = arith.constant 0 : index
    %4 = vector.load %arg3[%c0_2, %c0_3] : memref<56x512xbf16, #tpu.memory_space<vmem>>, vector<56x512xbf16>
    %c0_4 = arith.constant 0 : index
    %c0_5 = arith.constant 0 : index
    %5 = vector.load %arg4[%c0_4, %c0_5] : memref<512x128xbf16, #tpu.memory_space<vmem>>, vector<512x128xbf16>
    %cst = arith.constant dense<0.000000e+00> : vector<56x128xf32>
    %6 = tpu.matmul %4, %5, %cst {dimension_numbers = #tpu.dot_dimension_numbers<[1], [0], [0], [1], [0, 0, 1, 1], [], []>} : vector<56x512xbf16>, vector<512x128xbf16>, vector<56x128xf32> -> vector<56x128xf32>
    %7 = arith.addf %3, %6 : vector<56x128xf32>
    %c0_6 = arith.constant 0 : index
    %c0_7 = arith.constant 0 : index
    %8 = vector.load %arg6[%c0_6, %c0_7] : memref<56x128xf32, #tpu.memory_space<vmem>>, vector<56x128xf32>
    tpu.vector_store %arg6[%c0_6, %c0_7], %7 {strides = array<i32>} : memref<56x128xf32, #tpu.memory_space<vmem>>, vector<56x128xf32>,
    %c15_i32 = arith.constant 15 : i32
    %9 = arith.cmpi eq, %arg2, %c15_i32 : i32
    %10 = arith.extui %9 : i1 to i32
    %c0_i32_8 = arith.constant 0 : i32
    %11 = arith.cmpi ne, %10, %c0_i32_8 : i32
    scf.if %11 {
      %c0_9 = arith.constant 0 : index
      %c0_10 = arith.constant 0 : index
      %12 = vector.load %arg6[%c0_9, %c0_10] : memref<56x128xf32, #tpu.memory_space<vmem>>, vector<56x128xf32>
      %c0_11 = arith.constant 0 : index
      %c0_12 = arith.constant 0 : index
      %13 = vector.load %arg5[%c0_11, %c0_12] : memref<1x128xf32, #tpu.memory_space<vmem>>, vector<1x128xf32>
      %14 = vector.broadcast %13 : vector<1x128xf32> to vector<56x128xf32>
      %15 = arith.addf %12, %14 : vector<56x128xf32>
      %c0_13 = arith.constant 0 : index
      %c0_14 = arith.constant 0 : index
      %16 = vector.load %arg6[%c0_13, %c0_14] : memref<56x128xf32, #tpu.memory_space<vmem>>, vector<56x128xf32>
      tpu.vector_store %arg6[%c0_13, %c0_14], %15 {strides = array<i32>} : memref<56x128xf32, #tpu.memory_space<vmem>>, vector<56x128xf32>,
    } else {
    }
    return
  }
  func.func @transform_0(%arg0: i32, %arg1: i32, %arg2: i32) -> (i32, i32) {
    %c0_i32 = arith.constant 0 : i32
    return %arg0, %arg2 : i32, i32
  }
  func.func @transform_1(%arg0: i32, %arg1: i32, %arg2: i32) -> (i32, i32) {
    %c0_i32 = arith.constant 0 : i32
    return %arg2, %arg1 : i32, i32
  }
  func.func @transform_2(%arg0: i32, %arg1: i32, %arg2: i32) -> (i32, i32) {
    %c0_i32 = arith.constant 0 : i32
    %c0_i32_0 = arith.constant 0 : i32
    return %c0_i32, %arg1 : i32, i32
  }
  func.func @transform_3(%arg0: i32, %arg1: i32, %arg2: i32) -> (i32, i32) {
    %c0_i32 = arith.constant 0 : i32
    return %arg0, %arg1 : i32, i32
  }
}

</mosaic_0001>

<bundles_post_ra>
// kernel: _lambda_.11
= control target key start
LH: loop header
LB: loop body
LE: loop exit
PB: predicated region body
PF: predicated region fallthrough
CT: control target
= control target key end

     0   :  { %8 = vsyncpa [#allocation3], 0  ;;  %s804_s0 = inlined_call_operand.vmem [shape: bf16[168,128], index: 0, kind: input, shape index: {}]   ;;  %s805_s1 = inlined_call_operand.hbm [shape: bf16[128,128], index: 1, kind: input, shape index: {}]   ;;  %s806_s2 = inlined_call_operand.hbm [shape: f32[1,128], index: 2, kind: input, shape index: {}]   ;;  %s807_s3 = inlined_call_operand.vmem [shape: f32[168,128], index: 3, kind: output, shape index: {}]  }
   0x1   :  { %s16_s14 = sshll.u32 %s805_s1, 4  ;;  %s17_s14 = int_to_ptr.hbm [resolvable:$true] %s16_s14 }
   0x2   :  { %9 = vsyncpa [#allocation5], 0  ;;  %s655_s15 = smov [#allocation2]   ;;  %s30_s19 = sshll.u32 %s806_s2, 4  ;;  %s31_s19 = int_to_ptr.hbm [resolvable:$true] %s30_s19 }
   0x3   :  { %s18_s16 = sshll.u32 %s655_s15, 4  ;;  %s656_s20 = smov 64   ;;  %s19_s16 = int_to_ptr.vmem [resolvable:$true] %s18_s16 }
   0x4   :  { %s657_s21 = smov 4   ;;  %s658_s22 = smov [#allocation4]  }
   0x5   :  { %24 = dma.hbm_to_vmem [thread:$0]  %s17_s14, 1024, %s19_s16, [#allocation3], %s656_s20, %s656_s20, %s657_s21  }
   0x6   :  { %s32_s23 = sshll.u32 %s658_s22, 4  ;;  %s33_s23 = int_to_ptr.vmem [resolvable:$true] %s32_s23 }
   0x7   :  { %35 = dma.hbm_to_vmem [thread:$0]  %s31_s19, 16, %s33_s23, [#allocation5]  }
   0x8   :  { %651 = dma.done.wait [#allocation3], 1024  }
   0x9   :  { %652 = vsyncadd [#allocation3], 4294966272 }
   0xa   :  { %653 = dma.done.wait [#allocation5], 16  }
   0xb   :  { %654 = vsyncadd [#allocation5], 4294967280  ;;  %v572_v0 = vld [vmem:[#allocation2 + $0x38] sm:$0xff]  ;;  %v571_v1 = vld [vmem:[#allocation2 + $0x30] sm:$0xff] }
   0xc   :  { %573 = vmatpush.bf16.msra.mxu1 %v572_v0  ;;  %574 = vmatpush.bf16.msra.mxu2 %v572_v0  ;;  %v570_v2 = vld [vmem:[#allocation2 + $0x28] sm:$0xff]  ;;  %v569_v3 = vld [vmem:[#allocation2 + $0x20] sm:$0xff]  ;;  %v568_v4 = vld [vmem:[#allocation2 + $0x18] sm:$0xff] }
   0xd   :  { %575 = vmatpush.bf16.msra.mxu3 %v572_v0  ;;  %239 = vmatpush.bf16.msra.mxu0 %v572_v0  ;;  %v567_v5 = vld [vmem:[#allocation2 + $0x10] sm:$0xff]  ;;  %v566_v6 = vld [vmem:[#allocation2 + $0x8] sm:$0xff]  ;;  %v565_v7 = vld [vmem:[#allocation2] sm:$0xff] }
   0xe   :  { %v557_v8 = vld [vmem:[%s804_s0 + $0x10] sm:$0xff]  ;;  %v560_v9 = vld [vmem:[%s804_s0 + $0x28] sm:$0xff]  ;;  %v563_v10 = vld [vmem:[%s804_s0 + $0x40] sm:$0xff] }
   0xf   :  { %v555_v11 = vld [vmem:[%s804_s0] sm:$0xff]  ;;  %v558_v12 = vld [vmem:[%s804_s0 + $0x18] sm:$0xff]  ;;  %v561_v13 = vld [vmem:[%s804_s0 + $0x30] sm:$0xff] }
  0x10   :  { %576 = vmatpush.bf16.msra.mxu1 %v571_v1  ;;  %577 = vmatpush.bf16.msra.mxu2 %v571_v1  ;;  %v564_v14 = vld [vmem:[%s804_s0 + $0x48] sm:$0xff]  ;;  %v110_v16 = vld [vmem:[%s804_s0 + $0x50] sm:$0xf]  ;;  %v559_v18 = vld [vmem:[%s804_s0 + $0x20] sm:$0xff] }
  0x11   :  { %578 = vmatpush.bf16.msra.mxu3 %v571_v1  ;;  %240 = vmatpush.bf16.msra.mxu0 %v571_v1  ;;  %v556_v15 = vld [vmem:[%s804_s0 + $0x8] sm:$0xff]  ;;  %v168_v17 = vunpack.c.l.b16 %v110_v16  ;;  %v562_v19 = vld [vmem:[%s804_s0 + $0x38] sm:$0xff]  ;;  %v718_v21 = vld [vmem:[#allocation4] ss:$0 sm:$0xff] }
  0x13   :  { %v179_v20 = vpack.c.b16 %v168_v17, %v168_v17 }
  0x14   :  { %579 = vmatpush.bf16.msra.mxu1 %v570_v2  ;;  %580 = vmatpush.bf16.msra.mxu2 %v570_v2 }
  0x15   :  { %581 = vmatpush.bf16.msra.mxu3 %v570_v2  ;;  %241 = vmatpush.bf16.msra.mxu0 %v570_v2 }
  0x18   :  { %582 = vmatpush.bf16.msra.mxu1 %v569_v3  ;;  %583 = vmatpush.bf16.msra.mxu2 %v569_v3 }
  0x19   :  { %584 = vmatpush.bf16.msra.mxu3 %v569_v3  ;;  %242 = vmatpush.bf16.msra.mxu0 %v569_v3 }
  0x1c   :  { %585 = vmatpush.bf16.msra.mxu1 %v568_v4  ;;  %586 = vmatpush.bf16.msra.mxu2 %v568_v4 }
  0x1d   :  { %587 = vmatpush.bf16.msra.mxu3 %v568_v4  ;;  %243 = vmatpush.bf16.msra.mxu0 %v568_v4 }
  0x20   :  { %588 = vmatpush.bf16.msra.mxu1 %v567_v5  ;;  %589 = vmatpush.bf16.msra.mxu2 %v567_v5 }
  0x21   :  { %590 = vmatpush.bf16.msra.mxu3 %v567_v5  ;;  %244 = vmatpush.bf16.msra.mxu0 %v567_v5 }
  0x24   :  { %591 = vmatpush.bf16.msra.mxu1 %v566_v6  ;;  %592 = vmatpush.bf16.msra.mxu2 %v566_v6 }
  0x25   :  { %593 = vmatpush.bf16.msra.mxu3 %v566_v6  ;;  %245 = vmatpush.bf16.msra.mxu0 %v566_v6 }
  0x28   :  { %594 = vmatpush.bf16.msra.mxu1 %v565_v7  ;;  %595 = vmatpush.bf16.msra.mxu2 %v565_v7 }
  0x29   :  { %596 = vmatpush.bf16.msra.mxu3 %v565_v7  ;;  %246 = vmatpush.bf16.msra.mxu0 %v565_v7 }
  0x2b   :  { %257 = vmatmul.bf16.vlgmr.msra.gmra.mxu1 %v557_v8  ;;  %272 = vmatmul.bf16.vlgmr.msra.gmra.mxu2 %v560_v9 }
  0x2c   :  { %287 = vmatmul.bf16.vlgmr.msra.gmra.mxu3 %v563_v10  ;;  %247 = vmatmul.bf16.vlgmr.msra.gmra.mxu0 %v555_v11 }
  0x3b   :  { %262 = vmatmul.bf16.gmra.mxu1 %v558_v12  ;;  %277 = vmatmul.bf16.gmra.mxu2 %v561_v13 }
  0x3c   :  { %292 = vmatmul.bf16.gmra.mxu3 %v564_v14  ;;  %252 = vmatmul.bf16.gmra.mxu0 %v556_v15 }
  0x4b   :  { %267 = vmatmul.bf16.gmra.mxu1 %v559_v18  ;;  %282 = vmatmul.bf16.gmra.mxu2 %v562_v19 }
  0x4c   :  { %297 = vmatmul.bf16.gmra.mxu3 %v179_v20 }
  0xa8   :  { %v258_v22 = vpop.f32.mrf.mxu1 }
  0xa9   :  { %v248_v23 = vpop.f32.mrf.mxu0  ;;  %v376_v24 = vadd.f32 %v718_v21, %v258_v22 }
  0xaa   :  { %v372_v25 = vadd.f32 %v718_v21, %v248_v23 }
  0xab   :  { %vm397_vm0 = vcmp.ge.f32.partialorder %v376_v24, 0.0  ;;  %v418_v26 = vmul.f32 0.2, %v376_v24 }
  0xac   :  { %vm393_vm1 = vcmp.ge.f32.partialorder %v372_v25, 0.0  ;;  %v414_v28 = vmul.f32 0.2, %v372_v25 }
  0xad   :  { %v439_v29 = vsel %vm397_vm0, %v376_v24, %v418_v26 }
  0xae   :  { %v273_v27 = vpop.f32.mrf.mxu2  ;;  %460 = vst [vmem:[%s807_s3 + $0x20] sm:$0xff] %v439_v29  ;;  %v435_v32 = vsel %vm393_vm1, %v372_v25, %v414_v28 }
  0xaf   :  { %v288_v30 = vpop.f32.mrf.mxu3  ;;  %v382_v33 = vadd.f32 %v718_v21, %v273_v27  ;;  %456 = vst [vmem:[%s807_s3] sm:$0xff] %v435_v32 }
  0xb0   :  { %v260_v31 = vpop.f32.mrf.mxu1  ;;  %v388_v35 = vadd.f32 %v718_v21, %v288_v30 }
  0xb1   :  { %v250_v34 = vpop.f32.mrf.mxu0  ;;  %vm403_vm2 = vcmp.ge.f32.partialorder %v382_v33, 0.0  ;;  %v424_v36 = vmul.f32 0.2, %v382_v33  ;;  %v377_v37 = vadd.f32 %v718_v21, %v260_v31 }
  0xb2   :  { %vm409_vm3 = vcmp.ge.f32.partialorder %v388_v35, 0.0  ;;  %v430_v38 = vmul.f32 0.2, %v388_v35  ;;  %v373_v39 = vadd.f32 %v718_v21, %v250_v34 }
  0xb3   :  { %v445_v40 = vsel %vm403_vm2, %v382_v33, %v424_v36  ;;  %vm398_vm4 = vcmp.ge.f32.partialorder %v377_v37, 0.0  ;;  %v419_v41 = vmul.f32 0.2, %v377_v37 }
  0xb4   :  { %466 = vst [vmem:[%s807_s3 + $0x50] sm:$0xff] %v445_v40  ;;  %v451_v42 = vsel %vm409_vm3, %v388_v35, %v430_v38  ;;  %vm394_vm5 = vcmp.ge.f32.partialorder %v373_v39, 0.0  ;;  %v415_v44 = vmul.f32 0.2, %v373_v39 }
  0xb5   :  { %472 = vst [vmem:[%s807_s3 + $0x80] sm:$0xff] %v451_v42  ;;  %v440_v45 = vsel %vm398_vm4, %v377_v37, %v419_v41 }
  0xb6   :  { %v275_v43 = vpop.f32.mrf.mxu2  ;;  %461 = vst [vmem:[%s807_s3 + $0x28] sm:$0xff] %v440_v45  ;;  %v436_v48 = vsel %vm394_vm5, %v373_v39, %v415_v44 }
  0xb7   :  { %v290_v46 = vpop.f32.mrf.mxu3  ;;  %v383_v49 = vadd.f32 %v718_v21, %v275_v43  ;;  %457 = vst [vmem:[%s807_s3 + $0x8] sm:$0xff] %v436_v48 }
  0xb8   :  { %v263_v47 = vpop.f32.mrf.mxu1  ;;  %v389_v51 = vadd.f32 %v718_v21, %v290_v46 }
  0xb9   :  { %v253_v50 = vpop.f32.mrf.mxu0  ;;  %vm404_vm6 = vcmp.ge.f32.partialorder %v383_v49, 0.0  ;;  %v425_v52 = vmul.f32 0.2, %v383_v49  ;;  %v378_v53 = vadd.f32 %v718_v21, %v263_v47 }
  0xba   :  { %vm410_vm7 = vcmp.ge.f32.partialorder %v389_v51, 0.0  ;;  %v431_v54 = vmul.f32 0.2, %v389_v51  ;;  %v374_v55 = vadd.f32 %v718_v21, %v253_v50 }
  0xbb   :  { %v446_v56 = vsel %vm404_vm6, %v383_v49, %v425_v52  ;;  %vm399_vm8 = vcmp.ge.f32.partialorder %v378_v53, 0.0  ;;  %v420_v57 = vmul.f32 0.2, %v378_v53 }
  0xbc   :  { %467 = vst [vmem:[%s807_s3 + $0x58] sm:$0xff] %v446_v56  ;;  %v452_v58 = vsel %vm410_vm7, %v389_v51, %v431_v54  ;;  %vm395_vm9 = vcmp.ge.f32.partialorder %v374_v55, 0.0  ;;  %v416_v60 = vmul.f32 0.2, %v374_v55 }
  0xbd   :  { %473 = vst [vmem:[%s807_s3 + $0x88] sm:$0xff] %v452_v58  ;;  %v441_v61 = vsel %vm399_vm8, %v378_v53, %v420_v57 }
  0xbe   :  { %v278_v59 = vpop.f32.mrf.mxu2  ;;  %462 = vst [vmem:[%s807_s3 + $0x30] sm:$0xff] %v441_v61  ;;  %v437_v0 = vsel %vm395_vm9, %v374_v55, %v416_v60 }
  0xbf   :  { %v293_v62 = vpop.f32.mrf.mxu3  ;;  %v384_v1 = vadd.f32 %v718_v21, %v278_v59  ;;  %458 = vst [vmem:[%s807_s3 + $0x10] sm:$0xff] %v437_v0 }
  0xc0   :  { %v265_v63 = vpop.f32.mrf.mxu1  ;;  %v390_v3 = vadd.f32 %v718_v21, %v293_v62 }
  0xc1   :  { %v255_v2 = vpop.f32.mrf.mxu0  ;;  %vm405_vm10 = vcmp.ge.f32.partialorder %v384_v1, 0.0  ;;  %v426_v4 = vmul.f32 0.2, %v384_v1  ;;  %v379_v5 = vadd.f32 %v718_v21, %v265_v63 }
  0xc2   :  { %vm411_vm11 = vcmp.ge.f32.partialorder %v390_v3, 0.0  ;;  %v432_v6 = vmul.f32 0.2, %v390_v3  ;;  %v375_v7 = vadd.f32 %v718_v21, %v255_v2 }
  0xc3   :  { %v447_v8 = vsel %vm405_vm10, %v384_v1, %v426_v4  ;;  %vm400_vm12 = vcmp.ge.f32.partialorder %v379_v5, 0.0  ;;  %v421_v9 = vmul.f32 0.2, %v379_v5 }
  0xc4   :  { %468 = vst [vmem:[%s807_s3 + $0x60] sm:$0xff] %v447_v8  ;;  %v453_v10 = vsel %vm411_vm11, %v390_v3, %v432_v6  ;;  %vm396_vm13 = vcmp.ge.f32.partialorder %v375_v7, 0.0  ;;  %v417_v12 = vmul.f32 0.2, %v375_v7 }
  0xc5   :  { %474 = vst [vmem:[%s807_s3 + $0x90] sm:$0xff] %v453_v10  ;;  %v442_v13 = vsel %vm400_vm12, %v379_v5, %v421_v9 }
  0xc6   :  { %v280_v11 = vpop.f32.mrf.mxu2  ;;  %463 = vst [vmem:[%s807_s3 + $0x38] sm:$0xff] %v442_v13  ;;  %v438_v16 = vsel %vm396_vm13, %v375_v7, %v417_v12 }
  0xc7   :  { %v295_v14 = vpop.f32.mrf.mxu3  ;;  %v385_v17 = vadd.f32 %v718_v21, %v280_v11  ;;  %459 = vst [vmem:[%s807_s3 + $0x18] sm:$0xff] %v438_v16 }
  0xc8   :  { %v268_v15 = vpop.f32.mrf.mxu1  ;;  %v391_v18 = vadd.f32 %v718_v21, %v295_v14 }
  0xc9   :  { %vm406_vm14 = vcmp.ge.f32.partialorder %v385_v17, 0.0  ;;  %v427_v19 = vmul.f32 0.2, %v385_v17  ;;  %v380_v20 = vadd.f32 %v718_v21, %v268_v15 }
  0xca   :  { %vm412_vm15 = vcmp.ge.f32.partialorder %v391_v18, 0.0  ;;  %v433_v22 = vmul.f32 0.2, %v391_v18 }
  0xcb   :  { %v448_v23 = vsel %vm406_vm14, %v385_v17, %v427_v19  ;;  %vm401_vm0 = vcmp.ge.f32.partialorder %v380_v20, 0.0  ;;  %v422_v24 = vmul.f32 0.2, %v380_v20 }
  0xcc   :  { %469 = vst [vmem:[%s807_s3 + $0x68] sm:$0xff] %v448_v23  ;;  %v454_v25 = vsel %vm412_vm15, %v391_v18, %v433_v22 }
  0xcd   :  { %475 = vst [vmem:[%s807_s3 + $0x98] sm:$0xff] %v454_v25  ;;  %v443_v27 = vsel %vm401_vm0, %v380_v20, %v422_v24 }
  0xce   :  { %v283_v26 = vpop.f32.mrf.mxu2  ;;  %464 = vst [vmem:[%s807_s3 + $0x40] sm:$0xff] %v443_v27 }
  0xcf   :  { %v298_v28 = vpop.f32.mrf.mxu3  ;;  %v386_v30 = vadd.f32 %v718_v21, %v283_v26 }
  0xd0   :  { %v270_v29 = vpop.f32.mrf.mxu1  ;;  %v392_v31 = vadd.f32 %v718_v21, %v298_v28 }
  0xd1   :  { %vm407_vm1 = vcmp.ge.f32.partialorder %v386_v30, 0.0  ;;  %v428_v32 = vmul.f32 0.2, %v386_v30  ;;  %v381_v33 = vadd.f32 %v718_v21, %v270_v29 }
  0xd2   :  { %vm413_vm2 = vcmp.ge.f32.partialorder %v392_v31, 0.0  ;;  %v434_v34 = vmul.f32 0.2, %v392_v31 }
  0xd3   :  { %v449_v35 = vsel %vm407_vm1, %v386_v30, %v428_v32  ;;  %vm402_vm3 = vcmp.ge.f32.partialorder %v381_v33, 0.0  ;;  %v423_v36 = vmul.f32 0.2, %v381_v33 }
  0xd4   :  { %470 = vst [vmem:[%s807_s3 + $0x70] sm:$0xff] %v449_v35  ;;  %v455_v37 = vsel %vm413_vm2, %v392_v31, %v434_v34 }
  0xd5   :  { %476 = vst [vmem:[%s807_s3 + $0xa0] sm:$0xff] %v455_v37  ;;  %v444_v39 = vsel %vm402_vm3, %v381_v33, %v423_v36 }
  0xd6   :  { %v285_v38 = vpop.f32.mrf.mxu2  ;;  %465 = vst [vmem:[%s807_s3 + $0x48] sm:$0xff] %v444_v39 }
  0xd7   :  { %v300_v40 = vpop.f32.mrf.mxu3  ;;  %v387_v41 = vadd.f32 %v718_v21, %v285_v38 }
  0xd9   :  { %vm408_vm4 = vcmp.ge.f32.partialorder %v387_v41, 0.0  ;;  %v429_v42 = vmul.f32 0.2, %v387_v41 }
  0xdb   :  { %v450_v43 = vsel %vm408_vm4, %v387_v41, %v429_v42 }
  0xdc   :  { %471 = vst [vmem:[%s807_s3 + $0x78] sm:$0xff] %v450_v43 }
  0xdd   :  { %481 = vsyncpa [#allocation3], 1 }
  0xde   :  { %482 = vsyncpa [#allocation5], 1 }

// kernel: _lambda_.14
= control target key start
LH: loop header
LB: loop body
LE: loop exit
PB: predicated region body
PF: predicated region fallthrough
CT: control target
= control target key end

     0   :  { %s196_s1 = inlined_call_operand.vmem [shape: f32[1,128], index: 1, kind: input, shape index: {}]   ;;  %s197_s2 = inlined_call_operand.vmem [shape: f32[1,128], index: 2, kind: input, shape index: {}]   ;;  %s198_s4 = inlined_call_operand.vmem [shape: f32[1,128], index: 4, kind: input, shape index: {}]   ;;  %s199_s0 = inlined_call_operand.vmem [shape: f32[56,128], index: 0, kind: input, shape index: {}]   ;;  %s200_s3 = inlined_call_operand.vmem [shape: f32[1,128], index: 3, kind: input, shape index: {}]   ;;  %s201_s5 = inlined_call_operand.vmem [shape: f32[56,128], index: 5, kind: output, shape index: {}]  }
   0x1   :  { %v20_v0 = vld [vmem:[%s196_s1] sm:$0x1]  ;;  %v40_v16 = vld [vmem:[%s199_s0 + $0x8] sm:$0xff]  ;;  %v41_v17 = vld [vmem:[%s199_s0 + $0x10] sm:$0xff] }
   0x2   :  { %v22_v1 = vld [vmem:[%s197_s2] sm:$0x1]  ;;  %v21_v2 = vmul.f32 0.02, %v20_v0  ;;  %v42_v18 = vld [vmem:[%s199_s0 + $0x18] sm:$0xff]  ;;  %v44_v20 = vld [vmem:[%s199_s0 + $0x28] sm:$0xff] }
   0x3   :  { %v23_v3 = vmul.f32 0.02, %v22_v1  ;;  %v37_v13 = vld [vmem:[%s200_s3] sm:$0x1]  ;;  %v45_v21 = vld [vmem:[%s199_s0 + $0x30] sm:$0xff] }
   0x4   :  { %v24_v4 = vmul.f32 %v21_v2, %v21_v2  ;;  %v47_v12 = vperm.slane %v21_v2, 0  ;;  %v39_v14 = vld [vmem:[%s199_s0] sm:$0xff] }
   0x5   :  { %v43_v19 = vld [vmem:[%s199_s0 + $0x20] sm:$0xff] }
   0x6   :  { %v25_v5 = vsub.f32 %v23_v3, %v24_v4  ;;  %v49_v23 = vsub.f32 %v39_v14, %v47_v12  ;;  %v50_v25 = vsub.f32 %v40_v16, %v47_v12  ;;  %v51_v26 = vsub.f32 %v41_v17, %v47_v12  ;;  %v109_v32 = vld [vmem:[%s198_s4] ss:$0 sm:$0xff] }
   0x7   :  { %v52_v27 = vsub.f32 %v42_v18, %v47_v12  ;;  %v53_v28 = vsub.f32 %v43_v19, %v47_v12  ;;  %v54_v29 = vsub.f32 %v44_v20, %v47_v12  ;;  %v55_v30 = vsub.f32 %v45_v21, %v47_v12 }
   0x8   :  { %v26_v6 = vadd.f32 1e-05, %v25_v5 }
   0xa   :  { %110 = vrsqrt.f32 %v26_v6  ;;  %vm33_vm0 = vweird.f32 %v26_v6 }
  0x10   :  { %v111_v7 = vpop.eup %110 }
  0x11   :  { %v28_v8 = vmul.f32 %v111_v7, %v26_v6  ;;  %vm34_vm1 = vweird.f32 %v111_v7 }
  0x12   :  { %vm35_vm2 = vmor %vm33_vm0, %vm34_vm1 }
  0x13   :  { %v29_v9 = vmul.f32 %v111_v7, %v28_v8 }
  0x15   :  { %v30_v10 = vmul.f32 0.5, %v29_v9 }
  0x17   :  { %v31_v11 = vsub.f32 1.5, %v30_v10 }
  0x19   :  { %v32_v15 = vmul.f32 %v111_v7, %v31_v11 }
  0x1b   :  { %v36_v22 = vsel %vm35_vm2, %v111_v7, %v32_v15 }
  0x1c   :  { %v38_v24 = vmul.f32 %v37_v13, %v36_v22 }
  0x1e   :  { %v57_v31 = vperm.slane %v38_v24, 0 }
  0x20   :  { %v59_v33 = vmul.f32 %v57_v31, %v49_v23  ;;  %v60_v34 = vmul.f32 %v57_v31, %v50_v25  ;;  %v61_v35 = vmul.f32 %v57_v31, %v51_v26  ;;  %v62_v36 = vmul.f32 %v57_v31, %v52_v27 }
  0x21   :  { %v63_v37 = vmul.f32 %v57_v31, %v53_v28  ;;  %v64_v38 = vmul.f32 %v57_v31, %v54_v29  ;;  %v65_v39 = vmul.f32 %v57_v31, %v55_v30 }
  0x22   :  { %v70_v40 = vadd.f32 %v109_v32, %v59_v33  ;;  %v71_v41 = vadd.f32 %v109_v32, %v60_v34  ;;  %v72_v42 = vadd.f32 %v109_v32, %v61_v35  ;;  %v73_v43 = vadd.f32 %v109_v32, %v62_v36 }
  0x23   :  { %v74_v44 = vadd.f32 %v109_v32, %v63_v37  ;;  %v75_v45 = vadd.f32 %v109_v32, %v64_v38  ;;  %v76_v46 = vadd.f32 %v109_v32, %v65_v39 }
  0x24   :  { %vm77_vm3 = vcmp.ge.f32.partialorder %v70_v40, 0.0  ;;  %v84_v47 = vmul.f32 0.2, %v70_v40  ;;  %vm78_vm4 = vcmp.ge.f32.partialorder %v71_v41, 0.0  ;;  %v85_v48 = vmul.f32 0.2, %v71_v41 }
  0x25   :  { %vm79_vm5 = vcmp.ge.f32.partialorder %v72_v42, 0.0  ;;  %v86_v49 = vmul.f32 0.2, %v72_v42  ;;  %vm80_vm6 = vcmp.ge.f32.partialorder %v73_v43, 0.0  ;;  %v87_v50 = vmul.f32 0.2, %v73_v43 }
  0x26   :  { %v91_v51 = vsel %vm77_vm3, %v70_v40, %v84_v47  ;;  %v92_v52 = vsel %vm78_vm4, %v71_v41, %v85_v48  ;;  %vm81_vm7 = vcmp.ge.f32.partialorder %v74_v44, 0.0  ;;  %v88_v53 = vmul.f32 0.2, %v74_v44 }
  0x27   :  { %98 = vst [vmem:[%s201_s5] sm:$0xff] %v91_v51  ;;  %v93_v54 = vsel %vm79_vm5, %v72_v42, %v86_v49  ;;  %v94_v55 = vsel %vm80_vm6, %v73_v43, %v87_v50  ;;  %vm82_vm8 = vcmp.ge.f32.partialorder %v75_v45, 0.0  ;;  %v89_v56 = vmul.f32 0.2, %v75_v45 }
  0x28   :  { %99 = vst [vmem:[%s201_s5 + $0x8] sm:$0xff] %v92_v52  ;;  %v95_v57 = vsel %vm81_vm7, %v74_v44, %v88_v53  ;;  %vm83_vm9 = vcmp.ge.f32.partialorder %v76_v46, 0.0  ;;  %v90_v58 = vmul.f32 0.2, %v76_v46 }
  0x29   :  { %100 = vst [vmem:[%s201_s5 + $0x10] sm:$0xff] %v93_v54  ;;  %v96_v59 = vsel %vm82_vm8, %v75_v45, %v89_v56 }
  0x2a   :  { %101 = vst [vmem:[%s201_s5 + $0x18] sm:$0xff] %v94_v55  ;;  %v97_v60 = vsel %vm83_vm9, %v76_v46, %v90_v58 }
  0x2b   :  { %102 = vst [vmem:[%s201_s5 + $0x20] sm:$0xff] %v95_v57 }
  0x2c   :  { %103 = vst [vmem:[%s201_s5 + $0x28] sm:$0xff] %v96_v59 }
  0x2d   :  { %104 = vst [vmem:[%s201_s5 + $0x30] sm:$0xff] %v97_v60 }

// kernel: _lambda_.12
= control target key start
LH: loop header
LB: loop body
LE: loop exit
PB: predicated region body
PF: predicated region fallthrough
CT: control target
= control target key end

     0   :  { %s1268_s12 = smov 0   ;;  %s1270_s13 = smov 0   ;;  %s1505_s0 = inlined_call_operand.vmem [shape: bf16[56,1024], index: 0, kind: input, shape index: {}]   ;;  %s1506_s1 = inlined_call_operand.vmem [shape: bf16[1024,128], index: 1, kind: input, shape index: {}]   ;;  %s1507_s2 = inlined_call_operand.vmem [shape: f32[1,128], index: 2, kind: input, shape index: {}]   ;;  %s1508_s3 = inlined_call_operand.vmem [shape: f32[56,128], index: 3, kind: output, shape index: {}]  }
   0x1   :  { %s1272_s14 = smov 0   ;;  %s1274_s15 = smov 0  }
   0x2   :  { %s1276_s16 = smov 0  }
   0x3 LB: > { %s25_s17 = sadd.s32 1, %s1241_s15  ;;  %p48_p1 = scmp.ne.s32.totalorder %s1233_s13, %s1229_s12  ;;  %s1245_s16 = sphi %s1276_s16, %s13_s16   ;;  %s1241_s15 = sphi %s1274_s15, %s1512_s15   ;;  %s1237_s14 = sphi %s1272_s14, %s1511_s14   ;;  %s1233_s13 = sphi %s1270_s13, %s1510_s13   ;;  %s1229_s12 = sphi %s1268_s12, %s1509_s12  }
   0x4   : > { %p26_p0 = scmp.ge.s32.totalorder %s25_s17, 2  ;;  %p49_p2 = scmp.eq.s32.totalorder %s1245_s16, 0 }
   0x5   : > { %s41_s19 = sadd.s32 1, %s1233_s13  ;;  %p930_p5 = scmp.ge.s32.totalorder %s1245_s16, 2 }
   0x6   : > { %s1514_s17 = smov (%p26_p0, %s25_s17), 0  ;;  %p50_p3 = por %p49_p2, %p48_p1 }
   0x7   : > { %s37_s18 = ssub.s32 %s1241_s15, %s1514_s17  ;;  %162 = sbr.rel (%p930_p5) target bundleno = 30 (0x1e), region = 20 }
   0x8   : > { %p39_p4 = scmp.eq.s32.totalorder %s37_s18, 0 }
   0xa   : > { %s1303_s20 = scalar_select %p39_p4, %s1233_s13, %s41_s19  }
   0xc   : > { %165 = sbr.rel (!%p50_p3) target bundleno = 30 (0x1e), region = 24  ;;  %s167_s21 = sand.u32 (%p50_p3), 1, %s1233_s13  }
   0xd   : > { %s1118_s22 = sshll.u32 (%p50_p3), %s1241_s15, 4  ;;  %s1163_s23 = smul.u32 (%p50_p3), 112, %s167_s21 }
   0xe   : > { %s175_s26 = scalar_lea.vmem (%p50_p3), %s1505_s0, %s1118_s22 }
   0xf   : > { %v188_v0 = vld [vmem:[%s175_s26] sm:$0xff] (%p50_p3)  ;;  %v190_v1 = vld [vmem:[%s175_s26 + $0x8] sm:$0xff] (%p50_p3)  ;;  %s169_s27 = scalar_lea.vmem (%p50_p3), [#allocation2], %s1163_s23 }
  0x10   : > { %v192_v2 = vld [vmem:[%s175_s26 + $0x20] sm:$0xff] (%p50_p3)  ;;  %189 = vst [vmem:[%s169_s27] sm:$0xff] (%p50_p3), %v188_v0  ;;  %v194_v3 = vld [vmem:[%s175_s26 + $0x28] sm:$0xff] (%p50_p3) }
  0x11   : > { %191 = vst [vmem:[%s169_s27 + $0x8] sm:$0xff] %v190_v1  ;;  %v196_v4 = vld [vmem:[%s175_s26 + $0x40] sm:$0xff]  ;;  %v198_v5 = vld [vmem:[%s175_s26 + $0x48] sm:$0xff] }
  0x12   : > { %193 = vst [vmem:[%s169_s27 + $0x10] sm:$0xff] %v192_v2  ;;  %v200_v6 = vld [vmem:[%s175_s26 + $0x60] sm:$0xff]  ;;  %v202_v7 = vld [vmem:[%s175_s26 + $0x68] sm:$0xff] }
  0x13   : > { %195 = vst [vmem:[%s169_s27 + $0x18] sm:$0xff] %v194_v3  ;;  %v204_v8 = vld [vmem:[%s175_s26 + $0x80] sm:$0xff]  ;;  %v206_v9 = vld [vmem:[%s175_s26 + $0x88] sm:$0xff] }
  0x14   : > { %197 = vst [vmem:[%s169_s27 + $0x20] sm:$0xff] %v196_v4  ;;  %v208_v10 = vld [vmem:[%s175_s26 + $0xa0] sm:$0xff]  ;;  %v210_v11 = vld [vmem:[%s175_s26 + $0xa8] sm:$0xff] }
  0x15   : > { %199 = vst [vmem:[%s169_s27 + $0x28] sm:$0xff] %v198_v5  ;;  %v212_v12 = vld [vmem:[%s175_s26 + $0xc0] sm:$0xff]  ;;  %v214_v13 = vld [vmem:[%s175_s26 + $0xc8] sm:$0xff] }
  0x16   : > { %201 = vst [vmem:[%s169_s27 + $0x30] sm:$0xff] %v200_v6 }
  0x17   : > { %203 = vst [vmem:[%s169_s27 + $0x38] sm:$0xff] %v202_v7 }
  0x18   : > { %205 = vst [vmem:[%s169_s27 + $0x40] sm:$0xff] %v204_v8 }
  0x19   : > { %207 = vst [vmem:[%s169_s27 + $0x48] sm:$0xff] %v206_v9 }
  0x1a   : > { %209 = vst [vmem:[%s169_s27 + $0x50] sm:$0xff] %v208_v10 }
  0x1b   : > { %211 = vst [vmem:[%s169_s27 + $0x58] sm:$0xff] %v210_v11 }
  0x1c   : > { %213 = vst [vmem:[%s169_s27 + $0x60] sm:$0xff] %v212_v12 }
  0x1d   : > { %215 = vst [vmem:[%s169_s27 + $0x68] sm:$0xff] %v214_v13 }
  0x1e PF: > { %p933_p6 = scmp.ge.s32.totalorder %s1245_s16, 1  ;;  %p232_p7 = scmp.lt.s32.totalorder %s1245_s16, 3 }
  0x20   : > { %p233_p8 = pnand %p933_p6, %p232_p7 }
  0x21   : > { %s239_s28 = sand.u32 (!%p233_p8), 1, %s1229_s12   ;;  %s934_s29 = sshll.u32 (!%p233_p8), %s1237_s14, 6 }
  0x22   : > { %236 = sbr.rel (%p233_p8) target bundleno = 286 (0x11e), region = 51  ;;  %p279_p9 = scmp.lt.s32.totalorder (!%p233_p8), %s934_s29, 127 }
  0x23   : > { %s1164_s30 = smul.u32 (!%p233_p8), 112, %s239_s28  ;;  %p936_p10 = scmp.ne.s32.totalorder (!%p233_p8), %s1237_s14, 0 }
  0x25   : > { %s1320_s8 = scalar_lea.vmem (!%p233_p8), [#allocation2], %s1164_s30 }
  0x27   : > { %s1516_s29 = smov (!%p279_p9, %s934_s29), 127  ;;  %302 = sbr.rel (%p936_p10) target bundleno = 52 (0x34), region = 59 }
  0x28   : > { %s935_s4 = sshll.u32 %s1516_s29, 2 }
  0x29   : > { %s1318_s7 = scalar_lea.vmem %s1506_s1, %s935_s4 }
  0x2c   : > { %v1247_v14 = vmov 0.0  }
  0x2d   : > { %303 = vst [vmem:[%s1508_s3] sm:$0xff] %v1247_v14 }
  0x2e   : > { %304 = vst [vmem:[%s1508_s3 + $0x8] sm:$0xff] %v1247_v14 }
  0x2f   : > { %305 = vst [vmem:[%s1508_s3 + $0x10] sm:$0xff] %v1247_v14 }
  0x30   : > { %306 = vst [vmem:[%s1508_s3 + $0x18] sm:$0xff] %v1247_v14 }
  0x31   : > { %307 = vst [vmem:[%s1508_s3 + $0x20] sm:$0xff] %v1247_v14 }
  0x32   : > { %308 = vst [vmem:[%s1508_s3 + $0x28] sm:$0xff] %v1247_v14 }
  0x33   : > { %309 = vst [vmem:[%s1508_s3 + $0x30] sm:$0xff] %v1247_v14 }
  0x34 PF: > { %v1138_v15 = vld [vmem:[%s1318_s7 + $0x38] sm:$0xff]  ;;  %v1137_v19 = vld [vmem:[%s1318_s7 + $0x30] sm:$0xff]  ;;  %v1136_v23 = vld [vmem:[%s1318_s7 + $0x28] sm:$0xff]  ;;  %p1113_p11 = scmp.ne.s32.totalorder %s1237_s14, 1 }
  0x35   : > { %v1146_v16 = vld [vmem:[%s1318_s7 + $0x78] sm:$0xff]  ;;  %661 = vmatpush.bf16.msra.mxu0 %v1138_v15  ;;  %v1145_v20 = vld [vmem:[%s1318_s7 + $0x70] sm:$0xff]  ;;  %v1144_v24 = vld [vmem:[%s1318_s7 + $0x68] sm:$0xff] }
  0x36   : > { %v1154_v17 = vld [vmem:[%s1318_s7 + $0xb8] sm:$0xff]  ;;  %689 = vmatpush.bf16.msra.mxu1 %v1146_v16  ;;  %v1153_v21 = vld [vmem:[%s1318_s7 + $0xb0] sm:$0xff]  ;;  %v1152_v25 = vld [vmem:[%s1318_s7 + $0xa8] sm:$0xff] }
  0x37   : > { %v1162_v18 = vld [vmem:[%s1318_s7 + $0xf8] sm:$0xff]  ;;  %717 = vmatpush.bf16.msra.mxu2 %v1154_v17  ;;  %v1161_v22 = vld [vmem:[%s1318_s7 + $0xf0] sm:$0xff]  ;;  %v1160_v26 = vld [vmem:[%s1318_s7 + $0xe8] sm:$0xff] }
  0x38   : > { %745 = vmatpush.bf16.msra.mxu3 %v1162_v18  ;;  %v1135_v27 = vld [vmem:[%s1318_s7 + $0x20] sm:$0xff]  ;;  %v1134_v31 = vld [vmem:[%s1318_s7 + $0x18] sm:$0xff]  ;;  %v1133_v35 = vld [vmem:[%s1318_s7 + $0x10] sm:$0xff] }
  0x39   : > { %662 = vmatpush.bf16.msra.mxu0 %v1137_v19  ;;  %v1143_v28 = vld [vmem:[%s1318_s7 + $0x60] sm:$0xff]  ;;  %v1142_v32 = vld [vmem:[%s1318_s7 + $0x58] sm:$0xff]  ;;  %v1141_v36 = vld [vmem:[%s1318_s7 + $0x50] sm:$0xff] }
  0x3a   : > { %690 = vmatpush.bf16.msra.mxu1 %v1145_v20  ;;  %v1151_v29 = vld [vmem:[%s1318_s7 + $0xa0] sm:$0xff]  ;;  %v1150_v33 = vld [vmem:[%s1318_s7 + $0x98] sm:$0xff]  ;;  %v1149_v37 = vld [vmem:[%s1318_s7 + $0x90] sm:$0xff] }
  0x3b   : > { %718 = vmatpush.bf16.msra.mxu2 %v1153_v21  ;;  %v1159_v30 = vld [vmem:[%s1318_s7 + $0xe0] sm:$0xff]  ;;  %v1158_v34 = vld [vmem:[%s1318_s7 + $0xd8] sm:$0xff]  ;;  %v1157_v38 = vld [vmem:[%s1318_s7 + $0xd0] sm:$0xff] }
  0x3c   : > { %746 = vmatpush.bf16.msra.mxu3 %v1161_v22  ;;  %v1132_v39 = vld [vmem:[%s1318_s7 + $0x8] sm:$0xff]  ;;  %v1131_v43 = vld [vmem:[%s1318_s7] sm:$0xff] }
  0x3d   : > { %663 = vmatpush.bf16.msra.mxu0 %v1136_v23  ;;  %v1140_v40 = vld [vmem:[%s1318_s7 + $0x48] sm:$0xff]  ;;  %v1139_v44 = vld [vmem:[%s1318_s7 + $0x40] sm:$0xff] }
  0x3e   : > { %691 = vmatpush.bf16.msra.mxu1 %v1144_v24  ;;  %v1148_v41 = vld [vmem:[%s1318_s7 + $0x88] sm:$0xff]  ;;  %v1147_v45 = vld [vmem:[%s1318_s7 + $0x80] sm:$0xff] }
  0x3f   : > { %719 = vmatpush.bf16.msra.mxu2 %v1152_v25  ;;  %v1156_v42 = vld [vmem:[%s1318_s7 + $0xc8] sm:$0xff]  ;;  %v1155_v46 = vld [vmem:[%s1318_s7 + $0xc0] sm:$0xff] }
  0x40   : > { %747 = vmatpush.bf16.msra.mxu3 %v1160_v26  ;;  %v939_v47 = vld [vmem:[%s1320_s8] sm:$0xf]  ;;  %v1121_v48 = vld [vmem:[%s1320_s8 + $0xc] sm:$0xf0]  ;;  %v1119_v49 = vld [vmem:[%s1320_s8 + $0x4] sm:$0xf] }
  0x41   : > { %664 = vmatpush.bf16.msra.mxu0 %v1135_v27  ;;  %v941_v50 = vld [vmem:[%s1320_s8 + $0x10] sm:$0xf0]  ;;  %v947_v51 = vld [vmem:[%s1320_s8 + $0x8] sm:$0xf]  ;;  %v1122_v52 = vld [vmem:[%s1320_s8 + $0x14] sm:$0xf0]  ;;  %v940_v55 = vor.u32 %v1121_v48, %v939_v47 }
  0x42   : > { %692 = vmatpush.bf16.msra.mxu1 %v1143_v28  ;;  %v1120_v53 = vld [vmem:[%s1320_s8 + $0xc] sm:$0xf]  ;;  %v949_v54 = vld [vmem:[%s1320_s8 + $0x18] sm:$0xf0]  ;;  %v944_v56 = vor.u32 %v1119_v49, %v941_v50  ;;  %v948_v57 = vor.u32 %v1122_v52, %v947_v51  ;;  %v955_v59 = vld [vmem:[%s1320_s8 + $0x20] sm:$0xf] }
  0x43   : > { %720 = vmatpush.bf16.msra.mxu2 %v1151_v29  ;;  %v952_v58 = vor.u32 %v1120_v53, %v949_v54  ;;  %v1125_v60 = vld [vmem:[%s1320_s8 + $0x2c] sm:$0xf0]  ;;  %v1123_v61 = vld [vmem:[%s1320_s8 + $0x24] sm:$0xf]  ;;  %v957_v62 = vld [vmem:[%s1320_s8 + $0x30] sm:$0xf0] }
  0x44   : > { %748 = vmatpush.bf16.msra.mxu3 %v1159_v30  ;;  %v963_v63 = vld [vmem:[%s1320_s8 + $0x28] sm:$0xf]  ;;  %v1126_v0 = vld [vmem:[%s1320_s8 + $0x34] sm:$0xf0]  ;;  %v1124_v1 = vld [vmem:[%s1320_s8 + $0x2c] sm:$0xf]  ;;  %v956_v3 = vor.u32 %v1125_v60, %v955_v59  ;;  %v960_v4 = vor.u32 %v1123_v61, %v957_v62 }
  0x45   : > { %665 = vmatpush.bf16.msra.mxu0 %v1134_v31  ;;  %v965_v2 = vld [vmem:[%s1320_s8 + $0x38] sm:$0xf0]  ;;  %v964_v5 = vor.u32 %v1126_v0, %v963_v63  ;;  %v971_v7 = vld [vmem:[%s1320_s8 + $0x40] sm:$0xf]  ;;  %v1129_v8 = vld [vmem:[%s1320_s8 + $0x4c] sm:$0xf0] }
  0x46   : > { %693 = vmatpush.bf16.msra.mxu1 %v1142_v32  ;;  %v968_v6 = vor.u32 %v1124_v1, %v965_v2  ;;  %v1127_v9 = vld [vmem:[%s1320_s8 + $0x44] sm:$0xf]  ;;  %v973_v10 = vld [vmem:[%s1320_s8 + $0x50] sm:$0xf0]  ;;  %v979_v11 = vld [vmem:[%s1320_s8 + $0x48] sm:$0xf]  ;;  %v972_v15 = vor.u32 %v1129_v8, %v971_v7 }
  0x47   : > { %721 = vmatpush.bf16.msra.mxu2 %v1150_v33  ;;  %v1130_v12 = vld [vmem:[%s1320_s8 + $0x54] sm:$0xf0]  ;;  %v1128_v13 = vld [vmem:[%s1320_s8 + $0x4c] sm:$0xf]  ;;  %v981_v14 = vld [vmem:[%s1320_s8 + $0x58] sm:$0xf0]  ;;  %v976_v16 = vor.u32 %v1127_v9, %v973_v10 }
  0x48   : > { %749 = vmatpush.bf16.msra.mxu3 %v1158_v34  ;;  %v980_v17 = vor.u32 %v1130_v12, %v979_v11  ;;  %v984_v18 = vor.u32 %v1128_v13, %v981_v14  ;;  %v329_v19 = vld [vmem:[%s1320_s8 + $0x60] sm:$0xff]  ;;  %v330_v20 = vld [vmem:[%s1320_s8 + $0x68] sm:$0xff] }
  0x49   : > { %666 = vmatpush.bf16.msra.mxu0 %v1133_v35  ;;  %v433_v21 = vunpack.c.l.b16 %v329_v19  ;;  %v434_v22 = vunpack.c.h.b16 %v329_v19  ;;  %v435_v23 = vunpack.c.l.b16 %v330_v20  ;;  %v436_v24 = vunpack.c.h.b16 %v330_v20  ;;  %v313_v0 = vld [vmem:[%s1508_s3 + $0x18] sm:$0xff]  ;;  %v314_v9 = vld [vmem:[%s1508_s3 + $0x20] sm:$0xff] }
  0x4a   : > { %694 = vmatpush.bf16.msra.mxu1 %v1141_v36 }
  0x4b   : > { %722 = vmatpush.bf16.msra.mxu2 %v1149_v37  ;;  %v449_v25 = vpack.c.b16 %v433_v21, %v433_v21  ;;  %v450_v26 = vpack.c.b16 %v434_v22, %v434_v22  ;;  %v451_v27 = vpack.c.b16 %v435_v23, %v435_v23  ;;  %v452_v28 = vpack.c.b16 %v436_v24, %v436_v24  ;;  %v310_v37 = vld [vmem:[%s1508_s3] sm:$0xff] }
  0x4c   : > { %750 = vmatpush.bf16.msra.mxu3 %v1157_v38 }
  0x4d   : > { %667 = vmatpush.bf16.msra.mxu0 %v1132_v39 }
  0x4e   : > { %695 = vmatpush.bf16.msra.mxu1 %v1140_v40 }
  0x4f   : > { %723 = vmatpush.bf16.msra.mxu2 %v1148_v41 }
  0x50   : > { %751 = vmatpush.bf16.msra.mxu3 %v1156_v42 }
  0x51   : > { %668 = vmatpush.bf16.msra.mxu0 %v1131_v43 }
  0x52   : > { %696 = vmatpush.bf16.msra.mxu1 %v1139_v44 }
  0x53   : > { %724 = vmatpush.bf16.msra.mxu2 %v1147_v45 }
  0x54   : > { %752 = vmatpush.bf16.msra.mxu3 %v1155_v46  ;;  %669 = vmatmul.bf16.vlgmr.msra.gmra.mxu0 %v940_v55  ;;  %v311_v46 = vld [vmem:[%s1508_s3 + $0x8] sm:$0xff]  ;;  %v312_v55 = vld [vmem:[%s1508_s3 + $0x10] sm:$0xff] }
  0x55   : > { %697 = vmatmul.bf16.vlgmr.msra.gmra.mxu1 %v944_v56 }
  0x56   : > { %725 = vmatmul.bf16.vlgmr.msra.gmra.mxu2 %v948_v57 }
  0x57   : > { %753 = vmatmul.bf16.vlgmr.msra.gmra.mxu3 %v952_v58 }
  0x64   : > { %674 = vmatmul.bf16.gmra.mxu0 %v956_v3 }
  0x65   : > { %702 = vmatmul.bf16.gmra.mxu1 %v960_v4 }
  0x66   : > { %730 = vmatmul.bf16.gmra.mxu2 %v964_v5 }
  0x67   : > { %758 = vmatmul.bf16.gmra.mxu3 %v968_v6 }
  0x74   : > { %679 = vmatmul.bf16.gmra.mxu0 %v972_v15 }
  0x75   : > { %707 = vmatmul.bf16.gmra.mxu1 %v976_v16 }
  0x76   : > { %735 = vmatmul.bf16.gmra.mxu2 %v980_v17 }
  0x77   : > { %763 = vmatmul.bf16.gmra.mxu3 %v984_v18  ;;  %v315_v18 = vld [vmem:[%s1508_s3 + $0x28] sm:$0xff] }
  0x84   : > { %684 = vmatmul.bf16.gmra.mxu0 %v449_v25 }
  0x85   : > { %712 = vmatmul.bf16.gmra.mxu1 %v450_v26 }
  0x86   : > { %740 = vmatmul.bf16.gmra.mxu2 %v451_v27  ;;  %v316_v27 = vld [vmem:[%s1508_s3 + $0x30] sm:$0xff] }
  0x87   : > { %768 = vmatmul.bf16.gmra.mxu3 %v452_v28 }
  0xd1   : > { %v670_v29 = vpop.f32.mrf.mxu0 }
  0xd2   : > { %v698_v30 = vpop.f32.mrf.mxu1 }
  0xd3   : > { %v699_v31 = vadd.f32 %v698_v30, %v670_v29 }
  0xd9   : > { %v726_v32 = vpop.f32.mrf.mxu2  ;;  %v672_v35 = vpop.f32.mrf.mxu0 }
  0xda   : > { %v754_v33 = vpop.f32.mrf.mxu3  ;;  %v727_v34 = vadd.f32 %v726_v32, %v699_v31  ;;  %v700_v36 = vpop.f32.mrf.mxu1 }
  0xdb   : > { %v701_v40 = vadd.f32 %v700_v36, %v672_v35 }
  0xdc   : > { %v755_v38 = vadd.f32 %v754_v33, %v727_v34 }
  0xde   : > { %v773_v39 = vadd.f32 %v755_v38, %v310_v37 }
  0xe0   : > { %780 = vst [vmem:[%s1508_s3] sm:$0xff] %v773_v39 }
  0xe1   : > { %v728_v41 = vpop.f32.mrf.mxu2  ;;  %v675_v44 = vpop.f32.mrf.mxu0 }
  0xe2   : > { %v756_v42 = vpop.f32.mrf.mxu3  ;;  %v729_v43 = vadd.f32 %v728_v41, %v701_v40  ;;  %v703_v45 = vpop.f32.mrf.mxu1 }
  0xe3   : > { %v704_v49 = vadd.f32 %v703_v45, %v675_v44 }
  0xe4   : > { %v757_v47 = vadd.f32 %v756_v42, %v729_v43 }
  0xe6   : > { %v774_v48 = vadd.f32 %v757_v47, %v311_v46 }
  0xe8   : > { %781 = vst [vmem:[%s1508_s3 + $0x8] sm:$0xff] %v774_v48 }
  0xe9   : > { %v731_v50 = vpop.f32.mrf.mxu2  ;;  %v677_v53 = vpop.f32.mrf.mxu0 }
  0xea   : > { %v759_v51 = vpop.f32.mrf.mxu3  ;;  %v732_v52 = vadd.f32 %v731_v50, %v704_v49  ;;  %v705_v54 = vpop.f32.mrf.mxu1 }
  0xeb   : > { %v706_v58 = vadd.f32 %v705_v54, %v677_v53 }
  0xec   : > { %v760_v56 = vadd.f32 %v759_v51, %v732_v52 }
  0xee   : > { %v775_v57 = vadd.f32 %v760_v56, %v312_v55 }
  0xf0   : > { %782 = vst [vmem:[%s1508_s3 + $0x10] sm:$0xff] %v775_v57 }
  0xf1   : > { %v733_v59 = vpop.f32.mrf.mxu2  ;;  %v680_v62 = vpop.f32.mrf.mxu0 }
  0xf2   : > { %v761_v60 = vpop.f32.mrf.mxu3  ;;  %v734_v61 = vadd.f32 %v733_v59, %v706_v58  ;;  %v708_v63 = vpop.f32.mrf.mxu1 }
  0xf3   : > { %v709_v3 = vadd.f32 %v708_v63, %v680_v62 }
  0xf4   : > { %v762_v1 = vadd.f32 %v761_v60, %v734_v61 }
  0xf6   : > { %v776_v2 = vadd.f32 %v762_v1, %v313_v0 }
  0xf8   : > { %783 = vst [vmem:[%s1508_s3 + $0x18] sm:$0xff] %v776_v2 }
  0xf9   : > { %v736_v4 = vpop.f32.mrf.mxu2  ;;  %v682_v7 = vpop.f32.mrf.mxu0 }
  0xfa   : > { %v764_v5 = vpop.f32.mrf.mxu3  ;;  %v737_v6 = vadd.f32 %v736_v4, %v709_v3  ;;  %v710_v8 = vpop.f32.mrf.mxu1 }
  0xfb   : > { %v711_v12 = vadd.f32 %v710_v8, %v682_v7 }
  0xfc   : > { %v765_v10 = vadd.f32 %v764_v5, %v737_v6 }
  0xfe   : > { %v777_v11 = vadd.f32 %v765_v10, %v314_v9 }
 0x100   : > { %784 = vst [vmem:[%s1508_s3 + $0x20] sm:$0xff] %v777_v11 }
 0x101   : > { %v738_v13 = vpop.f32.mrf.mxu2  ;;  %v685_v16 = vpop.f32.mrf.mxu0 }
 0x102   : > { %v766_v14 = vpop.f32.mrf.mxu3  ;;  %v739_v15 = vadd.f32 %v738_v13, %v711_v12  ;;  %v713_v17 = vpop.f32.mrf.mxu1 }
 0x103   : > { %v714_v21 = vadd.f32 %v713_v17, %v685_v16 }
 0x104   : > { %v767_v19 = vadd.f32 %v766_v14, %v739_v15 }
 0x106   : > { %v778_v20 = vadd.f32 %v767_v19, %v315_v18 }
 0x108   : > { %785 = vst [vmem:[%s1508_s3 + $0x28] sm:$0xff] %v778_v20 }
 0x109   : > { %v741_v22 = vpop.f32.mrf.mxu2  ;;  %v687_v25 = vpop.f32.mrf.mxu0 }
 0x10a   : > { %v769_v23 = vpop.f32.mrf.mxu3  ;;  %v742_v24 = vadd.f32 %v741_v22, %v714_v21  ;;  %v715_v26 = vpop.f32.mrf.mxu1 }
 0x10c   : > { %v770_v28 = vadd.f32 %v769_v23, %v742_v24 }
 0x10e   : > { %v779_v29 = vadd.f32 %v770_v28, %v316_v27  ;;  %790 = sbr.rel (%p1113_p11) target bundleno = 286 (0x11e), region = 63 }
 0x110   : > { %786 = vst [vmem:[%s1508_s3 + $0x30] sm:$0xff] %v779_v29 }
 0x111   : > { %v743_v30 = vpop.f32.mrf.mxu2 }
 0x112   : > { %v771_v31 = vpop.f32.mrf.mxu3 }
 0x113   : > { %v791_v32 = vld [vmem:[%s1508_s3] sm:$0xff]  ;;  %v792_v34 = vld [vmem:[%s1508_s3 + $0x8] sm:$0xff]  ;;  %v793_v35 = vld [vmem:[%s1508_s3 + $0x10] sm:$0xff] }
 0x114   : > { %v1206_v33 = vld [vmem:[%s1507_s2] ss:$0 sm:$0xff]  ;;  %v794_v36 = vld [vmem:[%s1508_s3 + $0x18] sm:$0xff]  ;;  %v796_v41 = vld [vmem:[%s1508_s3 + $0x28] sm:$0xff] }
 0x115   : > { %v802_v37 = vadd.f32 %v1206_v33, %v791_v32  ;;  %v803_v38 = vadd.f32 %v1206_v33, %v792_v34  ;;  %v804_v39 = vadd.f32 %v1206_v33, %v793_v35  ;;  %v795_v40 = vld [vmem:[%s1508_s3 + $0x20] sm:$0xff]  ;;  %v805_v42 = vadd.f32 %v1206_v33, %v794_v36 }
 0x116   : > { %v806_v44 = vadd.f32 %v1206_v33, %v795_v40  ;;  %v807_v45 = vadd.f32 %v1206_v33, %v796_v41 }
 0x117   : > { %v797_v43 = vld [vmem:[%s1508_s3 + $0x30] sm:$0xff]  ;;  %809 = vst [vmem:[%s1508_s3] sm:$0xff] %v802_v37 }
 0x118   : > { %810 = vst [vmem:[%s1508_s3 + $0x8] sm:$0xff] %v803_v38  ;;  %v808_v46 = vadd.f32 %v1206_v33, %v797_v43 }
 0x119   : > { %811 = vst [vmem:[%s1508_s3 + $0x10] sm:$0xff] %v804_v39 }
 0x11a   : > { %812 = vst [vmem:[%s1508_s3 + $0x18] sm:$0xff] %v805_v42 }
 0x11b   : > { %813 = vst [vmem:[%s1508_s3 + $0x20] sm:$0xff] %v806_v44 }
 0x11c   : > { %814 = vst [vmem:[%s1508_s3 + $0x28] sm:$0xff] %v807_v45 }
 0x11d   : > { %815 = vst [vmem:[%s1508_s3 + $0x30] sm:$0xff] %v808_v46 }
 0x11e PF: > { %s13_s16 = sadd.s32 1, %s1245_s16   ;;  %s1509_s12 = smov %s1233_s13 }
 0x11f   : > { %p10_p12 = scmp.ge.s32.totalorder %s13_s16, 4   ;;  %s1510_s13 = smov %s1303_s20 }
 0x120   : > { %s1511_s14 = smov %s1241_s15  ;;  %s1512_s15 = smov %s1514_s17 }
 0x121   :  { %12 = sbr.rel (!%p10_p12) target bundleno = 3 (0x3), region = 104 }

// kernel: _lambda_.13
= control target key start
LH: loop header
LB: loop body
LE: loop exit
PB: predicated region body
PF: predicated region fallthrough
CT: control target
= control target key end

     0   :  { %v69_v0 = vmov 0.0   ;;  %s124_s1 = inlined_call_operand.vmem [shape: f32[1,128], index: 1, kind: output, shape index: {0}]   ;;  %s125_s2 = inlined_call_operand.vmem [shape: f32[1,128], index: 2, kind: output, shape index: {1}]   ;;  %s126_s0 = inlined_call_operand.vmem [shape: f32[56,128], index: 0, kind: input, shape index: {}]  }
   0x1   :  { %14 = vst [vmem:[%s124_s1] sm:$0x1] %v69_v0  ;;  %v16_v1 = vld [vmem:[%s126_s0] sm:$0xff]  ;;  %v17_v2 = vld [vmem:[%s126_s0 + $0x8] sm:$0xff]  ;;  %v18_v3 = vld [vmem:[%s126_s0 + $0x10] sm:$0xff] }
   0x2   :  { %15 = vst [vmem:[%s125_s2] sm:$0x1] %v69_v0  ;;  %v19_v4 = vld [vmem:[%s126_s0 + $0x18] sm:$0xff]  ;;  %v24_v5 = vadd.f32 %v17_v2, %v16_v1  ;;  %v39_v6 = vmul.f32 %v16_v1, %v16_v1  ;;  %v40_v7 = vmul.f32 %v17_v2, %v17_v2  ;;  %v41_v8 = vmul.f32 %v18_v3, %v18_v3  ;;  %v20_v9 = vld [vmem:[%s126_s0 + $0x20] sm:$0xff]  ;;  %v21_v13 = vld [vmem:[%s126_s0 + $0x28] sm:$0xff] }
   0x3   :  { %v42_v11 = vmul.f32 %v19_v4, %v19_v4  ;;  %v43_v15 = vmul.f32 %v20_v9, %v20_v9  ;;  %v22_v17 = vld [vmem:[%s126_s0 + $0x30] sm:$0xff]  ;;  %v44_v19 = vmul.f32 %v21_v13, %v21_v13 }
   0x4   :  { %v25_v10 = vadd.f32 %v24_v5, %v18_v3  ;;  %v46_v12 = vadd.f32 %v40_v7, %v39_v6  ;;  %v45_v22 = vmul.f32 %v22_v17, %v22_v17 }
   0x6   :  { %v26_v14 = vadd.f32 %v25_v10, %v19_v4  ;;  %v47_v16 = vadd.f32 %v46_v12, %v41_v8 }
   0x8   :  { %v27_v18 = vadd.f32 %v26_v14, %v20_v9  ;;  %v48_v20 = vadd.f32 %v47_v16, %v42_v11  ;;  %v23_v36 = vld [vmem:[%s124_s1] sm:$0x1] }
   0x9   :  { %v38_v39 = vld [vmem:[%s125_s2] sm:$0x1] }
   0xa   :  { %v28_v21 = vadd.f32 %v27_v18, %v21_v13  ;;  %v49_v23 = vadd.f32 %v48_v20, %v43_v15 }
   0xc   :  { %v29_v24 = vadd.f32 %v28_v21, %v22_v17  ;;  %v50_v25 = vadd.f32 %v49_v23, %v44_v19 }
   0xe   :  { %v30_v26 = vrot.slane %v29_v24, 4  ;;  %v51_v27 = vadd.f32 %v50_v25, %v45_v22 }
  0x10   :  { %v31_v28 = vadd.f32 %v30_v26, %v29_v24  ;;  %v52_v29 = vrot.slane %v51_v27, 4 }
  0x12   :  { %v32_v30 = vrot.slane %v31_v28, 2  ;;  %v53_v31 = vadd.f32 %v52_v29, %v51_v27 }
  0x14   :  { %v33_v32 = vadd.f32 %v32_v30, %v31_v28  ;;  %v54_v33 = vrot.slane %v53_v31, 2 }
  0x16   :  { %v34_v34 = vrot.slane %v33_v32, 1  ;;  %v55_v35 = vadd.f32 %v54_v33, %v53_v31 }
  0x18   :  { %v35_v37 = vadd.f32 %v34_v34, %v33_v32  ;;  %v56_v38 = vrot.slane %v55_v35, 1 }
  0x1a   :  { %v36_v40 = vadd.f32 %v35_v37, %v23_v36  ;;  %v57_v41 = vadd.f32 %v56_v38, %v55_v35 }
  0x1c   :  { %37 = vst [vmem:[%s124_s1] sm:$0x1] %v36_v40  ;;  %v58_v42 = vadd.f32 %v57_v41, %v38_v39 }
  0x1e   :  { %59 = vst [vmem:[%s125_s2] sm:$0x1] %v58_v42 }

// kernel: _lambda_.15
= control target key start
LH: loop header
LB: loop body
LE: loop exit
PB: predicated region body
PF: predicated region fallthrough
CT: control target
= control target key end

     0   :  { %s1510_s12 = smov 0   ;;  %s1512_s13 = smov 0   ;;  %s1840_s0 = inlined_call_operand.vmem [shape: bf16[24,2048], index: 0, kind: input, shape index: {}]   ;;  %s1841_s1 = inlined_call_operand.vmem [shape: bf16[2048,256], index: 1, kind: input, shape index: {}]   ;;  %s1842_s2 = inlined_call_operand.vmem [shape: f32[1,256], index: 2, kind: input, shape index: {}]   ;;  %s1843_s3 = inlined_call_operand.vmem [shape: f32[24,256], index: 3, kind: output, shape index: {}]  }
   0x1   :  { %s1514_s14 = smov 0   ;;  %s1516_s15 = smov 0  }
   0x2   :  { %s1518_s16 = smov 0  }
   0x3 LB: > { %s25_s17 = sadd.s32 1, %s1483_s15  ;;  %p48_p1 = scmp.ne.s32.totalorder %s1475_s13, %s1471_s12  ;;  %s1487_s16 = sphi %s1518_s16, %s13_s16   ;;  %s1483_s15 = sphi %s1516_s15, %s1847_s15   ;;  %s1479_s14 = sphi %s1514_s14, %s1846_s14   ;;  %s1475_s13 = sphi %s1512_s13, %s1845_s13   ;;  %s1471_s12 = sphi %s1510_s12, %s1844_s12  }
   0x4   : > { %p26_p0 = scmp.ge.s32.totalorder %s25_s17, 4  ;;  %p49_p2 = scmp.eq.s32.totalorder %s1487_s16, 0 }
   0x5   : > { %s41_s19 = sadd.s32 1, %s1475_s13  ;;  %p1051_p5 = scmp.ge.s32.totalorder %s1487_s16, 4 }
   0x6   : > { %s1849_s17 = smov (%p26_p0, %s25_s17), 0  ;;  %p50_p3 = por %p49_p2, %p48_p1 }
   0x7   : > { %s37_s18 = ssub.s32 %s1483_s15, %s1849_s17  ;;  %164 = sbr.rel (%p1051_p5) target bundleno = 22 (0x16), region = 20 }
   0x8   : > { %p39_p4 = scmp.eq.s32.totalorder %s37_s18, 0 }
   0xa   : > { %s1545_s20 = scalar_select %p39_p4, %s1475_s13, %s41_s19  }
   0xc   : > { %167 = sbr.rel (!%p50_p3) target bundleno = 22 (0x16), region = 24  ;;  %s169_s21 = sand.u32 (%p50_p3), 1, %s1475_s13  }
   0xd   : > { %s1336_s22 = sshll.u32 (%p50_p3), %s1483_s15, 4  ;;  %s1406_s23 = smul.u32 (%p50_p3), 48, %s169_s21 }
   0xe   : > { %s177_s26 = scalar_lea.vmem (%p50_p3), %s1840_s0, %s1336_s22 }
   0xf   : > { %v190_v0 = vld [vmem:[%s177_s26] sm:$0xff] (%p50_p3)  ;;  %v192_v1 = vld [vmem:[%s177_s26 + $0x8] sm:$0xff] (%p50_p3)  ;;  %s171_s27 = scalar_lea.vmem (%p50_p3), [#allocation2], %s1406_s23 }
  0x10   : > { %v194_v2 = vld [vmem:[%s177_s26 + $0x40] sm:$0xff] (%p50_p3)  ;;  %191 = vst [vmem:[%s171_s27] sm:$0xff] (%p50_p3), %v190_v0  ;;  %v196_v3 = vld [vmem:[%s177_s26 + $0x48] sm:$0xff] (%p50_p3) }
  0x11   : > { %193 = vst [vmem:[%s171_s27 + $0x8] sm:$0xff] %v192_v1  ;;  %v198_v4 = vld [vmem:[%s177_s26 + $0x80] sm:$0xff]  ;;  %v200_v5 = vld [vmem:[%s177_s26 + $0x88] sm:$0xff] }
  0x12   : > { %195 = vst [vmem:[%s171_s27 + $0x10] sm:$0xff] %v194_v2 }
  0x13   : > { %197 = vst [vmem:[%s171_s27 + $0x18] sm:$0xff] %v196_v3 }
  0x14   : > { %199 = vst [vmem:[%s171_s27 + $0x20] sm:$0xff] %v198_v4 }
  0x15   : > { %201 = vst [vmem:[%s171_s27 + $0x28] sm:$0xff] %v200_v5 }
  0x16 PF: > { %p1054_p6 = scmp.ge.s32.totalorder %s1487_s16, 1  ;;  %p221_p7 = scmp.lt.s32.totalorder %s1487_s16, 5 }
  0x18   : > { %p222_p8 = pnand %p1054_p6, %p221_p7 }
  0x19   : > { %s228_s28 = sand.u32 (!%p222_p8), 1, %s1471_s12   ;;  %s1055_s29 = sshll.u32 (!%p222_p8), %s1479_s14, 6 }
  0x1a   : > { %225 = sbr.rel (%p222_p8) target bundleno = 280 (0x118), region = 51  ;;  %p274_p9 = scmp.lt.s32.totalorder (!%p222_p8), %s1055_s29, 255 }
  0x1b   : > { %s1407_s30 = smul.u32 (!%p222_p8), 48, %s228_s28  ;;  %p1058_p10 = scmp.ne.s32.totalorder (!%p222_p8), %s1479_s14, 0 }
  0x1d   : > { %s1562_s8 = scalar_lea.vmem (!%p222_p8), [#allocation2], %s1407_s30 }
  0x1f   : > { %s1851_s29 = smov (!%p274_p9, %s1055_s29), 255  ;;  %304 = sbr.rel (%p1058_p10) target bundleno = 43 (0x2b), region = 59 }
  0x20   : > { %s1337_s4 = sshll.u32 %s1851_s29, 3 }
  0x21   : > { %s1560_s7 = scalar_lea.vmem %s1841_s1, %s1337_s4 }
  0x24   : > { %v1489_v6 = vmov 0.0  }
  0x25   : > { %305 = vst [vmem:[%s1843_s3] sm:$0xff] %v1489_v6 }
  0x26   : > { %306 = vst [vmem:[%s1843_s3 + $0x8] sm:$0xff] %v1489_v6 }
  0x27   : > { %307 = vst [vmem:[%s1843_s3 + $0x10] sm:$0xff] %v1489_v6 }
  0x28   : > { %308 = vst [vmem:[%s1843_s3 + $0x18] sm:$0xff] %v1489_v6 }
  0x29   : > { %309 = vst [vmem:[%s1843_s3 + $0x20] sm:$0xff] %v1489_v6 }
  0x2a   : > { %310 = vst [vmem:[%s1843_s3 + $0x28] sm:$0xff] %v1489_v6 }
  0x2b PF: > { %v1133_v7 = vld [vmem:[%s1560_s7 + $0x70] sm:$0xf]  ;;  %v1357_v8 = vld [vmem:[%s1560_s7 + $0x74] sm:$0xf0]  ;;  %v1125_v18 = vld [vmem:[%s1560_s7 + $0x60] sm:$0xf] }
  0x2c   : > { %v1197_v9 = vld [vmem:[%s1560_s7 + $0xf0] sm:$0xf]  ;;  %v1134_v10 = vor.u32 %v1357_v8, %v1133_v7  ;;  %v1373_v11 = vld [vmem:[%s1560_s7 + $0xf4] sm:$0xf0]  ;;  %v1355_v20 = vld [vmem:[%s1560_s7 + $0x64] sm:$0xf0] }
  0x2d   : > { %v1261_v12 = vld [vmem:[%s1560_s7 + $0x170] sm:$0xf]  ;;  %v1389_v13 = vld [vmem:[%s1560_s7 + $0x174] sm:$0xf0]  ;;  %v1198_v14 = vor.u32 %v1373_v11, %v1197_v9  ;;  %v1189_v21 = vld [vmem:[%s1560_s7 + $0xe0] sm:$0xf]  ;;  %v1126_v23 = vor.u32 %v1355_v20, %v1125_v18 }
  0x2e   : > { %v1262_v15 = vor.u32 %v1389_v13, %v1261_v12  ;;  %v1325_v16 = vld [vmem:[%s1560_s7 + $0x1f0] sm:$0xf]  ;;  %v1405_v17 = vld [vmem:[%s1560_s7 + $0x1f4] sm:$0xf0]  ;;  %741 = vmatpush.bf16.msra.mxu0 %v1134_v10  ;;  %v1371_v22 = vld [vmem:[%s1560_s7 + $0xe4] sm:$0xf0] }
  0x2f   : > { %v1326_v19 = vor.u32 %v1405_v17, %v1325_v16  ;;  %759 = vmatpush.bf16.msra.mxu1 %v1198_v14  ;;  %v1190_v24 = vor.u32 %v1371_v22, %v1189_v21  ;;  %v1253_v25 = vld [vmem:[%s1560_s7 + $0x160] sm:$0xf]  ;;  %v1387_v26 = vld [vmem:[%s1560_s7 + $0x164] sm:$0xf0]  ;;  %v1117_v30 = vld [vmem:[%s1560_s7 + $0x50] sm:$0xf] }
  0x30   : > { %777 = vmatpush.bf16.msra.mxu2 %v1262_v15  ;;  %v1317_v27 = vld [vmem:[%s1560_s7 + $0x1e0] sm:$0xf]  ;;  %v1254_v28 = vor.u32 %v1387_v26, %v1253_v25  ;;  %v1403_v29 = vld [vmem:[%s1560_s7 + $0x1e4] sm:$0xf0]  ;;  %v1353_v31 = vld [vmem:[%s1560_s7 + $0x54] sm:$0xf0] }
  0x31   : > { %795 = vmatpush.bf16.msra.mxu3 %v1326_v19  ;;  %v1318_v32 = vor.u32 %v1403_v29, %v1317_v27  ;;  %v1181_v33 = vld [vmem:[%s1560_s7 + $0xd0] sm:$0xf]  ;;  %v1369_v34 = vld [vmem:[%s1560_s7 + $0xd4] sm:$0xf0]  ;;  %v1118_v36 = vor.u32 %v1353_v31, %v1117_v30  ;;  %v1109_v42 = vld [vmem:[%s1560_s7 + $0x40] sm:$0xf] }
  0x32   : > { %v1245_v35 = vld [vmem:[%s1560_s7 + $0x150] sm:$0xf]  ;;  %742 = vmatpush.bf16.msra.mxu0 %v1126_v23  ;;  %v1385_v37 = vld [vmem:[%s1560_s7 + $0x154] sm:$0xf0]  ;;  %v1182_v40 = vor.u32 %v1369_v34, %v1181_v33  ;;  %v1351_v43 = vld [vmem:[%s1560_s7 + $0x44] sm:$0xf0] }
  0x33   : > { %v1309_v38 = vld [vmem:[%s1560_s7 + $0x1d0] sm:$0xf]  ;;  %v1401_v39 = vld [vmem:[%s1560_s7 + $0x1d4] sm:$0xf0]  ;;  %760 = vmatpush.bf16.msra.mxu1 %v1190_v24  ;;  %v1246_v41 = vor.u32 %v1385_v37, %v1245_v35  ;;  %v1173_v44 = vld [vmem:[%s1560_s7 + $0xc0] sm:$0xf]  ;;  %v1110_v51 = vor.u32 %v1351_v43, %v1109_v42 }
  0x34   : > { %778 = vmatpush.bf16.msra.mxu2 %v1254_v28  ;;  %v1310_v45 = vor.u32 %v1401_v39, %v1309_v38  ;;  %v1367_v46 = vld [vmem:[%s1560_s7 + $0xc4] sm:$0xf0]  ;;  %v1237_v47 = vld [vmem:[%s1560_s7 + $0x140] sm:$0xf]  ;;  %v1101_v54 = vld [vmem:[%s1560_s7 + $0x30] sm:$0xf] }
  0x35   : > { %796 = vmatpush.bf16.msra.mxu3 %v1318_v32  ;;  %v1383_v48 = vld [vmem:[%s1560_s7 + $0x144] sm:$0xf0]  ;;  %v1301_v49 = vld [vmem:[%s1560_s7 + $0x1c0] sm:$0xf]  ;;  %v1174_v52 = vor.u32 %v1367_v46, %v1173_v44  ;;  %v1349_v55 = vld [vmem:[%s1560_s7 + $0x34] sm:$0xf0] }
  0x36   : > { %v1399_v50 = vld [vmem:[%s1560_s7 + $0x1c4] sm:$0xf0]  ;;  %743 = vmatpush.bf16.msra.mxu0 %v1118_v36  ;;  %v1238_v53 = vor.u32 %v1383_v48, %v1237_v47  ;;  %v1165_v56 = vld [vmem:[%s1560_s7 + $0xb0] sm:$0xf]  ;;  %v1365_v58 = vld [vmem:[%s1560_s7 + $0xb4] sm:$0xf0]  ;;  %v1102_v63 = vor.u32 %v1349_v55, %v1101_v54 }
  0x37   : > { %761 = vmatpush.bf16.msra.mxu1 %v1182_v40  ;;  %v1302_v57 = vor.u32 %v1399_v50, %v1301_v49  ;;  %v1229_v59 = vld [vmem:[%s1560_s7 + $0x130] sm:$0xf]  ;;  %v1381_v60 = vld [vmem:[%s1560_s7 + $0x134] sm:$0xf0]  ;;  %v1166_v0 = vor.u32 %v1365_v58, %v1165_v56  ;;  %v1093_v2 = vld [vmem:[%s1560_s7 + $0x20] sm:$0xf] }
  0x38   : > { %779 = vmatpush.bf16.msra.mxu2 %v1246_v41  ;;  %v1293_v61 = vld [vmem:[%s1560_s7 + $0x1b0] sm:$0xf]  ;;  %v1397_v62 = vld [vmem:[%s1560_s7 + $0x1b4] sm:$0xf0]  ;;  %v1230_v1 = vor.u32 %v1381_v60, %v1229_v59  ;;  %v1347_v3 = vld [vmem:[%s1560_s7 + $0x24] sm:$0xf0] }
  0x39   : > { %797 = vmatpush.bf16.msra.mxu3 %v1310_v45  ;;  %v1157_v4 = vld [vmem:[%s1560_s7 + $0xa0] sm:$0xf]  ;;  %v1294_v5 = vor.u32 %v1397_v62, %v1293_v61  ;;  %v1363_v6 = vld [vmem:[%s1560_s7 + $0xa4] sm:$0xf0]  ;;  %v1094_v11 = vor.u32 %v1347_v3, %v1093_v2  ;;  %v1085_v14 = vld [vmem:[%s1560_s7 + $0x10] sm:$0xf] }
  0x3a   : > { %744 = vmatpush.bf16.msra.mxu0 %v1110_v51  ;;  %v1221_v7 = vld [vmem:[%s1560_s7 + $0x120] sm:$0xf]  ;;  %v1379_v8 = vld [vmem:[%s1560_s7 + $0x124] sm:$0xf0]  ;;  %v1158_v12 = vor.u32 %v1363_v6, %v1157_v4  ;;  %v1345_v15 = vld [vmem:[%s1560_s7 + $0x14] sm:$0xf0] }
  0x3b   : > { %762 = vmatpush.bf16.msra.mxu1 %v1174_v52  ;;  %v1285_v9 = vld [vmem:[%s1560_s7 + $0x1a0] sm:$0xf]  ;;  %v1395_v10 = vld [vmem:[%s1560_s7 + $0x1a4] sm:$0xf0]  ;;  %v1222_v13 = vor.u32 %v1379_v8, %v1221_v7  ;;  %v1149_v16 = vld [vmem:[%s1560_s7 + $0x90] sm:$0xf]  ;;  %v1086_v24 = vor.u32 %v1345_v15, %v1085_v14 }
  0x3c   : > { %780 = vmatpush.bf16.msra.mxu2 %v1238_v53  ;;  %v1286_v17 = vor.u32 %v1395_v10, %v1285_v9  ;;  %v1361_v18 = vld [vmem:[%s1560_s7 + $0x94] sm:$0xf0]  ;;  %v1213_v19 = vld [vmem:[%s1560_s7 + $0x110] sm:$0xf]  ;;  %v1077_v23 = vld [vmem:[%s1560_s7] sm:$0xf] }
  0x3d   : > { %798 = vmatpush.bf16.msra.mxu3 %v1302_v57  ;;  %v1377_v20 = vld [vmem:[%s1560_s7 + $0x114] sm:$0xf0]  ;;  %v1277_v21 = vld [vmem:[%s1560_s7 + $0x190] sm:$0xf]  ;;  %v1343_v25 = vld [vmem:[%s1560_s7 + $0x4] sm:$0xf0]  ;;  %v1150_v28 = vor.u32 %v1361_v18, %v1149_v16 }
  0x3e   : > { %745 = vmatpush.bf16.msra.mxu0 %v1102_v63  ;;  %v1393_v22 = vld [vmem:[%s1560_s7 + $0x194] sm:$0xf0]  ;;  %v1141_v26 = vld [vmem:[%s1560_s7 + $0x80] sm:$0xf]  ;;  %v1359_v27 = vld [vmem:[%s1560_s7 + $0x84] sm:$0xf0]  ;;  %v1214_v29 = vor.u32 %v1377_v20, %v1213_v19  ;;  %v1078_v41 = vor.u32 %v1343_v25, %v1077_v23 }
  0x3f   : > { %763 = vmatpush.bf16.msra.mxu1 %v1166_v0  ;;  %v1205_v30 = vld [vmem:[%s1560_s7 + $0x100] sm:$0xf]  ;;  %v1375_v31 = vld [vmem:[%s1560_s7 + $0x104] sm:$0xf0]  ;;  %v1278_v33 = vor.u32 %v1393_v22, %v1277_v21  ;;  %v1338_v37 = vld [vmem:[%s1562_s8 + $0x4] sm:$0xf]  ;;  %v1142_v45 = vor.u32 %v1359_v27, %v1141_v26 }
  0x40   : > { %781 = vmatpush.bf16.msra.mxu2 %v1230_v1  ;;  %v1269_v32 = vld [vmem:[%s1560_s7 + $0x180] sm:$0xf]  ;;  %v1391_v34 = vld [vmem:[%s1560_s7 + $0x184] sm:$0xf0]  ;;  %v1063_v38 = vld [vmem:[%s1562_s8 + $0x10] sm:$0xf0]  ;;  %v1206_v46 = vor.u32 %v1375_v31, %v1205_v30 }
  0x41   : > { %799 = vmatpush.bf16.msra.mxu3 %v1294_v5  ;;  %v1061_v35 = vld [vmem:[%s1562_s8] sm:$0xf]  ;;  %v1340_v36 = vld [vmem:[%s1562_s8 + $0xc] sm:$0xf0]  ;;  %v1388_v39 = vld [vmem:[%s1560_s7 + $0x174] sm:$0xf]  ;;  %v1270_v50 = vor.u32 %v1391_v34, %v1269_v32  ;;  %v1667_v60 = vor.u32 %v1338_v37, %v1063_v38 }
  0x42   : > { %746 = vmatpush.bf16.msra.mxu0 %v1094_v11  ;;  %v1263_v40 = vld [vmem:[%s1560_s7 + $0x178] sm:$0xf0]  ;;  %v1069_v42 = vld [vmem:[%s1562_s8 + $0x8] sm:$0xf]  ;;  %v1404_v43 = vld [vmem:[%s1560_s7 + $0x1f4] sm:$0xf]  ;;  %v1662_v55 = vor.u32 %v1340_v36, %v1061_v35 }
  0x43   : > { %764 = vmatpush.bf16.msra.mxu1 %v1158_v12  ;;  %v1327_v44 = vld [vmem:[%s1560_s7 + $0x1f8] sm:$0xf0]  ;;  %v1341_v47 = vld [vmem:[%s1562_s8 + $0x14] sm:$0xf0]  ;;  %v1266_v51 = vor.u32 %v1388_v39, %v1263_v40  ;;  %v1356_v52 = vld [vmem:[%s1560_s7 + $0x74] sm:$0xf] }
  0x44   : > { %782 = vmatpush.bf16.msra.mxu2 %v1222_v13  ;;  %v1339_v48 = vld [vmem:[%s1562_s8 + $0xc] sm:$0xf]  ;;  %v1071_v49 = vld [vmem:[%s1562_s8 + $0x18] sm:$0xf0]  ;;  %v1372_v54 = vld [vmem:[%s1560_s7 + $0xf4] sm:$0xf]  ;;  %v1330_v56 = vor.u32 %v1404_v43, %v1327_v44  ;;  %v1669_v61 = vor.u32 %v1341_v47, %v1069_v42 }
  0x45   : > { %800 = vmatpush.bf16.msra.mxu3 %v1286_v17  ;;  %v1135_v53 = vld [vmem:[%s1560_s7 + $0x78] sm:$0xf0]  ;;  %v1386_v58 = vld [vmem:[%s1560_s7 + $0x164] sm:$0xf]  ;;  %v1255_v59 = vld [vmem:[%s1560_s7 + $0x168] sm:$0xf0]  ;;  %v1673_v0 = vor.u32 %v1339_v48, %v1071_v49 }
  0x46   : > { %747 = vmatpush.bf16.msra.mxu0 %v1086_v24  ;;  %v1199_v57 = vld [vmem:[%s1560_s7 + $0xf8] sm:$0xf0]  ;;  %v1402_v62 = vld [vmem:[%s1560_s7 + $0x1e4] sm:$0xf]  ;;  %v1319_v63 = vld [vmem:[%s1560_s7 + $0x1e8] sm:$0xf0]  ;;  %v1138_v1 = vor.u32 %v1356_v52, %v1135_v53  ;;  %v1258_v3 = vor.u32 %v1386_v58, %v1255_v59 }
  0x47   : > { %765 = vmatpush.bf16.msra.mxu1 %v1150_v28  ;;  %v1202_v2 = vor.u32 %v1372_v54, %v1199_v57  ;;  %v1354_v4 = vld [vmem:[%s1560_s7 + $0x64] sm:$0xf]  ;;  %v1127_v5 = vld [vmem:[%s1560_s7 + $0x68] sm:$0xf0]  ;;  %v1322_v7 = vor.u32 %v1402_v62, %v1319_v63  ;;  %v1384_v9 = vld [vmem:[%s1560_s7 + $0x154] sm:$0xf] }
  0x48   : > { %783 = vmatpush.bf16.msra.mxu2 %v1214_v29  ;;  %v1370_v6 = vld [vmem:[%s1560_s7 + $0xe4] sm:$0xf]  ;;  %v1191_v8 = vld [vmem:[%s1560_s7 + $0xe8] sm:$0xf0]  ;;  %v1247_v10 = vld [vmem:[%s1560_s7 + $0x158] sm:$0xf0]  ;;  %v1130_v13 = vor.u32 %v1354_v4, %v1127_v5 }
  0x49   : > { %801 = vmatpush.bf16.msra.mxu3 %v1278_v33  ;;  %v1400_v11 = vld [vmem:[%s1560_s7 + $0x1d4] sm:$0xf]  ;;  %v1311_v12 = vld [vmem:[%s1560_s7 + $0x1d8] sm:$0xf0]  ;;  %v1194_v14 = vor.u32 %v1370_v6, %v1191_v8  ;;  %v1250_v15 = vor.u32 %v1384_v9, %v1247_v10  ;;  %v1382_v21 = vld [vmem:[%s1560_s7 + $0x144] sm:$0xf] }
  0x4a   : > { %748 = vmatpush.bf16.msra.mxu0 %v1078_v41  ;;  %v1352_v16 = vld [vmem:[%s1560_s7 + $0x54] sm:$0xf]  ;;  %v1119_v17 = vld [vmem:[%s1560_s7 + $0x58] sm:$0xf0]  ;;  %v1314_v19 = vor.u32 %v1400_v11, %v1311_v12  ;;  %v1239_v22 = vld [vmem:[%s1560_s7 + $0x148] sm:$0xf0] }
  0x4b   : > { %766 = vmatpush.bf16.msra.mxu1 %v1142_v45  ;;  %v1368_v18 = vld [vmem:[%s1560_s7 + $0xd4] sm:$0xf]  ;;  %v1183_v20 = vld [vmem:[%s1560_s7 + $0xd8] sm:$0xf0]  ;;  %v1398_v23 = vld [vmem:[%s1560_s7 + $0x1c4] sm:$0xf]  ;;  %v1122_v26 = vor.u32 %v1352_v16, %v1119_v17  ;;  %v1242_v29 = vor.u32 %v1382_v21, %v1239_v22 }
  0x4c   : > { %784 = vmatpush.bf16.msra.mxu2 %v1206_v46  ;;  %v1303_v24 = vld [vmem:[%s1560_s7 + $0x1c8] sm:$0xf0]  ;;  %v321_v25 = vld [vmem:[%s1562_s8 + $0x20] sm:$0xff]  ;;  %v1186_v28 = vor.u32 %v1368_v18, %v1183_v20  ;;  %v1231_v37 = vld [vmem:[%s1560_s7 + $0x138] sm:$0xf0]  ;;  %p1331_p11 = scmp.ne.s32.totalorder %s1479_s14, 3 }
  0x4d   : > { %802 = vmatpush.bf16.msra.mxu3 %v1270_v50  ;;  %749 = vmatmul.bf16.vlgmr.msra.gmra.mxu0 %v1662_v55  ;;  %v322_v27 = vld [vmem:[%s1562_s8 + $0x28] sm:$0xff]  ;;  %v1350_v30 = vld [vmem:[%s1560_s7 + $0x44] sm:$0xf]  ;;  %v1306_v33 = vor.u32 %v1398_v23, %v1303_v24  ;;  %v401_v35 = vunpack.c.l.b16 %v321_v25  ;;  %v1380_v36 = vld [vmem:[%s1560_s7 + $0x134] sm:$0xf]  ;;  %v402_v38 = vunpack.c.h.b16 %v321_v25 }
  0x4e   : > { %767 = vmatmul.bf16.vlgmr.msra.gmra.mxu1 %v1667_v60  ;;  %813 = vmatpush.bf16.msrb.mxu0 %v1138_v1  ;;  %v1111_v31 = vld [vmem:[%s1560_s7 + $0x48] sm:$0xf0]  ;;  %v1366_v32 = vld [vmem:[%s1560_s7 + $0xc4] sm:$0xf]  ;;  %v403_v39 = vunpack.c.l.b16 %v322_v27  ;;  %v1396_v40 = vld [vmem:[%s1560_s7 + $0x1b4] sm:$0xf]  ;;  %v404_v43 = vunpack.c.h.b16 %v322_v27  ;;  %v1234_v45 = vor.u32 %v1380_v36, %v1231_v37 }
  0x4f   : > { %785 = vmatmul.bf16.vlgmr.msra.gmra.mxu2 %v1669_v61  ;;  %831 = vmatpush.bf16.msrb.mxu1 %v1202_v2  ;;  %v1175_v34 = vld [vmem:[%s1560_s7 + $0xc8] sm:$0xf0]  ;;  %v1295_v41 = vld [vmem:[%s1560_s7 + $0x1b8] sm:$0xf0]  ;;  %v1114_v42 = vor.u32 %v1350_v30, %v1111_v31  ;;  %v1348_v46 = vld [vmem:[%s1560_s7 + $0x34] sm:$0xf]  ;;  %v1708_v49 = vpack.c.b16 %v401_v35, %v401_v35  ;;  %v1713_v54 = vpack.c.b16 %v402_v38, %v402_v38 }
  0x50   : > { %849 = vmatpush.bf16.msrb.mxu2 %v1266_v51  ;;  %803 = vmatmul.bf16.vlgmr.msra.gmra.mxu3 %v1673_v0  ;;  %v1178_v44 = vor.u32 %v1366_v32, %v1175_v34  ;;  %v1103_v47 = vld [vmem:[%s1560_s7 + $0x38] sm:$0xf0]  ;;  %v1364_v48 = vld [vmem:[%s1560_s7 + $0xb4] sm:$0xf]  ;;  %v1298_v50 = vor.u32 %v1396_v40, %v1295_v41  ;;  %v1378_v52 = vld [vmem:[%s1560_s7 + $0x124] sm:$0xf]  ;;  %v412_v59 = vpack.c.b16 %v404_v43, %v404_v43 }
  0x51   : > { %867 = vmatpush.bf16.msrb.mxu3 %v1330_v56  ;;  %v1167_v51 = vld [vmem:[%s1560_s7 + $0xb8] sm:$0xf0]  ;;  %v1223_v53 = vld [vmem:[%s1560_s7 + $0x128] sm:$0xf0]  ;;  %v1715_v56 = vpack.c.b16 %v403_v39, %v403_v39  ;;  %v1394_v57 = vld [vmem:[%s1560_s7 + $0x1a4] sm:$0xf]  ;;  %v1106_v62 = vor.u32 %v1348_v46, %v1103_v47 }
  0x52   : > { %814 = vmatpush.bf16.msrb.mxu0 %v1130_v13  ;;  %v1287_v58 = vld [vmem:[%s1560_s7 + $0x1a8] sm:$0xf0]  ;;  %v1170_v63 = vor.u32 %v1364_v48, %v1167_v51  ;;  %v1226_v1 = vor.u32 %v1378_v52, %v1223_v53  ;;  %v1346_v2 = vld [vmem:[%s1560_s7 + $0x24] sm:$0xf]  ;;  %v1215_v8 = vld [vmem:[%s1560_s7 + $0x118] sm:$0xf0] }
  0x53   : > { %832 = vmatpush.bf16.msrb.mxu1 %v1194_v14  ;;  %v1362_v4 = vld [vmem:[%s1560_s7 + $0xa4] sm:$0xf]  ;;  %v1290_v5 = vor.u32 %v1394_v57, %v1287_v58  ;;  %v1159_v6 = vld [vmem:[%s1560_s7 + $0xa8] sm:$0xf0]  ;;  %v1392_v9 = vld [vmem:[%s1560_s7 + $0x194] sm:$0xf] }
  0x54   : > { %850 = vmatpush.bf16.msrb.mxu2 %v1258_v3  ;;  %v1095_v3 = vld [vmem:[%s1560_s7 + $0x28] sm:$0xf0]  ;;  %v1279_v10 = vld [vmem:[%s1560_s7 + $0x198] sm:$0xf0]  ;;  %v1162_v12 = vor.u32 %v1362_v4, %v1159_v6  ;;  %v1344_v14 = vld [vmem:[%s1560_s7 + $0x14] sm:$0xf] }
  0x55   : > { %868 = vmatpush.bf16.msrb.mxu3 %v1322_v7  ;;  %v1376_v7 = vld [vmem:[%s1560_s7 + $0x114] sm:$0xf]  ;;  %v1098_v11 = vor.u32 %v1346_v2, %v1095_v3  ;;  %v1282_v17 = vor.u32 %v1392_v9, %v1279_v10  ;;  %v1151_v18 = vld [vmem:[%s1560_s7 + $0x98] sm:$0xf0]  ;;  %v1207_v20 = vld [vmem:[%s1560_s7 + $0x108] sm:$0xf0] }
  0x56   : > { %815 = vmatpush.bf16.msrb.mxu0 %v1122_v26  ;;  %v1218_v13 = vor.u32 %v1376_v7, %v1215_v8  ;;  %v1360_v16 = vld [vmem:[%s1560_s7 + $0x94] sm:$0xf]  ;;  %v1390_v21 = vld [vmem:[%s1560_s7 + $0x184] sm:$0xf]  ;;  %v1271_v22 = vld [vmem:[%s1560_s7 + $0x188] sm:$0xf0] }
  0x57   : > { %833 = vmatpush.bf16.msrb.mxu1 %v1186_v28  ;;  %v1154_v24 = vor.u32 %v1360_v16, %v1151_v18  ;;  %v1342_v26 = vld [vmem:[%s1560_s7 + $0x4] sm:$0xf]  ;;  %v1079_v27 = vld [vmem:[%s1560_s7 + $0x8] sm:$0xf0]  ;;  %v1274_v28 = vor.u32 %v1390_v21, %v1271_v22 }
  0x58   : > { %851 = vmatpush.bf16.msrb.mxu2 %v1250_v15  ;;  %v1087_v15 = vld [vmem:[%s1560_s7 + $0x18] sm:$0xf0]  ;;  %v1143_v30 = vld [vmem:[%s1560_s7 + $0x88] sm:$0xf0]  ;;  %v1082_v31 = vor.u32 %v1342_v26, %v1079_v27 }
  0x59   : > { %869 = vmatpush.bf16.msrb.mxu3 %v1314_v19  ;;  %v1374_v19 = vld [vmem:[%s1560_s7 + $0x104] sm:$0xf]  ;;  %v1090_v23 = vor.u32 %v1344_v14, %v1087_v15  ;;  %v312_v6 = vld [vmem:[%s1843_s3 + $0x8] sm:$0xff]  ;;  %v314_v15 = vld [vmem:[%s1843_s3 + $0x18] sm:$0xff] }
  0x5a   : > { %816 = vmatpush.bf16.msrb.mxu0 %v1114_v42  ;;  %v1210_v25 = vor.u32 %v1374_v19, %v1207_v20 }
  0x5b   : > { %834 = vmatpush.bf16.msrb.mxu1 %v1178_v44 }
  0x5c   : > { %852 = vmatpush.bf16.msrb.mxu2 %v1242_v29  ;;  %v1358_v29 = vld [vmem:[%s1560_s7 + $0x84] sm:$0xf] }
  0x5d   : > { %870 = vmatpush.bf16.msrb.mxu3 %v1306_v33  ;;  %754 = vmatmul.bf16.gmra.mxu0 %v1708_v49  ;;  %v1146_v32 = vor.u32 %v1358_v29, %v1143_v30 }
  0x5e   : > { %772 = vmatmul.bf16.gmra.mxu1 %v1713_v54  ;;  %817 = vmatpush.bf16.msrb.mxu0 %v1106_v62 }
  0x5f   : > { %790 = vmatmul.bf16.gmra.mxu2 %v1715_v56  ;;  %835 = vmatpush.bf16.msrb.mxu1 %v1170_v63 }
  0x60   : > { %853 = vmatpush.bf16.msrb.mxu2 %v1234_v45  ;;  %808 = vmatmul.bf16.gmra.mxu3 %v412_v59  ;;  %v313_v45 = vld [vmem:[%s1843_s3 + $0x10] sm:$0xff] }
  0x61   : > { %871 = vmatpush.bf16.msrb.mxu3 %v1298_v50 }
  0x62   : > { %818 = vmatpush.bf16.msrb.mxu0 %v1098_v11 }
  0x63   : > { %836 = vmatpush.bf16.msrb.mxu1 %v1162_v12 }
  0x64   : > { %854 = vmatpush.bf16.msrb.mxu2 %v1226_v1 }
  0x65   : > { %872 = vmatpush.bf16.msrb.mxu3 %v1290_v5 }
  0x66   : > { %819 = vmatpush.bf16.msrb.mxu0 %v1090_v23 }
  0x67   : > { %837 = vmatpush.bf16.msrb.mxu1 %v1154_v24  ;;  %v316_v24 = vld [vmem:[%s1843_s3 + $0x28] sm:$0xff] }
  0x68   : > { %855 = vmatpush.bf16.msrb.mxu2 %v1218_v13 }
  0x69   : > { %873 = vmatpush.bf16.msrb.mxu3 %v1282_v17 }
  0x6a   : > { %820 = vmatpush.bf16.msrb.mxu0 %v1082_v31 }
  0x6b   : > { %838 = vmatpush.bf16.msrb.mxu1 %v1146_v32 }
  0x6c   : > { %856 = vmatpush.bf16.msrb.mxu2 %v1210_v25 }
  0x6d   : > { %874 = vmatpush.bf16.msrb.mxu3 %v1274_v28  ;;  %821 = vmatmul.bf16.vlgmr.msrb.gmra.mxu0 %v1662_v55 }
  0x6e   : > { %839 = vmatmul.bf16.vlgmr.msrb.gmra.mxu1 %v1667_v60  ;;  %v311_v60 = vld [vmem:[%s1843_s3] sm:$0xff] }
  0x6f   : > { %857 = vmatmul.bf16.vlgmr.msrb.gmra.mxu2 %v1669_v61 }
  0x70   : > { %875 = vmatmul.bf16.vlgmr.msrb.gmra.mxu3 %v1673_v0 }
  0x7d   : > { %826 = vmatmul.bf16.gmra.mxu0 %v1708_v49 }
  0x7e   : > { %844 = vmatmul.bf16.gmra.mxu1 %v1713_v54  ;;  %v315_v54 = vld [vmem:[%s1843_s3 + $0x20] sm:$0xff] }
  0x7f   : > { %862 = vmatmul.bf16.gmra.mxu2 %v1715_v56 }
  0x80   : > { %880 = vmatmul.bf16.gmra.mxu3 %v412_v59 }
  0xca   : > { %v750_v33 = vpop.f32.mrf.mxu0 }
  0xcb   : > { %v768_v34 = vpop.f32.mrf.mxu1 }
  0xcc   : > { %v769_v35 = vadd.f32 %v768_v34, %v750_v33 }
  0xd2   : > { %v786_v36 = vpop.f32.mrf.mxu2  ;;  %v752_v55 = vpop.f32.mrf.mxu0 }
  0xd3   : > { %v787_v37 = vadd.f32 %v786_v36, %v769_v35  ;;  %v804_v38 = vpop.f32.mrf.mxu3  ;;  %v770_v61 = vpop.f32.mrf.mxu1 }
  0xd4   : > { %v771_v40 = vadd.f32 %v770_v61, %v752_v55 }
  0xd5   : > { %v805_v0 = vadd.f32 %v804_v38, %v787_v37 }
  0xd7   : > { %v885_v39 = vadd.f32 %v805_v0, %v311_v60 }
  0xd9   : > { %891 = vst [vmem:[%s1843_s3] sm:$0xff] %v885_v39 }
  0xda   : > { %v788_v41 = vpop.f32.mrf.mxu2  ;;  %v755_v44 = vpop.f32.mrf.mxu0 }
  0xdb   : > { %v789_v42 = vadd.f32 %v788_v41, %v771_v40  ;;  %v806_v43 = vpop.f32.mrf.mxu3  ;;  %v773_v46 = vpop.f32.mrf.mxu1 }
  0xdc   : > { %v774_v49 = vadd.f32 %v773_v46, %v755_v44 }
  0xdd   : > { %v807_v47 = vadd.f32 %v806_v43, %v789_v42 }
  0xdf   : > { %v887_v48 = vadd.f32 %v807_v47, %v313_v45 }
  0xe1   : > { %893 = vst [vmem:[%s1843_s3 + $0x10] sm:$0xff] %v887_v48 }
  0xe2   : > { %v791_v50 = vpop.f32.mrf.mxu2  ;;  %v757_v53 = vpop.f32.mrf.mxu0 }
  0xe3   : > { %v792_v51 = vadd.f32 %v791_v50, %v774_v49  ;;  %v809_v52 = vpop.f32.mrf.mxu3  ;;  %v775_v56 = vpop.f32.mrf.mxu1 }
  0xe5   : > { %v810_v57 = vadd.f32 %v809_v52, %v792_v51 }
  0xe7   : > { %v889_v58 = vadd.f32 %v810_v57, %v315_v54 }
  0xe9   : > { %895 = vst [vmem:[%s1843_s3 + $0x20] sm:$0xff] %v889_v58 }
  0xea   : > { %v793_v59 = vpop.f32.mrf.mxu2  ;;  %v822_v63 = vpop.f32.mrf.mxu0 }
  0xeb   : > { %v811_v62 = vpop.f32.mrf.mxu3  ;;  %v840_v1 = vpop.f32.mrf.mxu1 }
  0xec   : > { %v841_v2 = vadd.f32 %v840_v1, %v822_v63 }
  0xf2   : > { %v858_v3 = vpop.f32.mrf.mxu2  ;;  %v824_v7 = vpop.f32.mrf.mxu0 }
  0xf3   : > { %v859_v4 = vadd.f32 %v858_v3, %v841_v2  ;;  %v876_v5 = vpop.f32.mrf.mxu3  ;;  %v842_v9 = vpop.f32.mrf.mxu1 }
  0xf4   : > { %v843_v11 = vadd.f32 %v842_v9, %v824_v7 }
  0xf5   : > { %v877_v8 = vadd.f32 %v876_v5, %v859_v4 }
  0xf7   : > { %v886_v10 = vadd.f32 %v877_v8, %v312_v6 }
  0xf9   : > { %892 = vst [vmem:[%s1843_s3 + $0x8] sm:$0xff] %v886_v10 }
  0xfa   : > { %v860_v12 = vpop.f32.mrf.mxu2  ;;  %v827_v16 = vpop.f32.mrf.mxu0 }
  0xfb   : > { %v861_v13 = vadd.f32 %v860_v12, %v843_v11  ;;  %v878_v14 = vpop.f32.mrf.mxu3  ;;  %v845_v18 = vpop.f32.mrf.mxu1 }
  0xfc   : > { %v846_v20 = vadd.f32 %v845_v18, %v827_v16 }
  0xfd   : > { %v879_v17 = vadd.f32 %v878_v14, %v861_v13 }
  0xff   : > { %v888_v19 = vadd.f32 %v879_v17, %v314_v15 }
 0x101   : > { %894 = vst [vmem:[%s1843_s3 + $0x18] sm:$0xff] %v888_v19 }
 0x102   : > { %v863_v21 = vpop.f32.mrf.mxu2  ;;  %v829_v25 = vpop.f32.mrf.mxu0 }
 0x103   : > { %v864_v22 = vadd.f32 %v863_v21, %v846_v20  ;;  %v881_v23 = vpop.f32.mrf.mxu3  ;;  %v847_v27 = vpop.f32.mrf.mxu1 }
 0x105   : > { %v882_v26 = vadd.f32 %v881_v23, %v864_v22 }
 0x107   : > { %v890_v28 = vadd.f32 %v882_v26, %v316_v24  ;;  %900 = sbr.rel (%p1331_p11) target bundleno = 280 (0x118), region = 63 }
 0x109   : > { %896 = vst [vmem:[%s1843_s3 + $0x28] sm:$0xff] %v890_v28 }
 0x10a   : > { %v865_v29 = vpop.f32.mrf.mxu2 }
 0x10b   : > { %v883_v30 = vpop.f32.mrf.mxu3 }
 0x10c   : > { %v901_v31 = vld [vmem:[%s1843_s3] sm:$0xff]  ;;  %v902_v33 = vld [vmem:[%s1843_s3 + $0x8] sm:$0xff]  ;;  %v903_v36 = vld [vmem:[%s1843_s3 + $0x10] sm:$0xff] }
 0x10d   : > { %v907_v32 = vld [vmem:[%s1842_s2] sm:$0x3]  ;;  %v904_v37 = vld [vmem:[%s1843_s3 + $0x18] sm:$0xff] }
 0x10e   : > { %v909_v34 = vperm.slane %v907_v32, 0  ;;  %v910_v35 = vperm.slane %v907_v32, 1  ;;  %v905_v38 = vld [vmem:[%s1843_s3 + $0x20] sm:$0xff] }
 0x110   : > { %v913_v55 = vadd.f32 %v909_v34, %v901_v31  ;;  %v914_v60 = vadd.f32 %v910_v35, %v902_v33  ;;  %v915_v61 = vadd.f32 %v909_v34, %v903_v36  ;;  %v906_v0 = vld [vmem:[%s1843_s3 + $0x28] sm:$0xff]  ;;  %v916_v39 = vadd.f32 %v910_v35, %v904_v37 }
 0x111   : > { %v917_v40 = vadd.f32 %v909_v34, %v905_v38  ;;  %v918_v41 = vadd.f32 %v910_v35, %v906_v0 }
 0x112   : > { %919 = vst [vmem:[%s1843_s3] sm:$0xff] %v913_v55 }
 0x113   : > { %920 = vst [vmem:[%s1843_s3 + $0x8] sm:$0xff] %v914_v60 }
 0x114   : > { %921 = vst [vmem:[%s1843_s3 + $0x10] sm:$0xff] %v915_v61 }
 0x115   : > { %922 = vst [vmem:[%s1843_s3 + $0x18] sm:$0xff] %v916_v39 }
 0x116   : > { %923 = vst [vmem:[%s1843_s3 + $0x20] sm:$0xff] %v917_v40 }
 0x117   : > { %924 = vst [vmem:[%s1843_s3 + $0x28] sm:$0xff] %v918_v41 }
 0x118 PF: > { %s13_s16 = sadd.s32 1, %s1487_s16   ;;  %s1844_s12 = smov %s1475_s13 }
 0x119   : > { %p10_p12 = scmp.ge.s32.totalorder %s13_s16, 6   ;;  %s1845_s13 = smov %s1545_s20 }
 0x11a   : > { %s1846_s14 = smov %s1483_s15  ;;  %s1847_s15 = smov %s1849_s17 }
 0x11b   :  { %12 = sbr.rel (!%p10_p12) target bundleno = 3 (0x3), region = 104 }

// kernel: _lambda_.16
= control target key start
LH: loop header
LB: loop body
LE: loop exit
PB: predicated region body
PF: predicated region fallthrough
CT: control target
= control target key end

     0   :  { %v14_v0 = vlaneseq  ;;  %v94_v11 = vmov 0.0   ;;  %vm46_vm1 = vcmask 1040384   ;;  %s158_s0 = inlined_call_operand.vmem [shape: f32[24,256], index: 0, kind: input, shape index: {}]   ;;  %s159_s1 = inlined_call_operand.vmem [shape: f32[1,256], index: 1, kind: output, shape index: {0}]   ;;  %s160_s2 = inlined_call_operand.vmem [shape: f32[1,256], index: 2, kind: output, shape index: {1}]  }
   0x1   :  { %v20_v1 = vld [vmem:[%s158_s0] sm:$0xff]  ;;  %v21_v2 = vld [vmem:[%s158_s0 + $0x8] sm:$0xff]  ;;  %v22_v3 = vld [vmem:[%s158_s0 + $0x10] sm:$0xff] }
   0x2   :  { %vm119_vm0 = vcmp.lt.s32.totalorder %v14_v0, 256  ;;  %v23_v5 = vld [vmem:[%s158_s0 + $0x18] sm:$0xff]  ;;  %v24_v6 = vld [vmem:[%s158_s0 + $0x20] sm:$0xff]  ;;  %v25_v7 = vld [vmem:[%s158_s0 + $0x28] sm:$0xff]  ;;  %v27_v8 = vadd.f32 %v22_v3, %v20_v1  ;;  %v56_v9 = vmul.f32 %v20_v1, %v20_v1  ;;  %v57_v10 = vmul.f32 %v21_v2, %v21_v2 }
   0x3   :  { %18 = vst.msk [vmem:[%s159_s1] sm:$0x3] %vm119_vm0, %v94_v11  ;;  %v35_v12 = vadd.f32 %v23_v5, %v21_v2  ;;  %v58_v13 = vmul.f32 %v22_v3, %v22_v3  ;;  %v59_v14 = vmul.f32 %v23_v5, %v23_v5  ;;  %v60_v15 = vmul.f32 %v24_v6, %v24_v6 }
   0x4   :  { %v28_v16 = vadd.f32 %v27_v8, %v24_v6  ;;  %19 = vst.msk [vmem:[%s160_s2] sm:$0x3] %vm119_vm0, %v94_v11  ;;  %v61_v17 = vmul.f32 %v25_v7, %v25_v7 }
   0x5   :  { %v36_v18 = vadd.f32 %v35_v12, %v25_v7  ;;  %v62_v19 = vadd.f32 %v58_v13, %v56_v9  ;;  %v70_v20 = vadd.f32 %v59_v14, %v57_v10 }
   0x6   :  { %v29_v21 = vrot.slane %v28_v16, 4 }
   0x7   :  { %v37_v22 = vrot.slane %v36_v18, 4  ;;  %v63_v23 = vadd.f32 %v62_v19, %v60_v15  ;;  %v71_v24 = vadd.f32 %v70_v20, %v61_v17 }
   0x8   :  { %v30_v25 = vadd.f32 %v29_v21, %v28_v16 }
   0x9   :  { %v38_v26 = vadd.f32 %v37_v22, %v36_v18  ;;  %v64_v27 = vrot.slane %v63_v23, 4  ;;  %v72_v28 = vrot.slane %v71_v24, 4 }
   0xa   :  { %v31_v29 = vrot.slane %v30_v25, 2  ;;  %v26_v45 = vld [vmem:[%s159_s1] sm:$0x3] }
   0xb   :  { %v39_v30 = vrot.slane %v38_v26, 2  ;;  %v65_v31 = vadd.f32 %v64_v27, %v63_v23  ;;  %v73_v32 = vadd.f32 %v72_v28, %v71_v24  ;;  %v55_v50 = vld [vmem:[%s160_s2] sm:$0x3] }
   0xc   :  { %v32_v33 = vadd.f32 %v31_v29, %v30_v25 }
   0xd   :  { %v40_v34 = vadd.f32 %v39_v30, %v38_v26  ;;  %v66_v35 = vrot.slane %v65_v31, 2  ;;  %v74_v36 = vrot.slane %v73_v32, 2 }
   0xe   :  { %v33_v37 = vrot.slane %v32_v33, 1 }
   0xf   :  { %v41_v38 = vrot.slane %v40_v34, 1  ;;  %v67_v39 = vadd.f32 %v66_v35, %v65_v31  ;;  %v75_v40 = vadd.f32 %v74_v36, %v73_v32 }
  0x10   :  { %v34_v41 = vadd.f32 %v33_v37, %v32_v33 }
  0x11   :  { %v42_v42 = vadd.f32 %v41_v38, %v40_v34  ;;  %v68_v43 = vrot.slane %v67_v39, 1  ;;  %v76_v44 = vrot.slane %v75_v40, 1 }
  0x13   :  { %v45_v46 = vrot.slane %v42_v42, 7  ;;  %v69_v47 = vadd.f32 %v68_v43, %v67_v39  ;;  %v77_v48 = vadd.f32 %v76_v44, %v75_v40 }
  0x15   :  { %v47_v49 = vsel %vm46_vm1, %v34_v41, %v45_v46  ;;  %v80_v51 = vrot.slane %v77_v48, 7 }
  0x16   :  { %v49_v52 = vadd.f32 %v47_v49, %v26_v45 }
  0x17   :  { %v81_v53 = vsel %vm46_vm1, %v69_v47, %v80_v51 }
  0x18   :  { %54 = vst.msk [vmem:[%s159_s1] sm:$0x3] %vm119_vm0, %v49_v52  ;;  %v83_v54 = vadd.f32 %v81_v53, %v55_v50 }
  0x1a   :  { %84 = vst.msk [vmem:[%s160_s2] sm:$0x3] %vm119_vm0, %v83_v54 }

// kernel: _lambda_.17
= control target key start
LH: loop header
LB: loop body
LE: loop exit
PB: predicated region body
PF: predicated region fallthrough
CT: control target
= control target key end

     0   :  { %s187_s1 = inlined_call_operand.vmem [shape: f32[1,256], index: 1, kind: input, shape index: {}]   ;;  %s188_s2 = inlined_call_operand.vmem [shape: f32[1,256], index: 2, kind: input, shape index: {}]   ;;  %s189_s0 = inlined_call_operand.vmem [shape: f32[24,256], index: 0, kind: input, shape index: {}]   ;;  %s190_s3 = inlined_call_operand.vmem [shape: f32[1,256], index: 3, kind: input, shape index: {}]   ;;  %s191_s4 = inlined_call_operand.vmem [shape: f32[1,256], index: 4, kind: input, shape index: {}]   ;;  %s192_s5 = inlined_call_operand.vmem [shape: f32[24,256], index: 5, kind: output, shape index: {}]  }
   0x1   :  { %v20_v0 = vld [vmem:[%s187_s1] sm:$0x3]  ;;  %v40_v17 = vld [vmem:[%s189_s0 + $0x8] sm:$0xff]  ;;  %v41_v18 = vld [vmem:[%s189_s0 + $0x10] sm:$0xff] }
   0x2   :  { %v22_v1 = vld [vmem:[%s188_s2] sm:$0x3]  ;;  %v21_v2 = vmul.f32 0.055555556, %v20_v0  ;;  %v42_v19 = vld [vmem:[%s189_s0 + $0x18] sm:$0xff]  ;;  %v44_v21 = vld [vmem:[%s189_s0 + $0x28] sm:$0xff] }
   0x3   :  { %v23_v3 = vmul.f32 0.055555556, %v22_v1  ;;  %v37_v13 = vld [vmem:[%s190_s3] sm:$0x3] }
   0x4   :  { %v24_v4 = vmul.f32 %v21_v2, %v21_v2  ;;  %v46_v12 = vperm.slane %v21_v2, 0  ;;  %v39_v14 = vld [vmem:[%s189_s0] sm:$0xff]  ;;  %v47_v15 = vperm.slane %v21_v2, 1 }
   0x5   :  { %v43_v20 = vld [vmem:[%s189_s0 + $0x20] sm:$0xff] }
   0x6   :  { %v25_v5 = vsub.f32 %v23_v3, %v24_v4  ;;  %v50_v23 = vsub.f32 %v39_v14, %v46_v12  ;;  %v67_v24 = vld [vmem:[%s191_s4] sm:$0x3]  ;;  %v51_v26 = vsub.f32 %v40_v17, %v47_v15  ;;  %v52_v27 = vsub.f32 %v41_v18, %v46_v12 }
   0x7   :  { %v53_v28 = vsub.f32 %v42_v19, %v47_v15  ;;  %v54_v29 = vsub.f32 %v43_v20, %v46_v12  ;;  %v55_v30 = vsub.f32 %v44_v21, %v47_v15  ;;  %v69_v32 = vperm.slane %v67_v24, 0 }
   0x8   :  { %v26_v6 = vadd.f32 1e-05, %v25_v5  ;;  %v70_v34 = vperm.slane %v67_v24, 1 }
   0xa   :  { %107 = vrsqrt.f32 %v26_v6  ;;  %vm33_vm0 = vweird.f32 %v26_v6 }
  0x10   :  { %v108_v7 = vpop.eup %107 }
  0x11   :  { %v28_v8 = vmul.f32 %v108_v7, %v26_v6  ;;  %vm34_vm1 = vweird.f32 %v108_v7 }
  0x12   :  { %vm35_vm2 = vmor %vm33_vm0, %vm34_vm1 }
  0x13   :  { %v29_v9 = vmul.f32 %v108_v7, %v28_v8 }
  0x15   :  { %v30_v10 = vmul.f32 0.5, %v29_v9 }
  0x17   :  { %v31_v11 = vsub.f32 1.5, %v30_v10 }
  0x19   :  { %v32_v16 = vmul.f32 %v108_v7, %v31_v11 }
  0x1b   :  { %v36_v22 = vsel %vm35_vm2, %v108_v7, %v32_v16 }
  0x1c   :  { %v38_v25 = vmul.f32 %v37_v13, %v36_v22 }
  0x1e   :  { %v57_v31 = vperm.slane %v38_v25, 0  ;;  %v58_v33 = vperm.slane %v38_v25, 1 }
  0x20   :  { %v61_v35 = vmul.f32 %v57_v31, %v50_v23  ;;  %v62_v36 = vmul.f32 %v58_v33, %v51_v26  ;;  %v63_v37 = vmul.f32 %v57_v31, %v52_v27  ;;  %v64_v38 = vmul.f32 %v58_v33, %v53_v28 }
  0x21   :  { %v65_v39 = vmul.f32 %v57_v31, %v54_v29  ;;  %v66_v40 = vmul.f32 %v58_v33, %v55_v30 }
  0x22   :  { %v73_v41 = vadd.f32 %v69_v32, %v61_v35  ;;  %v74_v42 = vadd.f32 %v70_v34, %v62_v36  ;;  %v75_v43 = vadd.f32 %v69_v32, %v63_v37  ;;  %v76_v44 = vadd.f32 %v70_v34, %v64_v38 }
  0x23   :  { %v77_v45 = vadd.f32 %v69_v32, %v65_v39  ;;  %v78_v46 = vadd.f32 %v70_v34, %v66_v40 }
  0x24   :  { %vm79_vm3 = vcmp.ge.f32.partialorder %v73_v41, 0.0  ;;  %v85_v47 = vmul.f32 0.2, %v73_v41  ;;  %vm80_vm4 = vcmp.ge.f32.partialorder %v74_v42, 0.0  ;;  %v86_v48 = vmul.f32 0.2, %v74_v42 }
  0x25   :  { %vm81_vm5 = vcmp.ge.f32.partialorder %v75_v43, 0.0  ;;  %v87_v49 = vmul.f32 0.2, %v75_v43  ;;  %vm82_vm6 = vcmp.ge.f32.partialorder %v76_v44, 0.0  ;;  %v88_v50 = vmul.f32 0.2, %v76_v44 }
  0x26   :  { %v91_v51 = vsel %vm79_vm3, %v73_v41, %v85_v47  ;;  %v92_v52 = vsel %vm80_vm4, %v74_v42, %v86_v48  ;;  %vm83_vm7 = vcmp.ge.f32.partialorder %v77_v45, 0.0  ;;  %v89_v53 = vmul.f32 0.2, %v77_v45 }
  0x27   :  { %97 = vst [vmem:[%s192_s5] sm:$0xff] %v91_v51  ;;  %v93_v54 = vsel %vm81_vm5, %v75_v43, %v87_v49  ;;  %v94_v55 = vsel %vm82_vm6, %v76_v44, %v88_v50  ;;  %vm84_vm8 = vcmp.ge.f32.partialorder %v78_v46, 0.0  ;;  %v90_v56 = vmul.f32 0.2, %v78_v46 }
  0x28   :  { %98 = vst [vmem:[%s192_s5 + $0x8] sm:$0xff] %v92_v52  ;;  %v95_v57 = vsel %vm83_vm7, %v77_v45, %v89_v53 }
  0x29   :  { %99 = vst [vmem:[%s192_s5 + $0x10] sm:$0xff] %v93_v54  ;;  %v96_v58 = vsel %vm84_vm8, %v78_v46, %v90_v56 }
  0x2a   :  { %100 = vst [vmem:[%s192_s5 + $0x18] sm:$0xff] %v94_v55 }
  0x2b   :  { %101 = vst [vmem:[%s192_s5 + $0x20] sm:$0xff] %v95_v57 }
  0x2c   :  { %102 = vst [vmem:[%s192_s5 + $0x28] sm:$0xff] %v96_v58 }

// kernel: _lambda_.19
= control target key start
LH: loop header
LB: loop body
LE: loop exit
PB: predicated region body
PF: predicated region fallthrough
CT: control target
= control target key end

     0   :  { %v14_v0 = vlaneseq  ;;  %v168_v11 = vmov 0.0   ;;  %vm80_vm1 = vcmask 1040384   ;;  %vm82_vm2 = vcmask 1042434   ;;  %s268_s0 = inlined_call_operand.vmem [shape: f32[32,512], index: 0, kind: input, shape index: {}]   ;;  %s269_s1 = inlined_call_operand.vmem [shape: f32[1,512], index: 1, kind: output, shape index: {0}]   ;;  %s270_s2 = inlined_call_operand.vmem [shape: f32[1,512], index: 2, kind: output, shape index: {1}]  }
   0x1   :  { %v20_v1 = vld [vmem:[%s268_s0] sm:$0xff]  ;;  %v21_v2 = vld [vmem:[%s268_s0 + $0x8] sm:$0xff]  ;;  %v22_v3 = vld [vmem:[%s268_s0 + $0x10] sm:$0xff]  ;;  %vm84_vm3 = vcmask 1041408  }
   0x2   :  { %vm193_vm0 = vcmp.lt.s32.totalorder %v14_v0, 512  ;;  %v23_v5 = vld [vmem:[%s268_s0 + $0x18] sm:$0xff]  ;;  %v24_v6 = vld [vmem:[%s268_s0 + $0x20] sm:$0xff]  ;;  %v25_v7 = vld [vmem:[%s268_s0 + $0x28] sm:$0xff]  ;;  %v94_v8 = vmul.f32 %v20_v1, %v20_v1  ;;  %v95_v9 = vmul.f32 %v21_v2, %v21_v2  ;;  %v96_v10 = vmul.f32 %v22_v3, %v22_v3 }
   0x3   :  { %18 = vst.msk [vmem:[%s269_s1] sm:$0xf] %vm193_vm0, %v168_v11  ;;  %v26_v12 = vld [vmem:[%s268_s0 + $0x30] sm:$0xff]  ;;  %v27_v13 = vld [vmem:[%s268_s0 + $0x38] sm:$0xff]  ;;  %v28_v14 = vld [vmem:[%s268_s0 + $0x40] sm:$0xff]  ;;  %v37_v15 = vadd.f32 %v24_v6, %v20_v1  ;;  %v46_v16 = vadd.f32 %v25_v7, %v21_v2  ;;  %v97_v17 = vmul.f32 %v23_v5, %v23_v5  ;;  %v98_v18 = vmul.f32 %v24_v6, %v24_v6 }
   0x4   :  { %v29_v19 = vld [vmem:[%s268_s0 + $0x48] sm:$0xff]  ;;  %v30_v20 = vld [vmem:[%s268_s0 + $0x50] sm:$0xff]  ;;  %v31_v21 = vld [vmem:[%s268_s0 + $0x58] sm:$0xff]  ;;  %v55_v22 = vadd.f32 %v26_v12, %v22_v3  ;;  %v64_v23 = vadd.f32 %v27_v13, %v23_v5  ;;  %19 = vst.msk [vmem:[%s270_s2] sm:$0xf] %vm193_vm0, %v168_v11  ;;  %v99_v24 = vmul.f32 %v25_v7, %v25_v7  ;;  %v100_v25 = vmul.f32 %v26_v12, %v26_v12 }
   0x5   :  { %v32_v26 = vld [vmem:[%s268_s0 + $0x60] sm:$0xff]  ;;  %v33_v27 = vld [vmem:[%s268_s0 + $0x68] sm:$0xff]  ;;  %v34_v28 = vld [vmem:[%s268_s0 + $0x70] sm:$0xff]  ;;  %v38_v29 = vadd.f32 %v37_v15, %v28_v14  ;;  %v47_v30 = vadd.f32 %v46_v16, %v29_v19  ;;  %v101_v31 = vmul.f32 %v27_v13, %v27_v13  ;;  %v102_v32 = vmul.f32 %v28_v14, %v28_v14 }
   0x6   :  { %v35_v33 = vld [vmem:[%s268_s0 + $0x78] sm:$0xff]  ;;  %v56_v34 = vadd.f32 %v55_v22, %v30_v20  ;;  %v65_v35 = vadd.f32 %v64_v23, %v31_v21  ;;  %v103_v36 = vmul.f32 %v29_v19, %v29_v19  ;;  %v104_v37 = vmul.f32 %v30_v20, %v30_v20 }
   0x7   :  { %v39_v38 = vadd.f32 %v38_v29, %v32_v26  ;;  %v48_v39 = vadd.f32 %v47_v30, %v33_v27  ;;  %v105_v40 = vmul.f32 %v31_v21, %v31_v21  ;;  %v106_v41 = vmul.f32 %v32_v26, %v32_v26 }
   0x8   :  { %v57_v42 = vadd.f32 %v56_v34, %v34_v28  ;;  %v66_v43 = vadd.f32 %v65_v35, %v35_v33  ;;  %v107_v44 = vmul.f32 %v33_v27, %v33_v27  ;;  %v108_v45 = vmul.f32 %v34_v28, %v34_v28 }
   0x9   :  { %v40_v46 = vrot.slane %v39_v38, 4  ;;  %v49_v47 = vrot.slane %v48_v39, 4  ;;  %v109_v48 = vmul.f32 %v35_v33, %v35_v33  ;;  %v110_v49 = vadd.f32 %v98_v18, %v94_v8 }
   0xa   :  { %v58_v50 = vrot.slane %v57_v42, 4  ;;  %v67_v51 = vrot.slane %v66_v43, 4  ;;  %v119_v52 = vadd.f32 %v99_v24, %v95_v9  ;;  %v128_v53 = vadd.f32 %v100_v25, %v96_v10 }
   0xb   :  { %v41_v54 = vadd.f32 %v40_v46, %v39_v38  ;;  %v50_v55 = vadd.f32 %v49_v47, %v48_v39  ;;  %v111_v56 = vadd.f32 %v110_v49, %v102_v32  ;;  %v137_v57 = vadd.f32 %v101_v31, %v97_v17  ;;  %v36_v38 = vld [vmem:[%s269_s1] sm:$0xf] }
   0xc   :  { %v59_v58 = vadd.f32 %v58_v50, %v57_v42  ;;  %v68_v59 = vadd.f32 %v67_v51, %v66_v43  ;;  %v120_v60 = vadd.f32 %v119_v52, %v103_v36  ;;  %v129_v61 = vadd.f32 %v128_v53, %v104_v37 }
   0xd   :  { %v42_v62 = vrot.slane %v41_v54, 2  ;;  %v51_v63 = vrot.slane %v50_v55, 2  ;;  %v112_v0 = vadd.f32 %v111_v56, %v106_v41  ;;  %v138_v1 = vadd.f32 %v137_v57, %v105_v40 }
   0xe   :  { %v60_v2 = vrot.slane %v59_v58, 2  ;;  %v69_v3 = vrot.slane %v68_v59, 2  ;;  %v121_v5 = vadd.f32 %v120_v60, %v107_v44  ;;  %v130_v6 = vadd.f32 %v129_v61, %v108_v45 }
   0xf   :  { %v43_v7 = vadd.f32 %v42_v62, %v41_v54  ;;  %v52_v8 = vadd.f32 %v51_v63, %v50_v55  ;;  %v113_v9 = vrot.slane %v112_v0, 4  ;;  %v139_v10 = vadd.f32 %v138_v1, %v109_v48  ;;  %v93_v55 = vld [vmem:[%s270_s2] sm:$0xf] }
  0x10   :  { %v61_v11 = vadd.f32 %v60_v2, %v59_v58  ;;  %v70_v12 = vadd.f32 %v69_v3, %v68_v59  ;;  %v122_v13 = vrot.slane %v121_v5, 4  ;;  %v131_v14 = vrot.slane %v130_v6, 4 }
  0x11   :  { %v44_v15 = vrot.slane %v43_v7, 1  ;;  %v53_v16 = vrot.slane %v52_v8, 1  ;;  %v114_v17 = vadd.f32 %v113_v9, %v112_v0  ;;  %v140_v18 = vrot.slane %v139_v10, 4 }
  0x12   :  { %v62_v19 = vrot.slane %v61_v11, 1  ;;  %v71_v20 = vrot.slane %v70_v12, 1  ;;  %v123_v21 = vadd.f32 %v122_v13, %v121_v5  ;;  %v132_v22 = vadd.f32 %v131_v14, %v130_v6 }
  0x13   :  { %v45_v23 = vadd.f32 %v44_v15, %v43_v7  ;;  %v54_v24 = vadd.f32 %v53_v16, %v52_v8  ;;  %v115_v25 = vrot.slane %v114_v17, 2  ;;  %v141_v26 = vadd.f32 %v140_v18, %v139_v10 }
  0x14   :  { %v63_v27 = vadd.f32 %v62_v19, %v61_v11  ;;  %v72_v28 = vadd.f32 %v71_v20, %v70_v12  ;;  %v124_v29 = vrot.slane %v123_v21, 2  ;;  %v133_v30 = vrot.slane %v132_v22, 2 }
  0x15   :  { %v77_v31 = vrot.slane %v54_v24, 7  ;;  %v116_v32 = vadd.f32 %v115_v25, %v114_v17  ;;  %v142_v33 = vrot.slane %v141_v26, 2 }
  0x16   :  { %v78_v34 = vrot.slane %v63_v27, 6  ;;  %v79_v35 = vrot.slane %v72_v28, 5  ;;  %v125_v36 = vadd.f32 %v124_v29, %v123_v21  ;;  %v134_v37 = vadd.f32 %v133_v30, %v132_v22 }
  0x17   :  { %v81_v39 = vsel %vm80_vm1, %v45_v23, %v77_v31  ;;  %v117_v40 = vrot.slane %v116_v32, 1  ;;  %v143_v41 = vadd.f32 %v142_v33, %v141_v26 }
  0x18   :  { %v83_v42 = vsel %vm82_vm2, %v78_v34, %v79_v35  ;;  %v126_v43 = vrot.slane %v125_v36, 1  ;;  %v135_v44 = vrot.slane %v134_v37, 1 }
  0x19   :  { %v85_v45 = vsel %vm84_vm3, %v81_v39, %v83_v42  ;;  %v144_v46 = vrot.slane %v143_v41, 1  ;;  %v118_v48 = vadd.f32 %v117_v40, %v116_v32 }
  0x1a   :  { %v87_v47 = vadd.f32 %v85_v45, %v36_v38  ;;  %v127_v49 = vadd.f32 %v126_v43, %v125_v36  ;;  %v136_v50 = vadd.f32 %v135_v44, %v134_v37 }
  0x1b   :  { %v145_v51 = vadd.f32 %v144_v46, %v143_v41 }
  0x1c   :  { %92 = vst.msk [vmem:[%s269_s1] sm:$0xf] %vm193_vm0, %v87_v47  ;;  %v150_v52 = vrot.slane %v127_v49, 7  ;;  %v151_v53 = vrot.slane %v136_v50, 6 }
  0x1d   :  { %v152_v54 = vrot.slane %v145_v51, 5 }
  0x1e   :  { %v153_v56 = vsel %vm80_vm1, %v118_v48, %v150_v52 }
  0x1f   :  { %v154_v57 = vsel %vm82_vm2, %v151_v53, %v152_v54 }
  0x20   :  { %v155_v58 = vsel %vm84_vm3, %v153_v56, %v154_v57 }
  0x21   :  { %v157_v59 = vadd.f32 %v155_v58, %v93_v55 }
  0x23   :  { %158 = vst.msk [vmem:[%s270_s2] sm:$0xf] %vm193_vm0, %v157_v59 }

// kernel: _lambda_.20
= control target key start
LH: loop header
LB: loop body
LE: loop exit
PB: predicated region body
PF: predicated region fallthrough
CT: control target
= control target key end

     0   :  { %s432_s1 = inlined_call_operand.vmem [shape: f32[1,512], index: 1, kind: input, shape index: {}]   ;;  %s433_s2 = inlined_call_operand.vmem [shape: f32[1,512], index: 2, kind: input, shape index: {}]   ;;  %s434_s0 = inlined_call_operand.vmem [shape: f32[32,512], index: 0, kind: input, shape index: {}]   ;;  %s435_s4 = inlined_call_operand.vmem [shape: f32[1,512], index: 4, kind: input, shape index: {}]   ;;  %s436_s3 = inlined_call_operand.vmem [shape: f32[1,512], index: 3, kind: input, shape index: {}]   ;;  %s437_s5 = inlined_call_operand.vmem [shape: f32[32,512], index: 5, kind: output, shape index: {}]  }
   0x1   :  { %v20_v0 = vld [vmem:[%s432_s1] sm:$0xf]  ;;  %v40_v17 = vld [vmem:[%s434_s0 + $0x8] sm:$0xff]  ;;  %v41_v18 = vld [vmem:[%s434_s0 + $0x10] sm:$0xff] }
   0x2   :  { %v22_v1 = vld [vmem:[%s433_s2] sm:$0xf]  ;;  %v21_v2 = vmul.f32 0.03125, %v20_v0  ;;  %v42_v20 = vld [vmem:[%s434_s0 + $0x18] sm:$0xff]  ;;  %v44_v24 = vld [vmem:[%s434_s0 + $0x28] sm:$0xff] }
   0x3   :  { %v23_v3 = vmul.f32 0.03125, %v22_v1  ;;  %v39_v11 = vld [vmem:[%s434_s0] sm:$0xff]  ;;  %v45_v28 = vld [vmem:[%s434_s0 + $0x30] sm:$0xff]  ;;  %v46_v29 = vld [vmem:[%s434_s0 + $0x38] sm:$0xff] }
   0x4   :  { %v24_v4 = vmul.f32 %v21_v2, %v21_v2  ;;  %v240_v12 = vperm.slane %v21_v2, 0  ;;  %v105_v13 = vld [vmem:[%s435_s4] sm:$0xf]  ;;  %v245_v14 = vperm.slane %v21_v2, 1  ;;  %v256_v19 = vperm.slane %v21_v2, 2  ;;  %v297_v35 = vld [vmem:[%s434_s0 + $0x48] sm:$0xff] }
   0x5   :  { %v37_v16 = vld [vmem:[%s436_s3] sm:$0xf]  ;;  %v261_v21 = vperm.slane %v21_v2, 3  ;;  %v273_v26 = vperm.slane %v105_v13, 0  ;;  %v275_v27 = vperm.slane %v105_v13, 1  ;;  %v290_v33 = vperm.slane %v105_v13, 2 }
   0x6   :  { %v25_v5 = vsub.f32 %v23_v3, %v24_v4  ;;  %v43_v23 = vld [vmem:[%s434_s0 + $0x20] sm:$0xff]  ;;  %v64_v31 = vsub.f32 %v39_v11, %v240_v12  ;;  %v65_v32 = vsub.f32 %v40_v17, %v245_v14  ;;  %v292_v34 = vperm.slane %v105_v13, 3  ;;  %v302_v36 = vld [vmem:[%s434_s0 + $0x50] sm:$0xff]  ;;  %v307_v37 = vld [vmem:[%s434_s0 + $0x58] sm:$0xff] }
   0x7   :  { %v286_v30 = vld [vmem:[%s434_s0 + $0x40] sm:$0xff]  ;;  %v66_v39 = vsub.f32 %v41_v18, %v256_v19  ;;  %v67_v40 = vsub.f32 %v42_v20, %v261_v21  ;;  %v68_v41 = vsub.f32 %v43_v23, %v240_v12  ;;  %v69_v44 = vsub.f32 %v44_v24, %v245_v14  ;;  %v325_v47 = vld [vmem:[%s434_s0 + $0x68] sm:$0xff]  ;;  %v330_v48 = vld [vmem:[%s434_s0 + $0x70] sm:$0xff] }
   0x8   :  { %v26_v6 = vadd.f32 1e-05, %v25_v5  ;;  %v317_v42 = vld [vmem:[%s434_s0 + $0x60] sm:$0xff]  ;;  %v70_v45 = vsub.f32 %v45_v28, %v256_v19  ;;  %v71_v46 = vsub.f32 %v46_v29, %v261_v21  ;;  %v335_v49 = vld [vmem:[%s434_s0 + $0x78] sm:$0xff]  ;;  %v72_v50 = vsub.f32 %v286_v30, %v240_v12 }
   0x9   :  { %v73_v51 = vsub.f32 %v297_v35, %v245_v14  ;;  %v74_v52 = vsub.f32 %v302_v36, %v256_v19  ;;  %v75_v53 = vsub.f32 %v307_v37, %v261_v21  ;;  %v76_v58 = vsub.f32 %v317_v42, %v240_v12 }
   0xa   :  { %199 = vrsqrt.f32 %v26_v6  ;;  %vm33_vm0 = vweird.f32 %v26_v6  ;;  %v77_v59 = vsub.f32 %v325_v47, %v245_v14  ;;  %v78_v60 = vsub.f32 %v330_v48, %v256_v19 }
   0xb   :  { %v79_v61 = vsub.f32 %v335_v49, %v261_v21 }
  0x10   :  { %v200_v7 = vpop.eup %199 }
  0x11   :  { %v28_v8 = vmul.f32 %v200_v7, %v26_v6  ;;  %vm34_vm1 = vweird.f32 %v200_v7 }
  0x12   :  { %vm263_vm2 = vmor %vm33_vm0, %vm34_vm1 }
  0x13   :  { %v29_v9 = vmul.f32 %v200_v7, %v28_v8 }
  0x15   :  { %v30_v10 = vmul.f32 0.5, %v29_v9 }
  0x17   :  { %v31_v15 = vsub.f32 1.5, %v30_v10 }
  0x19   :  { %v32_v25 = vmul.f32 %v200_v7, %v31_v15 }
  0x1b   :  { %v36_v38 = vsel %vm263_vm2, %v200_v7, %v32_v25 }
  0x1c   :  { %v38_v43 = vmul.f32 %v37_v16, %v36_v38 }
  0x1e   :  { %v81_v54 = vperm.slane %v38_v43, 0  ;;  %v82_v55 = vperm.slane %v38_v43, 1  ;;  %v345_v56 = vperm.slane %v38_v43, 2  ;;  %v347_v57 = vperm.slane %v38_v43, 3 }
  0x20   :  { %v89_v62 = vmul.f32 %v81_v54, %v64_v31  ;;  %v90_v63 = vmul.f32 %v82_v55, %v65_v32  ;;  %v91_v0 = vmul.f32 %v345_v56, %v66_v39  ;;  %v92_v1 = vmul.f32 %v347_v57, %v67_v40 }
  0x21   :  { %v93_v2 = vmul.f32 %v81_v54, %v68_v41  ;;  %v94_v3 = vmul.f32 %v82_v55, %v69_v44  ;;  %v95_v4 = vmul.f32 %v345_v56, %v70_v45  ;;  %v96_v5 = vmul.f32 %v347_v57, %v71_v46 }
  0x22   :  { %v115_v6 = vadd.f32 %v273_v26, %v89_v62  ;;  %v116_v7 = vadd.f32 %v275_v27, %v90_v63  ;;  %v117_v8 = vadd.f32 %v290_v33, %v91_v0  ;;  %v118_v9 = vadd.f32 %v292_v34, %v92_v1 }
  0x23   :  { %v119_v10 = vadd.f32 %v273_v26, %v93_v2  ;;  %v120_v11 = vadd.f32 %v275_v27, %v94_v3  ;;  %v121_v12 = vadd.f32 %v290_v33, %v95_v4  ;;  %v122_v13 = vadd.f32 %v292_v34, %v96_v5 }
  0x24   :  { %vm131_vm3 = vcmp.ge.f32.partialorder %v115_v6, 0.0  ;;  %v147_v14 = vmul.f32 0.2, %v115_v6  ;;  %vm132_vm4 = vcmp.ge.f32.partialorder %v116_v7, 0.0  ;;  %v148_v15 = vmul.f32 0.2, %v116_v7 }
  0x25   :  { %vm133_vm5 = vcmp.ge.f32.partialorder %v117_v8, 0.0  ;;  %v149_v16 = vmul.f32 0.2, %v117_v8  ;;  %vm134_vm6 = vcmp.ge.f32.partialorder %v118_v9, 0.0  ;;  %v150_v17 = vmul.f32 0.2, %v118_v9 }
  0x26   :  { %v163_v18 = vsel %vm131_vm3, %v115_v6, %v147_v14  ;;  %v164_v19 = vsel %vm132_vm4, %v116_v7, %v148_v15  ;;  %vm135_vm7 = vcmp.ge.f32.partialorder %v119_v10, 0.0  ;;  %v151_v20 = vmul.f32 0.2, %v119_v10 }
  0x27   :  { %179 = vst [vmem:[%s437_s5] sm:$0xff] %v163_v18  ;;  %v165_v22 = vsel %vm133_vm5, %v117_v8, %v149_v16  ;;  %v166_v23 = vsel %vm134_vm6, %v118_v9, %v150_v17  ;;  %vm136_vm8 = vcmp.ge.f32.partialorder %v120_v11, 0.0  ;;  %v152_v24 = vmul.f32 0.2, %v120_v11 }
  0x28   :  { %180 = vst [vmem:[%s437_s5 + $0x8] sm:$0xff] %v164_v19  ;;  %v167_v25 = vsel %vm135_vm7, %v119_v10, %v151_v20  ;;  %vm137_vm9 = vcmp.ge.f32.partialorder %v121_v12, 0.0  ;;  %v153_v28 = vmul.f32 0.2, %v121_v12  ;;  %vm138_vm10 = vcmp.ge.f32.partialorder %v122_v13, 0.0 }
  0x29   :  { %181 = vst [vmem:[%s437_s5 + $0x10] sm:$0xff] %v165_v22  ;;  %v168_v29 = vsel %vm136_vm8, %v120_v11, %v152_v24  ;;  %v154_v30 = vmul.f32 0.2, %v122_v13  ;;  %v97_v31 = vmul.f32 %v81_v54, %v72_v50  ;;  %v98_v32 = vmul.f32 %v82_v55, %v73_v51 }
  0x2a   :  { %182 = vst [vmem:[%s437_s5 + $0x18] sm:$0xff] %v166_v23  ;;  %v169_v35 = vsel %vm137_vm9, %v121_v12, %v153_v28  ;;  %v99_v36 = vmul.f32 %v345_v56, %v74_v52  ;;  %v100_v37 = vmul.f32 %v347_v57, %v75_v53  ;;  %v101_v38 = vmul.f32 %v81_v54, %v76_v58 }
  0x2b   :  { %183 = vst [vmem:[%s437_s5 + $0x20] sm:$0xff] %v167_v25  ;;  %v170_v39 = vsel %vm138_vm10, %v122_v13, %v154_v30  ;;  %v123_v40 = vadd.f32 %v273_v26, %v97_v31  ;;  %v124_v41 = vadd.f32 %v275_v27, %v98_v32  ;;  %v102_v42 = vmul.f32 %v82_v55, %v77_v59 }
  0x2c   :  { %184 = vst [vmem:[%s437_s5 + $0x28] sm:$0xff] %v168_v29  ;;  %v125_v43 = vadd.f32 %v290_v33, %v99_v36  ;;  %v126_v44 = vadd.f32 %v292_v34, %v100_v37  ;;  %v127_v45 = vadd.f32 %v273_v26, %v101_v38  ;;  %v103_v46 = vmul.f32 %v345_v56, %v78_v60 }
  0x2d   :  { %185 = vst [vmem:[%s437_s5 + $0x30] sm:$0xff] %v169_v35  ;;  %vm139_vm11 = vcmp.ge.f32.partialorder %v123_v40, 0.0  ;;  %v155_v47 = vmul.f32 0.2, %v123_v40  ;;  %vm140_vm12 = vcmp.ge.f32.partialorder %v124_v41, 0.0  ;;  %v128_v48 = vadd.f32 %v275_v27, %v102_v42 }
  0x2e   :  { %186 = vst [vmem:[%s437_s5 + $0x38] sm:$0xff] %v170_v39  ;;  %v156_v50 = vmul.f32 0.2, %v124_v41  ;;  %vm141_vm13 = vcmp.ge.f32.partialorder %v125_v43, 0.0  ;;  %v157_v51 = vmul.f32 0.2, %v125_v43  ;;  %v129_v26 = vadd.f32 %v290_v33, %v103_v46 }
  0x2f   :  { %v171_v52 = vsel %vm139_vm11, %v123_v40, %v155_v47  ;;  %vm142_vm14 = vcmp.ge.f32.partialorder %v126_v44, 0.0  ;;  %v158_v53 = vmul.f32 0.2, %v126_v44  ;;  %vm143_vm15 = vcmp.ge.f32.partialorder %v127_v45, 0.0 }
  0x30   :  { %187 = vst [vmem:[%s437_s5 + $0x40] sm:$0xff] %v171_v52  ;;  %v172_v54 = vsel %vm140_vm12, %v124_v41, %v156_v50  ;;  %v173_v55 = vsel %vm141_vm13, %v125_v43, %v157_v51  ;;  %v159_v27 = vmul.f32 0.2, %v127_v45  ;;  %vm144_vm0 = vcmp.ge.f32.partialorder %v128_v48, 0.0 }
  0x31   :  { %188 = vst [vmem:[%s437_s5 + $0x48] sm:$0xff] %v172_v54  ;;  %v174_v56 = vsel %vm142_vm14, %v126_v44, %v158_v53  ;;  %v160_v58 = vmul.f32 0.2, %v128_v48  ;;  %vm145_vm1 = vcmp.ge.f32.partialorder %v129_v26, 0.0  ;;  %v161_v33 = vmul.f32 0.2, %v129_v26 }
  0x32   :  { %189 = vst [vmem:[%s437_s5 + $0x50] sm:$0xff] %v173_v55  ;;  %v175_v59 = vsel %vm143_vm15, %v127_v45, %v159_v27  ;;  %v104_v60 = vmul.f32 %v347_v57, %v79_v61 }
  0x33   :  { %190 = vst [vmem:[%s437_s5 + $0x58] sm:$0xff] %v174_v56  ;;  %v176_v62 = vsel %vm144_vm0, %v128_v48, %v160_v58  ;;  %v177_v63 = vsel %vm145_vm1, %v129_v26, %v161_v33 }
  0x34   :  { %191 = vst [vmem:[%s437_s5 + $0x60] sm:$0xff] %v175_v59  ;;  %v130_v0 = vadd.f32 %v292_v34, %v104_v60 }
  0x35   :  { %192 = vst [vmem:[%s437_s5 + $0x68] sm:$0xff] %v176_v62 }
  0x36   :  { %193 = vst [vmem:[%s437_s5 + $0x70] sm:$0xff] %v177_v63  ;;  %vm146_vm2 = vcmp.ge.f32.partialorder %v130_v0, 0.0  ;;  %v162_v21 = vmul.f32 0.2, %v130_v0 }
  0x38   :  { %v178_v49 = vsel %vm146_vm2, %v130_v0, %v162_v21 }
  0x39   :  { %194 = vst [vmem:[%s437_s5 + $0x78] sm:$0xff] %v178_v49 }

// kernel: _lambda_.18
= control target key start
LH: loop header
LB: loop body
LE: loop exit
PB: predicated region body
PF: predicated region fallthrough
CT: control target
= control target key end

     0   :  { %s2483_s0 = inlined_call_operand.vmem [shape: bf16[32,4096], index: 0, kind: input, shape index: {}]   ;;  %s2484_s1 = inlined_call_operand.vmem [shape: bf16[4096,512], index: 1, kind: input, shape index: {}]   ;;  %s2485_s2 = inlined_call_operand.vmem [shape: f32[1,512], index: 2, kind: input, shape index: {}]   ;;  %s2486_s3 = inlined_call_operand.vmem [shape: f32[32,512], index: 3, kind: output, shape index: {}]  }
   0x1   :  { %2488 = sst [smem:[#allocation6_spill]] %s2483_s0 }
   0x2   :  { %2489 = sst [smem:[#allocation7_spill]] %s2484_s1 }
   0x3   :  { %s1953_s12 = smov 0   ;;  %s1955_s13 = smov 0  }
   0x4   :  { %s1957_s14 = smov 0   ;;  %s1959_s15 = smov 0  }
   0x5   :  { %s1961_s16 = smov 0   ;;  %s1963_s17 = smov 0  }
   0x6   :  { %s1965_s18 = smov 0   ;;  %s1967_s19 = smov 0  }
   0x7   :  { %s1969_s20 = smov 0   ;;  %s1971_s21 = smov 0  }
   0x8   :  { %s1973_s22 = smov 0  }
   0x9 LB: > { %s1368_s23 = sadd.s32 4294967295, %s1930_s22   ;;  %s25_s24 = sadd.s32 1, %s1922_s20  ;;  %s1930_s22 = sphi %s1973_s22, %s13_s22   ;;  %s1926_s21 = sphi %s1971_s21, %s2506_s21   ;;  %s1922_s20 = sphi %s1969_s20, %s2505_s20   ;;  %s1918_s19 = sphi %s1967_s19, %s2504_s19   ;;  %s1914_s18 = sphi %s1965_s18, %s2503_s18   ;;  %s1910_s17 = sphi %s1963_s17, %s2502_s17   ;;  %s1906_s16 = sphi %s1961_s16, %s2501_s16   ;;  %s1902_s15 = sphi %s1959_s15, %s2500_s15   ;;  %s1898_s14 = sphi %s1957_s14, %s2499_s14   ;;  %s1894_s13 = sphi %s1955_s13, %s2498_s13   ;;  %s1890_s12 = sphi %s1953_s12, %s2497_s12  }
   0xa   : > { %p26_p0 = scmp.ge.s32.totalorder %s25_s24, 8  ;;  %s28_s25 = sadd.s32 1, %s1926_s21 }
   0xb   : > { %s41_s26 = sadd.s32 1, %s1910_s17  ;;  %p48_p1 = scmp.ne.s32.totalorder %s1910_s17, %s1906_s16 }
   0xc   : > { %s2508_s24 = smov (%p26_p0, %s25_s24), 0  ;;  %s2510_s25 = smov (!%p26_p0, %s28_s25), %s1926_s21 }
   0xd   : > { %s37_s27 = ssub.s32 %s1922_s20, %s2508_s24  ;;  %p49_p2 = scmp.eq.s32.totalorder %s1930_s22, 0 }
   0xe   : > { %p30_p3 = scmp.ge.s32.totalorder %s2510_s25, 2  ;;  %p39_p4 = scmp.eq.s32.totalorder %s37_s27, 0 }
   0xf   : > { %p2020_p5 = por %p49_p2, %p48_p1  ;;  %s69_s29 = sadd.s32 1, %s1902_s15 }
  0x10   : > { %s2512_s25 = smov (%p30_p3, %s2510_s25), 0  ;;  %p76_p6 = scmp.ne.s32.totalorder %s1902_s15, %s1898_s14 }
  0x11   : > { %2491 = sst [smem:[#allocation5_spill]] %s2512_s25  ;;  %s65_s4 = ssub.s32 %s1926_s21, %s2512_s25 }
  0x12   : > { %s2028_s30 = scalar_select %p39_p4, %s1910_s17, %s41_s26  }
  0x13   : > { %s66_s5 = sor.u32 %s65_s4, %s37_s27  ;;  %p121_p7 = scmp.eq.s32.totalorder %s65_s4, 0 }
  0x14   : > { %p67_p8 = scmp.eq.s32.totalorder %s66_s5, 0  ;;  %p2034_p9 = por %p76_p6, %p49_p2 }
  0x15   : > { %s123_s7 = sadd.s32 1, %s1894_s13  ;;  %p133_p10 = scmp.ne.s32.totalorder %s1894_s13, %s1890_s12 }
  0x16   : > { %s2042_s8 = scalar_select %p67_p8, %s1902_s15, %s69_s29  }
  0x17   : > { %s2045_s9 = scalar_select %p121_p7, %s1894_s13, %s123_s7  }
  0x18   : > { %p134_p11 = scmp.eq.s32.totalorder %s1368_s23, 15  ;;  %p1371_p13 = scmp.ge.s32.totalorder %s1930_s22, 16 }
  0x1a   : > { %p2047_p12 = por %p134_p11, %p133_p10  ;;  %156 = sbr.rel (%p1371_p13) target bundleno = 123 (0x7b), region = 16 }
  0x1f   : > { %159 = sbr.rel (!%p2020_p5) target bundleno = 49 (0x31), region = 20  ;;  %s161_s11 = sand.u32 (%p2020_p5), 1, %s1910_s17  }
  0x20   : > { %s1680_s26 = sshll.u32 (%p2020_p5), %s1922_s20, 4  ;;  %s1372_s27 = sshll.u32 (%p2020_p5), %s161_s11, 6 }
  0x21   : > { %s2494_s0 = sld [smem:[#allocation6_spill]] (%p2020_p5)  ;;  %s163_s23 = scalar_lea.vmem (%p2020_p5), [#allocation2], %s1372_s27 }
  0x27   : > { %s169_s5 = scalar_lea.vmem %s2494_s0, %s1680_s26 }
  0x28   : > { %v182_v0 = vld [vmem:[%s169_s5] sm:$0xff]  ;;  %v184_v1 = vld [vmem:[%s169_s5 + $0x8] sm:$0xff] }
  0x29   : > { %v186_v2 = vld [vmem:[%s169_s5 + $0x80] sm:$0xff]  ;;  %183 = vst [vmem:[%s163_s23] sm:$0xff] %v182_v0  ;;  %v188_v3 = vld [vmem:[%s169_s5 + $0x88] sm:$0xff] }
  0x2a   : > { %185 = vst [vmem:[%s163_s23 + $0x8] sm:$0xff] %v184_v1  ;;  %v190_v4 = vld [vmem:[%s169_s5 + $0x100] sm:$0xff]  ;;  %v192_v5 = vld [vmem:[%s169_s5 + $0x108] sm:$0xff] }
  0x2b   : > { %187 = vst [vmem:[%s163_s23 + $0x10] sm:$0xff] %v186_v2  ;;  %v194_v6 = vld [vmem:[%s169_s5 + $0x180] sm:$0xff]  ;;  %v196_v7 = vld [vmem:[%s169_s5 + $0x188] sm:$0xff] }
  0x2c   : > { %189 = vst [vmem:[%s163_s23 + $0x18] sm:$0xff] %v188_v3 }
  0x2d   : > { %191 = vst [vmem:[%s163_s23 + $0x20] sm:$0xff] %v190_v4 }
  0x2e   : > { %193 = vst [vmem:[%s163_s23 + $0x28] sm:$0xff] %v192_v5 }
  0x2f   : > { %195 = vst [vmem:[%s163_s23 + $0x30] sm:$0xff] %v194_v6 }
  0x30   : > { %197 = vst [vmem:[%s163_s23 + $0x38] sm:$0xff] %v196_v7 }
  0x31 PF: > { %203 = sbr.rel (!%p2034_p9) target bundleno = 123 (0x7b), region = 43  ;;  %s205_s28 = sand.u32 (%p2034_p9), 1, %s1902_s15  }
  0x32   : > { %s1377_s7 = sshll.u32 (%p2034_p9), %s1926_s21, 1  ;;  %s1375_s11 = sshll.u32 (%p2034_p9), %s205_s28, 9 }
  0x33   : > { %s1681_s26 = sshll.u32 (%p2034_p9), %s1922_s20, 8  ;;  %s2495_s1 = sld [smem:[#allocation7_spill]] (%p2034_p9) }
  0x34   : > { %s211_s27 = sadd.s32 (%p2034_p9), %s1681_s26, %s1377_s7  ;;  %s2072_s6 = scalar_lea.vmem (%p2034_p9), [#allocation3], %s1375_s11 }
  0x35   : > { %s1379_s29 = sshll.u32 (%p2034_p9), %s211_s27, 2 }
  0x39   : > { %s2067_s5 = scalar_lea.vmem %s2495_s1, %s1379_s29 }
  0x3a   : > { %v368_v8 = vld [vmem:[%s2067_s5] sm:$0xff]  ;;  %v370_v9 = vld [vmem:[%s2067_s5 + $0x10] sm:$0xff] }
  0x3b   : > { %v372_v10 = vld [vmem:[%s2067_s5 + $0x20] sm:$0xff]  ;;  %369 = vst [vmem:[%s2072_s6] sm:$0xff] %v368_v8  ;;  %v374_v11 = vld [vmem:[%s2067_s5 + $0x30] sm:$0xff] }
  0x3c   : > { %371 = vst [vmem:[%s2072_s6 + $0x8] sm:$0xff] %v370_v9  ;;  %v376_v12 = vld [vmem:[%s2067_s5 + $0x40] sm:$0xff]  ;;  %v378_v13 = vld [vmem:[%s2067_s5 + $0x50] sm:$0xff] }
  0x3d   : > { %373 = vst [vmem:[%s2072_s6 + $0x10] sm:$0xff] %v372_v10  ;;  %v380_v14 = vld [vmem:[%s2067_s5 + $0x60] sm:$0xff]  ;;  %v382_v15 = vld [vmem:[%s2067_s5 + $0x70] sm:$0xff] }
  0x3e   : > { %375 = vst [vmem:[%s2072_s6 + $0x18] sm:$0xff] %v374_v11  ;;  %v384_v16 = vld [vmem:[%s2067_s5 + $0x80] sm:$0xff]  ;;  %v386_v17 = vld [vmem:[%s2067_s5 + $0x90] sm:$0xff] }
  0x3f   : > { %377 = vst [vmem:[%s2072_s6 + $0x20] sm:$0xff] %v376_v12  ;;  %v388_v18 = vld [vmem:[%s2067_s5 + $0xa0] sm:$0xff]  ;;  %v390_v19 = vld [vmem:[%s2067_s5 + $0xb0] sm:$0xff] }
  0x40   : > { %379 = vst [vmem:[%s2072_s6 + $0x28] sm:$0xff] %v378_v13  ;;  %v392_v20 = vld [vmem:[%s2067_s5 + $0xc0] sm:$0xff]  ;;  %v394_v21 = vld [vmem:[%s2067_s5 + $0xd0] sm:$0xff] }
  0x41   : > { %381 = vst [vmem:[%s2072_s6 + $0x30] sm:$0xff] %v380_v14  ;;  %v396_v22 = vld [vmem:[%s2067_s5 + $0xe0] sm:$0xff]  ;;  %v398_v23 = vld [vmem:[%s2067_s5 + $0xf0] sm:$0xff] }
  0x42   : > { %383 = vst [vmem:[%s2072_s6 + $0x38] sm:$0xff] %v382_v15  ;;  %v400_v24 = vld [vmem:[%s2067_s5 + $0x100] sm:$0xff]  ;;  %v402_v25 = vld [vmem:[%s2067_s5 + $0x110] sm:$0xff] }
  0x43   : > { %385 = vst [vmem:[%s2072_s6 + $0x40] sm:$0xff] %v384_v16  ;;  %v404_v26 = vld [vmem:[%s2067_s5 + $0x120] sm:$0xff]  ;;  %v406_v27 = vld [vmem:[%s2067_s5 + $0x130] sm:$0xff] }
  0x44   : > { %387 = vst [vmem:[%s2072_s6 + $0x48] sm:$0xff] %v386_v17  ;;  %v408_v28 = vld [vmem:[%s2067_s5 + $0x140] sm:$0xff]  ;;  %v410_v29 = vld [vmem:[%s2067_s5 + $0x150] sm:$0xff] }
  0x45   : > { %389 = vst [vmem:[%s2072_s6 + $0x50] sm:$0xff] %v388_v18  ;;  %v412_v30 = vld [vmem:[%s2067_s5 + $0x160] sm:$0xff]  ;;  %v414_v31 = vld [vmem:[%s2067_s5 + $0x170] sm:$0xff] }
  0x46   : > { %391 = vst [vmem:[%s2072_s6 + $0x58] sm:$0xff] %v390_v19  ;;  %v416_v32 = vld [vmem:[%s2067_s5 + $0x180] sm:$0xff]  ;;  %v418_v33 = vld [vmem:[%s2067_s5 + $0x190] sm:$0xff] }
  0x47   : > { %393 = vst [vmem:[%s2072_s6 + $0x60] sm:$0xff] %v392_v20  ;;  %v420_v34 = vld [vmem:[%s2067_s5 + $0x1a0] sm:$0xff]  ;;  %v422_v35 = vld [vmem:[%s2067_s5 + $0x1b0] sm:$0xff] }
  0x48   : > { %395 = vst [vmem:[%s2072_s6 + $0x68] sm:$0xff] %v394_v21  ;;  %v424_v36 = vld [vmem:[%s2067_s5 + $0x1c0] sm:$0xff]  ;;  %v426_v37 = vld [vmem:[%s2067_s5 + $0x1d0] sm:$0xff] }
  0x49   : > { %397 = vst [vmem:[%s2072_s6 + $0x70] sm:$0xff] %v396_v22  ;;  %v428_v38 = vld [vmem:[%s2067_s5 + $0x1e0] sm:$0xff]  ;;  %v430_v39 = vld [vmem:[%s2067_s5 + $0x1f0] sm:$0xff] }
  0x4a   : > { %399 = vst [vmem:[%s2072_s6 + $0x78] sm:$0xff] %v398_v23  ;;  %v432_v40 = vld [vmem:[%s2067_s5 + $0x200] sm:$0xff]  ;;  %v434_v41 = vld [vmem:[%s2067_s5 + $0x210] sm:$0xff] }
  0x4b   : > { %401 = vst [vmem:[%s2072_s6 + $0x80] sm:$0xff] %v400_v24  ;;  %v436_v42 = vld [vmem:[%s2067_s5 + $0x220] sm:$0xff]  ;;  %v438_v43 = vld [vmem:[%s2067_s5 + $0x230] sm:$0xff] }
  0x4c   : > { %403 = vst [vmem:[%s2072_s6 + $0x88] sm:$0xff] %v402_v25  ;;  %v440_v44 = vld [vmem:[%s2067_s5 + $0x240] sm:$0xff]  ;;  %v442_v45 = vld [vmem:[%s2067_s5 + $0x250] sm:$0xff] }
  0x4d   : > { %405 = vst [vmem:[%s2072_s6 + $0x90] sm:$0xff] %v404_v26  ;;  %v444_v46 = vld [vmem:[%s2067_s5 + $0x260] sm:$0xff]  ;;  %v446_v47 = vld [vmem:[%s2067_s5 + $0x270] sm:$0xff] }
  0x4e   : > { %407 = vst [vmem:[%s2072_s6 + $0x98] sm:$0xff] %v406_v27  ;;  %v448_v48 = vld [vmem:[%s2067_s5 + $0x280] sm:$0xff]  ;;  %v450_v49 = vld [vmem:[%s2067_s5 + $0x290] sm:$0xff] }
  0x4f   : > { %409 = vst [vmem:[%s2072_s6 + $0xa0] sm:$0xff] %v408_v28  ;;  %v452_v50 = vld [vmem:[%s2067_s5 + $0x2a0] sm:$0xff]  ;;  %v454_v51 = vld [vmem:[%s2067_s5 + $0x2b0] sm:$0xff] }
  0x50   : > { %411 = vst [vmem:[%s2072_s6 + $0xa8] sm:$0xff] %v410_v29  ;;  %v456_v52 = vld [vmem:[%s2067_s5 + $0x2c0] sm:$0xff]  ;;  %v458_v53 = vld [vmem:[%s2067_s5 + $0x2d0] sm:$0xff] }
  0x51   : > { %413 = vst [vmem:[%s2072_s6 + $0xb0] sm:$0xff] %v412_v30  ;;  %v460_v54 = vld [vmem:[%s2067_s5 + $0x2e0] sm:$0xff]  ;;  %v462_v55 = vld [vmem:[%s2067_s5 + $0x2f0] sm:$0xff] }
  0x52   : > { %415 = vst [vmem:[%s2072_s6 + $0xb8] sm:$0xff] %v414_v31  ;;  %v464_v56 = vld [vmem:[%s2067_s5 + $0x300] sm:$0xff]  ;;  %v466_v57 = vld [vmem:[%s2067_s5 + $0x310] sm:$0xff] }
  0x53   : > { %417 = vst [vmem:[%s2072_s6 + $0xc0] sm:$0xff] %v416_v32  ;;  %v468_v58 = vld [vmem:[%s2067_s5 + $0x320] sm:$0xff]  ;;  %v470_v59 = vld [vmem:[%s2067_s5 + $0x330] sm:$0xff] }
  0x54   : > { %419 = vst [vmem:[%s2072_s6 + $0xc8] sm:$0xff] %v418_v33  ;;  %v472_v60 = vld [vmem:[%s2067_s5 + $0x340] sm:$0xff]  ;;  %v474_v61 = vld [vmem:[%s2067_s5 + $0x350] sm:$0xff] }
  0x55   : > { %421 = vst [vmem:[%s2072_s6 + $0xd0] sm:$0xff] %v420_v34  ;;  %v476_v62 = vld [vmem:[%s2067_s5 + $0x360] sm:$0xff]  ;;  %v478_v63 = vld [vmem:[%s2067_s5 + $0x370] sm:$0xff] }
  0x56   : > { %423 = vst [vmem:[%s2072_s6 + $0xd8] sm:$0xff] %v422_v35  ;;  %v480_v0 = vld [vmem:[%s2067_s5 + $0x380] sm:$0xff]  ;;  %v482_v1 = vld [vmem:[%s2067_s5 + $0x390] sm:$0xff] }
  0x57   : > { %425 = vst [vmem:[%s2072_s6 + $0xe0] sm:$0xff] %v424_v36  ;;  %v484_v2 = vld [vmem:[%s2067_s5 + $0x3a0] sm:$0xff]  ;;  %v486_v3 = vld [vmem:[%s2067_s5 + $0x3b0] sm:$0xff] }
  0x58   : > { %427 = vst [vmem:[%s2072_s6 + $0xe8] sm:$0xff] %v426_v37  ;;  %v488_v4 = vld [vmem:[%s2067_s5 + $0x3c0] sm:$0xff]  ;;  %v490_v5 = vld [vmem:[%s2067_s5 + $0x3d0] sm:$0xff] }
  0x59   : > { %429 = vst [vmem:[%s2072_s6 + $0xf0] sm:$0xff] %v428_v38  ;;  %v492_v6 = vld [vmem:[%s2067_s5 + $0x3e0] sm:$0xff]  ;;  %v494_v7 = vld [vmem:[%s2067_s5 + $0x3f0] sm:$0xff] }
  0x5a   : > { %431 = vst [vmem:[%s2072_s6 + $0xf8] sm:$0xff] %v430_v39 }
  0x5b   : > { %433 = vst [vmem:[%s2072_s6 + $0x100] sm:$0xff] %v432_v40 }
  0x5c   : > { %435 = vst [vmem:[%s2072_s6 + $0x108] sm:$0xff] %v434_v41 }
  0x5d   : > { %437 = vst [vmem:[%s2072_s6 + $0x110] sm:$0xff] %v436_v42 }
  0x5e   : > { %439 = vst [vmem:[%s2072_s6 + $0x118] sm:$0xff] %v438_v43 }
  0x5f   : > { %441 = vst [vmem:[%s2072_s6 + $0x120] sm:$0xff] %v440_v44 }
  0x60   : > { %443 = vst [vmem:[%s2072_s6 + $0x128] sm:$0xff] %v442_v45 }
  0x61   : > { %445 = vst [vmem:[%s2072_s6 + $0x130] sm:$0xff] %v444_v46 }
  0x62   : > { %447 = vst [vmem:[%s2072_s6 + $0x138] sm:$0xff] %v446_v47 }
  0x63   : > { %449 = vst [vmem:[%s2072_s6 + $0x140] sm:$0xff] %v448_v48 }
  0x64   : > { %451 = vst [vmem:[%s2072_s6 + $0x148] sm:$0xff] %v450_v49 }
  0x65   : > { %453 = vst [vmem:[%s2072_s6 + $0x150] sm:$0xff] %v452_v50 }
  0x66   : > { %455 = vst [vmem:[%s2072_s6 + $0x158] sm:$0xff] %v454_v51 }
  0x67   : > { %457 = vst [vmem:[%s2072_s6 + $0x160] sm:$0xff] %v456_v52 }
  0x68   : > { %459 = vst [vmem:[%s2072_s6 + $0x168] sm:$0xff] %v458_v53 }
  0x69   : > { %461 = vst [vmem:[%s2072_s6 + $0x170] sm:$0xff] %v460_v54 }
  0x6a   : > { %463 = vst [vmem:[%s2072_s6 + $0x178] sm:$0xff] %v462_v55 }
  0x6b   : > { %465 = vst [vmem:[%s2072_s6 + $0x180] sm:$0xff] %v464_v56 }
  0x6c   : > { %467 = vst [vmem:[%s2072_s6 + $0x188] sm:$0xff] %v466_v57 }
  0x6d   : > { %469 = vst [vmem:[%s2072_s6 + $0x190] sm:$0xff] %v468_v58 }
  0x6e   : > { %471 = vst [vmem:[%s2072_s6 + $0x198] sm:$0xff] %v470_v59 }
  0x6f   : > { %473 = vst [vmem:[%s2072_s6 + $0x1a0] sm:$0xff] %v472_v60 }
  0x70   : > { %475 = vst [vmem:[%s2072_s6 + $0x1a8] sm:$0xff] %v474_v61 }
  0x71   : > { %477 = vst [vmem:[%s2072_s6 + $0x1b0] sm:$0xff] %v476_v62 }
  0x72   : > { %479 = vst [vmem:[%s2072_s6 + $0x1b8] sm:$0xff] %v478_v63 }
  0x73   : > { %481 = vst [vmem:[%s2072_s6 + $0x1c0] sm:$0xff] %v480_v0 }
  0x74   : > { %483 = vst [vmem:[%s2072_s6 + $0x1c8] sm:$0xff] %v482_v1 }
  0x75   : > { %485 = vst [vmem:[%s2072_s6 + $0x1d0] sm:$0xff] %v484_v2 }
  0x76   : > { %487 = vst [vmem:[%s2072_s6 + $0x1d8] sm:$0xff] %v486_v3 }
  0x77   : > { %489 = vst [vmem:[%s2072_s6 + $0x1e0] sm:$0xff] %v488_v4 }
  0x78   : > { %491 = vst [vmem:[%s2072_s6 + $0x1e8] sm:$0xff] %v490_v5 }
  0x79   : > { %493 = vst [vmem:[%s2072_s6 + $0x1f0] sm:$0xff] %v492_v6 }
  0x7a   : > { %495 = vst [vmem:[%s2072_s6 + $0x1f8] sm:$0xff] %v494_v7 }
  0x7b PF: > { %p1380_p0 = scmp.ge.s32.totalorder %s1930_s22, 1  ;;  %p508_p1 = scmp.lt.s32.totalorder %s1930_s22, 17 }
  0x7d   : > { %p509_p2 = pnand %p1380_p0, %p508_p1 }
  0x7e   : > { %s515_s0 = sand.u32 (!%p509_p2), 1, %s1906_s16   ;;  %s522_s23 = sand.u32 (!%p509_p2), 1, %s1898_s14  }
  0x7f   : > { %512 = sbr.rel (%p509_p2) target bundleno = 403 (0x193), region = 85  ;;  %s1381_s28 = sshll.u32 (!%p509_p2), %s515_s0, 6 }
  0x80   : > { %s1382_s7 = sshll.u32 (!%p509_p2), %s522_s23, 9  ;;  %s549_s11 = sand.u32 (!%p509_p2), 1, %s1890_s12  }
  0x81   : > { %s1384_s26 = sshll.u32 (!%p509_p2), %s1918_s19, 1  ;;  %s1383_s27 = sshll.u32 (!%p509_p2), %s549_s11, 6 }
  0x82   : > { %p557_p3 = scmp.lt.s32.totalorder (!%p509_p2), %s1384_s26, 3  ;;  %s2211_s6 = scalar_lea.vmem (!%p509_p2), [#allocation2], %s1381_s28 }
  0x83   : > { %s2213_s1 = scalar_lea.vmem (!%p509_p2), [#allocation3], %s1382_s7  ;;  %s2215_s25 = scalar_lea.vmem (!%p509_p2), [#allocation4], %s1383_s27 }
  0x84   : > { %s2514_s26 = smov (!%p557_p3, %s1384_s26), 3  ;;  %p1385_p4 = scmp.ne.s32.totalorder %s1914_s18, 0 }
  0x85   : > { %s559_s5 = scalar_lea.vmem %s2485_s2, %s2514_s26 }
  0x86   : > { %566 = sbr.rel (%p1385_p4) target bundleno = 148 (0x94), region = 97 }
  0x8b   : > { %v1932_v8 = vmov 0.0  }
  0x8c   : > { %567 = vst [vmem:[%s2215_s25] sm:$0xff] %v1932_v8 }
  0x8d   : > { %568 = vst [vmem:[%s2215_s25 + $0x8] sm:$0xff] %v1932_v8 }
  0x8e   : > { %569 = vst [vmem:[%s2215_s25 + $0x10] sm:$0xff] %v1932_v8 }
  0x8f   : > { %570 = vst [vmem:[%s2215_s25 + $0x18] sm:$0xff] %v1932_v8 }
  0x90   : > { %571 = vst [vmem:[%s2215_s25 + $0x20] sm:$0xff] %v1932_v8 }
  0x91   : > { %572 = vst [vmem:[%s2215_s25 + $0x28] sm:$0xff] %v1932_v8 }
  0x92   : > { %573 = vst [vmem:[%s2215_s25 + $0x30] sm:$0xff] %v1932_v8 }
  0x93   : > { %574 = vst [vmem:[%s2215_s25 + $0x38] sm:$0xff] %v1932_v8 }
  0x94 PF: > { %v1476_v9 = vld [vmem:[%s2213_s1 + $0x70] sm:$0xf]  ;;  %v1705_v10 = vld [vmem:[%s2213_s1 + $0x74] sm:$0xf0]  ;;  %v1468_v20 = vld [vmem:[%s2213_s1 + $0x60] sm:$0xf] }
  0x95   : > { %v1540_v11 = vld [vmem:[%s2213_s1 + $0xf0] sm:$0xf]  ;;  %v1477_v12 = vor.u32 %v1705_v10, %v1476_v9  ;;  %v1721_v13 = vld [vmem:[%s2213_s1 + $0xf4] sm:$0xf0]  ;;  %v1703_v22 = vld [vmem:[%s2213_s1 + $0x64] sm:$0xf0] }
  0x96   : > { %v1604_v14 = vld [vmem:[%s2213_s1 + $0x170] sm:$0xf]  ;;  %v1737_v15 = vld [vmem:[%s2213_s1 + $0x174] sm:$0xf0]  ;;  %v1541_v16 = vor.u32 %v1721_v13, %v1540_v11  ;;  %v1532_v23 = vld [vmem:[%s2213_s1 + $0xe0] sm:$0xf]  ;;  %v1469_v25 = vor.u32 %v1703_v22, %v1468_v20 }
  0x97   : > { %v1605_v17 = vor.u32 %v1737_v15, %v1604_v14  ;;  %v1668_v18 = vld [vmem:[%s2213_s1 + $0x1f0] sm:$0xf]  ;;  %v1753_v19 = vld [vmem:[%s2213_s1 + $0x1f4] sm:$0xf0]  ;;  %1015 = vmatpush.bf16.msra.mxu0 %v1477_v12  ;;  %v1719_v24 = vld [vmem:[%s2213_s1 + $0xe4] sm:$0xf0] }
  0x98   : > { %v1669_v21 = vor.u32 %v1753_v19, %v1668_v18  ;;  %1034 = vmatpush.bf16.msra.mxu1 %v1541_v16  ;;  %v1533_v26 = vor.u32 %v1719_v24, %v1532_v23  ;;  %v1596_v27 = vld [vmem:[%s2213_s1 + $0x160] sm:$0xf]  ;;  %v1735_v28 = vld [vmem:[%s2213_s1 + $0x164] sm:$0xf0]  ;;  %v1460_v32 = vld [vmem:[%s2213_s1 + $0x50] sm:$0xf] }
  0x99   : > { %1053 = vmatpush.bf16.msra.mxu2 %v1605_v17  ;;  %v1660_v29 = vld [vmem:[%s2213_s1 + $0x1e0] sm:$0xf]  ;;  %v1597_v30 = vor.u32 %v1735_v28, %v1596_v27  ;;  %v1751_v31 = vld [vmem:[%s2213_s1 + $0x1e4] sm:$0xf0]  ;;  %v1701_v33 = vld [vmem:[%s2213_s1 + $0x54] sm:$0xf0] }
  0x9a   : > { %1072 = vmatpush.bf16.msra.mxu3 %v1669_v21  ;;  %v1661_v34 = vor.u32 %v1751_v31, %v1660_v29  ;;  %v1524_v35 = vld [vmem:[%s2213_s1 + $0xd0] sm:$0xf]  ;;  %v1717_v36 = vld [vmem:[%s2213_s1 + $0xd4] sm:$0xf0]  ;;  %v1461_v38 = vor.u32 %v1701_v33, %v1460_v32  ;;  %v1452_v44 = vld [vmem:[%s2213_s1 + $0x40] sm:$0xf] }
  0x9b   : > { %v1588_v37 = vld [vmem:[%s2213_s1 + $0x150] sm:$0xf]  ;;  %1016 = vmatpush.bf16.msra.mxu0 %v1469_v25  ;;  %v1733_v39 = vld [vmem:[%s2213_s1 + $0x154] sm:$0xf0]  ;;  %v1525_v42 = vor.u32 %v1717_v36, %v1524_v35  ;;  %v1699_v45 = vld [vmem:[%s2213_s1 + $0x44] sm:$0xf0] }
  0x9c   : > { %v1652_v40 = vld [vmem:[%s2213_s1 + $0x1d0] sm:$0xf]  ;;  %v1749_v41 = vld [vmem:[%s2213_s1 + $0x1d4] sm:$0xf0]  ;;  %1035 = vmatpush.bf16.msra.mxu1 %v1533_v26  ;;  %v1589_v43 = vor.u32 %v1733_v39, %v1588_v37  ;;  %v1516_v46 = vld [vmem:[%s2213_s1 + $0xc0] sm:$0xf]  ;;  %v1453_v53 = vor.u32 %v1699_v45, %v1452_v44 }
  0x9d   : > { %1054 = vmatpush.bf16.msra.mxu2 %v1597_v30  ;;  %v1653_v47 = vor.u32 %v1749_v41, %v1652_v40  ;;  %v1715_v48 = vld [vmem:[%s2213_s1 + $0xc4] sm:$0xf0]  ;;  %v1580_v49 = vld [vmem:[%s2213_s1 + $0x140] sm:$0xf]  ;;  %v1444_v56 = vld [vmem:[%s2213_s1 + $0x30] sm:$0xf] }
  0x9e   : > { %1073 = vmatpush.bf16.msra.mxu3 %v1661_v34  ;;  %v1731_v50 = vld [vmem:[%s2213_s1 + $0x144] sm:$0xf0]  ;;  %v1644_v51 = vld [vmem:[%s2213_s1 + $0x1c0] sm:$0xf]  ;;  %v1517_v54 = vor.u32 %v1715_v48, %v1516_v46  ;;  %v1697_v57 = vld [vmem:[%s2213_s1 + $0x34] sm:$0xf0] }
  0x9f   : > { %v1747_v52 = vld [vmem:[%s2213_s1 + $0x1c4] sm:$0xf0]  ;;  %1017 = vmatpush.bf16.msra.mxu0 %v1461_v38  ;;  %v1581_v55 = vor.u32 %v1731_v50, %v1580_v49  ;;  %v1508_v58 = vld [vmem:[%s2213_s1 + $0xb0] sm:$0xf]  ;;  %v1713_v60 = vld [vmem:[%s2213_s1 + $0xb4] sm:$0xf0]  ;;  %v1445_v1 = vor.u32 %v1697_v57, %v1444_v56 }
  0xa0   : > { %1036 = vmatpush.bf16.msra.mxu1 %v1525_v42  ;;  %v1645_v59 = vor.u32 %v1747_v52, %v1644_v51  ;;  %v1572_v61 = vld [vmem:[%s2213_s1 + $0x130] sm:$0xf]  ;;  %v1729_v62 = vld [vmem:[%s2213_s1 + $0x134] sm:$0xf0]  ;;  %v1509_v2 = vor.u32 %v1713_v60, %v1508_v58  ;;  %v1436_v4 = vld [vmem:[%s2213_s1 + $0x20] sm:$0xf] }
  0xa1   : > { %1055 = vmatpush.bf16.msra.mxu2 %v1589_v43  ;;  %v1636_v63 = vld [vmem:[%s2213_s1 + $0x1b0] sm:$0xf]  ;;  %v1745_v0 = vld [vmem:[%s2213_s1 + $0x1b4] sm:$0xf0]  ;;  %v1573_v3 = vor.u32 %v1729_v62, %v1572_v61  ;;  %v1695_v5 = vld [vmem:[%s2213_s1 + $0x24] sm:$0xf0] }
  0xa2   : > { %1074 = vmatpush.bf16.msra.mxu3 %v1653_v47  ;;  %v1500_v6 = vld [vmem:[%s2213_s1 + $0xa0] sm:$0xf]  ;;  %v1637_v7 = vor.u32 %v1745_v0, %v1636_v63  ;;  %v1711_v8 = vld [vmem:[%s2213_s1 + $0xa4] sm:$0xf0]  ;;  %v1437_v13 = vor.u32 %v1695_v5, %v1436_v4  ;;  %v1428_v16 = vld [vmem:[%s2213_s1 + $0x10] sm:$0xf] }
  0xa3   : > { %1018 = vmatpush.bf16.msra.mxu0 %v1453_v53  ;;  %v1564_v9 = vld [vmem:[%s2213_s1 + $0x120] sm:$0xf]  ;;  %v1727_v10 = vld [vmem:[%s2213_s1 + $0x124] sm:$0xf0]  ;;  %v1501_v14 = vor.u32 %v1711_v8, %v1500_v6  ;;  %v1693_v17 = vld [vmem:[%s2213_s1 + $0x14] sm:$0xf0] }
  0xa4   : > { %1037 = vmatpush.bf16.msra.mxu1 %v1517_v54  ;;  %v1628_v11 = vld [vmem:[%s2213_s1 + $0x1a0] sm:$0xf]  ;;  %v1743_v12 = vld [vmem:[%s2213_s1 + $0x1a4] sm:$0xf0]  ;;  %v1565_v15 = vor.u32 %v1727_v10, %v1564_v9  ;;  %v1492_v18 = vld [vmem:[%s2213_s1 + $0x90] sm:$0xf]  ;;  %v1429_v26 = vor.u32 %v1693_v17, %v1428_v16 }
  0xa5   : > { %1056 = vmatpush.bf16.msra.mxu2 %v1581_v55  ;;  %v1629_v19 = vor.u32 %v1743_v12, %v1628_v11  ;;  %v1709_v20 = vld [vmem:[%s2213_s1 + $0x94] sm:$0xf0]  ;;  %v1556_v21 = vld [vmem:[%s2213_s1 + $0x110] sm:$0xf]  ;;  %v1420_v25 = vld [vmem:[%s2213_s1] sm:$0xf] }
  0xa6   : > { %1075 = vmatpush.bf16.msra.mxu3 %v1645_v59  ;;  %v1725_v22 = vld [vmem:[%s2213_s1 + $0x114] sm:$0xf0]  ;;  %v1620_v23 = vld [vmem:[%s2213_s1 + $0x190] sm:$0xf]  ;;  %v1691_v27 = vld [vmem:[%s2213_s1 + $0x4] sm:$0xf0]  ;;  %v1493_v30 = vor.u32 %v1709_v20, %v1492_v18 }
  0xa7   : > { %1019 = vmatpush.bf16.msra.mxu0 %v1445_v1  ;;  %v1741_v24 = vld [vmem:[%s2213_s1 + $0x194] sm:$0xf0]  ;;  %v1484_v28 = vld [vmem:[%s2213_s1 + $0x80] sm:$0xf]  ;;  %v1707_v29 = vld [vmem:[%s2213_s1 + $0x84] sm:$0xf0]  ;;  %v1557_v31 = vor.u32 %v1725_v22, %v1556_v21  ;;  %v1421_v43 = vor.u32 %v1691_v27, %v1420_v25 }
  0xa8   : > { %1038 = vmatpush.bf16.msra.mxu1 %v1509_v2  ;;  %v1548_v32 = vld [vmem:[%s2213_s1 + $0x100] sm:$0xf]  ;;  %v1723_v33 = vld [vmem:[%s2213_s1 + $0x104] sm:$0xf0]  ;;  %v1621_v35 = vor.u32 %v1741_v24, %v1620_v23  ;;  %v1684_v38 = vld [vmem:[%s2211_s6 + $0xc] sm:$0xf0]  ;;  %v1485_v47 = vor.u32 %v1707_v29, %v1484_v28 }
  0xa9   : > { %1057 = vmatpush.bf16.msra.mxu2 %v1573_v3  ;;  %v1612_v34 = vld [vmem:[%s2213_s1 + $0x180] sm:$0xf]  ;;  %v1739_v36 = vld [vmem:[%s2213_s1 + $0x184] sm:$0xf0]  ;;  %v1682_v39 = vld [vmem:[%s2211_s6 + $0x4] sm:$0xf]  ;;  %v1549_v48 = vor.u32 %v1723_v33, %v1548_v32 }
  0xaa   : > { %1076 = vmatpush.bf16.msra.mxu3 %v1637_v7  ;;  %v1388_v37 = vld [vmem:[%s2211_s6] sm:$0xf]  ;;  %v1390_v40 = vld [vmem:[%s2211_s6 + $0x10] sm:$0xf0]  ;;  %v1606_v42 = vld [vmem:[%s2213_s1 + $0x178] sm:$0xf0]  ;;  %v1613_v52 = vor.u32 %v1739_v36, %v1612_v34 }
  0xab   : > { %1020 = vmatpush.bf16.msra.mxu0 %v1437_v13  ;;  %v1736_v41 = vld [vmem:[%s2213_s1 + $0x174] sm:$0xf]  ;;  %v1396_v44 = vld [vmem:[%s2211_s6 + $0x8] sm:$0xf]  ;;  %v1542_v46 = vld [vmem:[%s2213_s1 + $0xf8] sm:$0xf0]  ;;  %v2305_v57 = vor.u32 %v1684_v38, %v1388_v37  ;;  %v2310_v62 = vor.u32 %v1682_v39, %v1390_v40 }
  0xac   : > { %1039 = vmatpush.bf16.msra.mxu1 %v1501_v14  ;;  %v1720_v45 = vld [vmem:[%s2213_s1 + $0xf4] sm:$0xf]  ;;  %v1685_v49 = vld [vmem:[%s2211_s6 + $0x14] sm:$0xf0]  ;;  %v1683_v50 = vld [vmem:[%s2211_s6 + $0xc] sm:$0xf]  ;;  %v1609_v53 = vor.u32 %v1736_v41, %v1606_v42 }
  0xad   : > { %1058 = vmatpush.bf16.msra.mxu2 %v1565_v15  ;;  %v1398_v51 = vld [vmem:[%s2211_s6 + $0x18] sm:$0xf0]  ;;  %v1704_v54 = vld [vmem:[%s2213_s1 + $0x74] sm:$0xf]  ;;  %v1545_v58 = vor.u32 %v1720_v45, %v1542_v46  ;;  %v1734_v60 = vld [vmem:[%s2213_s1 + $0x164] sm:$0xf]  ;;  %v2312_v63 = vor.u32 %v1685_v49, %v1396_v44 }
  0xae   : > { %1077 = vmatpush.bf16.msra.mxu3 %v1629_v19  ;;  %v1478_v55 = vld [vmem:[%s2213_s1 + $0x78] sm:$0xf0]  ;;  %v1752_v56 = vld [vmem:[%s2213_s1 + $0x1f4] sm:$0xf]  ;;  %v1598_v61 = vld [vmem:[%s2213_s1 + $0x168] sm:$0xf0]  ;;  %v2316_v2 = vor.u32 %v1683_v50, %v1398_v51 }
  0xaf   : > { %1021 = vmatpush.bf16.msra.mxu0 %v1429_v26  ;;  %v1670_v59 = vld [vmem:[%s2213_s1 + $0x1f8] sm:$0xf0]  ;;  %v1718_v0 = vld [vmem:[%s2213_s1 + $0xe4] sm:$0xf]  ;;  %v1534_v1 = vld [vmem:[%s2213_s1 + $0xe8] sm:$0xf0]  ;;  %v1481_v3 = vor.u32 %v1704_v54, %v1478_v55  ;;  %v1601_v5 = vor.u32 %v1734_v60, %v1598_v61 }
  0xb0   : > { %1040 = vmatpush.bf16.msra.mxu1 %v1493_v30  ;;  %v1673_v4 = vor.u32 %v1752_v56, %v1670_v59  ;;  %v1702_v6 = vld [vmem:[%s2213_s1 + $0x64] sm:$0xf]  ;;  %v1470_v7 = vld [vmem:[%s2213_s1 + $0x68] sm:$0xf0]  ;;  %v1537_v9 = vor.u32 %v1718_v0, %v1534_v1  ;;  %v1732_v11 = vld [vmem:[%s2213_s1 + $0x154] sm:$0xf] }
  0xb1   : > { %1059 = vmatpush.bf16.msra.mxu2 %v1557_v31  ;;  %v1750_v8 = vld [vmem:[%s2213_s1 + $0x1e4] sm:$0xf]  ;;  %v1662_v10 = vld [vmem:[%s2213_s1 + $0x1e8] sm:$0xf0]  ;;  %v1590_v12 = vld [vmem:[%s2213_s1 + $0x158] sm:$0xf0]  ;;  %v1473_v15 = vor.u32 %v1702_v6, %v1470_v7 }
  0xb2   : > { %1078 = vmatpush.bf16.msra.mxu3 %v1621_v35  ;;  %v1716_v13 = vld [vmem:[%s2213_s1 + $0xd4] sm:$0xf]  ;;  %v1526_v14 = vld [vmem:[%s2213_s1 + $0xd8] sm:$0xf0]  ;;  %v1665_v16 = vor.u32 %v1750_v8, %v1662_v10  ;;  %v1593_v17 = vor.u32 %v1732_v11, %v1590_v12  ;;  %v1730_v23 = vld [vmem:[%s2213_s1 + $0x144] sm:$0xf] }
  0xb3   : > { %1022 = vmatpush.bf16.msra.mxu0 %v1421_v43  ;;  %v1700_v18 = vld [vmem:[%s2213_s1 + $0x54] sm:$0xf]  ;;  %v1462_v19 = vld [vmem:[%s2213_s1 + $0x58] sm:$0xf0]  ;;  %v1529_v21 = vor.u32 %v1716_v13, %v1526_v14  ;;  %v1582_v24 = vld [vmem:[%s2213_s1 + $0x148] sm:$0xf0] }
  0xb4   : > { %1041 = vmatpush.bf16.msra.mxu1 %v1485_v47  ;;  %v1748_v20 = vld [vmem:[%s2213_s1 + $0x1d4] sm:$0xf]  ;;  %v1654_v22 = vld [vmem:[%s2213_s1 + $0x1d8] sm:$0xf0]  ;;  %v1714_v25 = vld [vmem:[%s2213_s1 + $0xc4] sm:$0xf]  ;;  %v1465_v27 = vor.u32 %v1700_v18, %v1462_v19  ;;  %v1585_v32 = vor.u32 %v1730_v23, %v1582_v24 }
  0xb5   : > { %1060 = vmatpush.bf16.msra.mxu2 %v1549_v48  ;;  %v1518_v26 = vld [vmem:[%s2213_s1 + $0xc8] sm:$0xf0]  ;;  %v1698_v28 = vld [vmem:[%s2213_s1 + $0x44] sm:$0xf]  ;;  %v1657_v31 = vor.u32 %v1748_v20, %v1654_v22  ;;  %v1404_v34 = vld [vmem:[%s2211_s6 + $0x20] sm:$0xf] }
  0xb6   : > { %1079 = vmatpush.bf16.msra.mxu3 %v1613_v52  ;;  %1023 = vmatmul.bf16.vlgmr.msra.gmra.mxu0 %v2305_v57  ;;  %v1454_v29 = vld [vmem:[%s2213_s1 + $0x48] sm:$0xf0]  ;;  %v1746_v30 = vld [vmem:[%s2213_s1 + $0x1c4] sm:$0xf]  ;;  %v1688_v35 = vld [vmem:[%s2211_s6 + $0x2c] sm:$0xf0]  ;;  %v1521_v36 = vor.u32 %v1714_v25, %v1518_v26 }
  0xb7   : > { %1042 = vmatmul.bf16.vlgmr.msra.gmra.mxu1 %v2310_v62  ;;  %1091 = vmatpush.bf16.msrb.mxu0 %v1481_v3  ;;  %v1646_v33 = vld [vmem:[%s2213_s1 + $0x1c8] sm:$0xf0]  ;;  %v1686_v37 = vld [vmem:[%s2211_s6 + $0x24] sm:$0xf]  ;;  %v1406_v38 = vld [vmem:[%s2211_s6 + $0x30] sm:$0xf0]  ;;  %v1457_v44 = vor.u32 %v1698_v28, %v1454_v29 }
  0xb8   : > { %1110 = vmatpush.bf16.msrb.mxu1 %v1545_v58  ;;  %1061 = vmatmul.bf16.vlgmr.msra.gmra.mxu2 %v2312_v63  ;;  %v1728_v39 = vld [vmem:[%s2213_s1 + $0x134] sm:$0xf]  ;;  %v1574_v40 = vld [vmem:[%s2213_s1 + $0x138] sm:$0xf0]  ;;  %v1412_v41 = vld [vmem:[%s2211_s6 + $0x28] sm:$0xf]  ;;  %v1649_v48 = vor.u32 %v1746_v30, %v1646_v33  ;;  %v2362_v59 = vor.u32 %v1686_v37, %v1406_v38 }
  0xb9   : > { %1129 = vmatpush.bf16.msrb.mxu2 %v1609_v53  ;;  %1080 = vmatmul.bf16.vlgmr.msra.gmra.mxu3 %v2316_v2  ;;  %v1712_v42 = vld [vmem:[%s2213_s1 + $0xb4] sm:$0xf]  ;;  %v1510_v43 = vld [vmem:[%s2213_s1 + $0xb8] sm:$0xf0]  ;;  %v1689_v45 = vld [vmem:[%s2211_s6 + $0x34] sm:$0xf0]  ;;  %v1577_v49 = vor.u32 %v1728_v39, %v1574_v40  ;;  %v2357_v53 = vor.u32 %v1688_v35, %v1404_v34 }
  0xba   : > { %1148 = vmatpush.bf16.msrb.mxu3 %v1673_v4  ;;  %v1687_v46 = vld [vmem:[%s2211_s6 + $0x2c] sm:$0xf]  ;;  %v1414_v47 = vld [vmem:[%s2211_s6 + $0x38] sm:$0xf0]  ;;  %v1696_v50 = vld [vmem:[%s2213_s1 + $0x34] sm:$0xf]  ;;  %v1513_v54 = vor.u32 %v1712_v42, %v1510_v43  ;;  %v2364_v60 = vor.u32 %v1689_v45, %v1412_v41 }
  0xbb   : > { %1092 = vmatpush.bf16.msrb.mxu0 %v1473_v15  ;;  %v1446_v51 = vld [vmem:[%s2213_s1 + $0x38] sm:$0xf0]  ;;  %v1744_v52 = vld [vmem:[%s2213_s1 + $0x1b4] sm:$0xf]  ;;  %v1726_v56 = vld [vmem:[%s2213_s1 + $0x124] sm:$0xf]  ;;  %v1417_v1 = vor.u32 %v1687_v46, %v1414_v47 }
  0xbc   : > { %1111 = vmatpush.bf16.msrb.mxu1 %v1537_v9  ;;  %v1638_v55 = vld [vmem:[%s2213_s1 + $0x1b8] sm:$0xf0]  ;;  %v1566_v58 = vld [vmem:[%s2213_s1 + $0x128] sm:$0xf0]  ;;  %v1710_v61 = vld [vmem:[%s2213_s1 + $0xa4] sm:$0xf]  ;;  %v1449_v3 = vor.u32 %v1696_v50, %v1446_v51 }
  0xbd   : > { %1130 = vmatpush.bf16.msrb.mxu2 %v1601_v5  ;;  %v1502_v0 = vld [vmem:[%s2213_s1 + $0xa8] sm:$0xf0]  ;;  %v1641_v4 = vor.u32 %v1744_v52, %v1638_v55  ;;  %v1569_v5 = vor.u32 %v1726_v56, %v1566_v58  ;;  %v1694_v6 = vld [vmem:[%s2213_s1 + $0x24] sm:$0xf]  ;;  %v1724_v11 = vld [vmem:[%s2213_s1 + $0x114] sm:$0xf] }
  0xbe   : > { %1149 = vmatpush.bf16.msrb.mxu3 %v1665_v16  ;;  %v1438_v7 = vld [vmem:[%s2213_s1 + $0x28] sm:$0xf0]  ;;  %v1742_v8 = vld [vmem:[%s2213_s1 + $0x1a4] sm:$0xf]  ;;  %v1505_v9 = vor.u32 %v1710_v61, %v1502_v0  ;;  %v1558_v12 = vld [vmem:[%s2213_s1 + $0x118] sm:$0xf0] }
  0xbf   : > { %1093 = vmatpush.bf16.msrb.mxu0 %v1465_v27  ;;  %v1630_v10 = vld [vmem:[%s2213_s1 + $0x1a8] sm:$0xf0]  ;;  %v1708_v13 = vld [vmem:[%s2213_s1 + $0x94] sm:$0xf]  ;;  %v1494_v14 = vld [vmem:[%s2213_s1 + $0x98] sm:$0xf0]  ;;  %v1441_v15 = vor.u32 %v1694_v6, %v1438_v7 }
  0xc0   : > { %1112 = vmatpush.bf16.msrb.mxu1 %v1529_v21  ;;  %v1633_v16 = vor.u32 %v1742_v8, %v1630_v10  ;;  %v1692_v18 = vld [vmem:[%s2213_s1 + $0x14] sm:$0xf]  ;;  %v1430_v19 = vld [vmem:[%s2213_s1 + $0x18] sm:$0xf0]  ;;  %v1497_v21 = vor.u32 %v1708_v13, %v1494_v14  ;;  %v1722_v23 = vld [vmem:[%s2213_s1 + $0x104] sm:$0xf] }
  0xc1   : > { %1131 = vmatpush.bf16.msrb.mxu2 %v1593_v17  ;;  %v1561_v17 = vor.u32 %v1724_v11, %v1558_v12  ;;  %v1740_v20 = vld [vmem:[%s2213_s1 + $0x194] sm:$0xf]  ;;  %v1622_v22 = vld [vmem:[%s2213_s1 + $0x198] sm:$0xf0]  ;;  %v1550_v24 = vld [vmem:[%s2213_s1 + $0x108] sm:$0xf0]  ;;  %v1433_v27 = vor.u32 %v1692_v18, %v1430_v19 }
  0xc2   : > { %1150 = vmatpush.bf16.msrb.mxu3 %v1657_v31  ;;  %v1706_v25 = vld [vmem:[%s2213_s1 + $0x84] sm:$0xf]  ;;  %v1486_v26 = vld [vmem:[%s2213_s1 + $0x88] sm:$0xf0]  ;;  %v1625_v28 = vor.u32 %v1740_v20, %v1622_v22  ;;  %v1553_v29 = vor.u32 %v1722_v23, %v1550_v24  ;;  %v581_v6 = vld [vmem:[%s2215_s25 + $0x30] sm:$0xff]  ;;  %p1674_p5 = scmp.ne.s32.totalorder %s1914_s18, 7 }
  0xc3   : > { %1094 = vmatpush.bf16.msrb.mxu0 %v1457_v44  ;;  %v1690_v30 = vld [vmem:[%s2213_s1 + $0x4] sm:$0xf]  ;;  %v1422_v31 = vld [vmem:[%s2213_s1 + $0x8] sm:$0xf0]  ;;  %v578_v24 = vld [vmem:[%s2215_s25 + $0x18] sm:$0xff] }
  0xc4   : > { %1113 = vmatpush.bf16.msrb.mxu1 %v1521_v36  ;;  %v1738_v33 = vld [vmem:[%s2213_s1 + $0x184] sm:$0xf]  ;;  %v1614_v34 = vld [vmem:[%s2213_s1 + $0x188] sm:$0xf0]  ;;  %v1425_v35 = vor.u32 %v1690_v30, %v1422_v31 }
  0xc5   : > { %1132 = vmatpush.bf16.msrb.mxu2 %v1585_v32  ;;  %v1489_v32 = vor.u32 %v1706_v25, %v1486_v26  ;;  %v1617_v36 = vor.u32 %v1738_v33, %v1614_v34  ;;  %v580_v33 = vld [vmem:[%s2215_s25 + $0x28] sm:$0xff] }
  0xc6   : > { %1151 = vmatpush.bf16.msrb.mxu3 %v1649_v48  ;;  %1028 = vmatmul.bf16.gmra.mxu0 %v2357_v53 }
  0xc7   : > { %1047 = vmatmul.bf16.gmra.mxu1 %v2362_v59  ;;  %1095 = vmatpush.bf16.msrb.mxu0 %v1449_v3 }
  0xc8   : > { %1114 = vmatpush.bf16.msrb.mxu1 %v1513_v54  ;;  %1066 = vmatmul.bf16.gmra.mxu2 %v2364_v60 }
  0xc9   : > { %1133 = vmatpush.bf16.msrb.mxu2 %v1577_v49  ;;  %1085 = vmatmul.bf16.gmra.mxu3 %v1417_v1  ;;  %v577_v49 = vld [vmem:[%s2215_s25 + $0x10] sm:$0xff] }
  0xca   : > { %1152 = vmatpush.bf16.msrb.mxu3 %v1641_v4 }
  0xcb   : > { %1096 = vmatpush.bf16.msrb.mxu0 %v1441_v15 }
  0xcc   : > { %1115 = vmatpush.bf16.msrb.mxu1 %v1505_v9 }
  0xcd   : > { %1134 = vmatpush.bf16.msrb.mxu2 %v1569_v5 }
  0xce   : > { %1153 = vmatpush.bf16.msrb.mxu3 %v1633_v16 }
  0xcf   : > { %1097 = vmatpush.bf16.msrb.mxu0 %v1433_v27 }
  0xd0   : > { %1116 = vmatpush.bf16.msrb.mxu1 %v1497_v21 }
  0xd1   : > { %1135 = vmatpush.bf16.msrb.mxu2 %v1561_v17  ;;  %v576_v17 = vld [vmem:[%s2215_s25 + $0x8] sm:$0xff] }
  0xd2   : > { %1154 = vmatpush.bf16.msrb.mxu3 %v1625_v28 }
  0xd3   : > { %1098 = vmatpush.bf16.msrb.mxu0 %v1425_v35 }
  0xd4   : > { %1117 = vmatpush.bf16.msrb.mxu1 %v1489_v32 }
  0xd5   : > { %1136 = vmatpush.bf16.msrb.mxu2 %v1553_v29 }
  0xd6   : > { %1155 = vmatpush.bf16.msrb.mxu3 %v1617_v36  ;;  %1099 = vmatmul.bf16.vlgmr.msrb.gmra.mxu0 %v2305_v57 }
  0xd7   : > { %1118 = vmatmul.bf16.vlgmr.msrb.gmra.mxu1 %v2310_v62 }
  0xd8   : > { %1137 = vmatmul.bf16.vlgmr.msrb.gmra.mxu2 %v2312_v63  ;;  %v575_v63 = vld [vmem:[%s2215_s25] sm:$0xff] }
  0xd9   : > { %1156 = vmatmul.bf16.vlgmr.msrb.gmra.mxu3 %v2316_v2 }
  0xe6   : > { %1104 = vmatmul.bf16.gmra.mxu0 %v2357_v53 }
  0xe7   : > { %1123 = vmatmul.bf16.gmra.mxu1 %v2362_v59  ;;  %v579_v59 = vld [vmem:[%s2215_s25 + $0x20] sm:$0xff] }
  0xe8   : > { %1142 = vmatmul.bf16.gmra.mxu2 %v2364_v60 }
  0xe9   : > { %1161 = vmatmul.bf16.gmra.mxu3 %v1417_v1 }
 0x133   : > { %v1024_v37 = vpop.f32.mrf.mxu0 }
 0x134   : > { %v1043_v38 = vpop.f32.mrf.mxu1 }
 0x135   : > { %v1044_v39 = vadd.f32 %v1043_v38, %v1024_v37 }
 0x13b   : > { %v1062_v40 = vpop.f32.mrf.mxu2  ;;  %v1026_v62 = vpop.f32.mrf.mxu0 }
 0x13c   : > { %v1063_v57 = vadd.f32 %v1062_v40, %v1044_v39  ;;  %v1081_v41 = vpop.f32.mrf.mxu3  ;;  %v1045_v42 = vpop.f32.mrf.mxu1 }
 0x13d   : > { %v1046_v44 = vadd.f32 %v1045_v42, %v1026_v62 }
 0x13e   : > { %v1082_v2 = vadd.f32 %v1081_v41, %v1063_v57  ;;  %v582_v57 = vld [vmem:[%s2215_s25 + $0x38] sm:$0xff] }
 0x140   : > { %v1167_v43 = vadd.f32 %v1082_v2, %v575_v63 }
 0x142   : > { %1175 = vst [vmem:[%s2215_s25] sm:$0xff] %v1167_v43 }
 0x143   : > { %v1064_v45 = vpop.f32.mrf.mxu2  ;;  %v1029_v48 = vpop.f32.mrf.mxu0 }
 0x144   : > { %v1065_v46 = vadd.f32 %v1064_v45, %v1046_v44  ;;  %v1083_v47 = vpop.f32.mrf.mxu3  ;;  %v1048_v50 = vpop.f32.mrf.mxu1 }
 0x145   : > { %v1049_v53 = vadd.f32 %v1048_v50, %v1029_v48 }
 0x146   : > { %v1084_v51 = vadd.f32 %v1083_v47, %v1065_v46 }
 0x148   : > { %v1169_v52 = vadd.f32 %v1084_v51, %v577_v49 }
 0x14a   : > { %1177 = vst [vmem:[%s2215_s25 + $0x10] sm:$0xff] %v1169_v52 }
 0x14b   : > { %v1067_v54 = vpop.f32.mrf.mxu2  ;;  %v1031_v58 = vpop.f32.mrf.mxu0 }
 0x14c   : > { %v1068_v55 = vadd.f32 %v1067_v54, %v1049_v53  ;;  %v1086_v56 = vpop.f32.mrf.mxu3  ;;  %v1050_v60 = vpop.f32.mrf.mxu1 }
 0x14d   : > { %v1051_v1 = vadd.f32 %v1050_v60, %v1031_v58 }
 0x14e   : > { %v1087_v61 = vadd.f32 %v1086_v56, %v1068_v55 }
 0x150   : > { %v1171_v0 = vadd.f32 %v1087_v61, %v579_v59 }
 0x152   : > { %1179 = vst [vmem:[%s2215_s25 + $0x20] sm:$0xff] %v1171_v0 }
 0x153   : > { %v1069_v3 = vpop.f32.mrf.mxu2  ;;  %v1100_v7 = vpop.f32.mrf.mxu0 }
 0x154   : > { %v1070_v4 = vadd.f32 %v1069_v3, %v1051_v1  ;;  %v1088_v5 = vpop.f32.mrf.mxu3  ;;  %v1119_v8 = vpop.f32.mrf.mxu1 }
 0x155   : > { %v1120_v11 = vadd.f32 %v1119_v8, %v1100_v7 }
 0x156   : > { %v1089_v9 = vadd.f32 %v1088_v5, %v1070_v4 }
 0x158   : > { %v1173_v10 = vadd.f32 %v1089_v9, %v581_v6 }
 0x15a   : > { %1181 = vst [vmem:[%s2215_s25 + $0x30] sm:$0xff] %v1173_v10 }
 0x15b   : > { %v1138_v12 = vpop.f32.mrf.mxu2  ;;  %v1102_v15 = vpop.f32.mrf.mxu0 }
 0x15c   : > { %v1157_v13 = vpop.f32.mrf.mxu3  ;;  %v1139_v14 = vadd.f32 %v1138_v12, %v1120_v11  ;;  %v1121_v16 = vpop.f32.mrf.mxu1 }
 0x15d   : > { %v1122_v20 = vadd.f32 %v1121_v16, %v1102_v15 }
 0x15e   : > { %v1158_v18 = vadd.f32 %v1157_v13, %v1139_v14 }
 0x160   : > { %v1168_v19 = vadd.f32 %v1158_v18, %v576_v17 }
 0x162   : > { %1176 = vst [vmem:[%s2215_s25 + $0x8] sm:$0xff] %v1168_v19 }
 0x163   : > { %v1140_v21 = vpop.f32.mrf.mxu2  ;;  %v1105_v25 = vpop.f32.mrf.mxu0 }
 0x164   : > { %v1159_v22 = vpop.f32.mrf.mxu3  ;;  %v1141_v23 = vadd.f32 %v1140_v21, %v1122_v20  ;;  %v1124_v26 = vpop.f32.mrf.mxu1 }
 0x165   : > { %v1125_v29 = vadd.f32 %v1124_v26, %v1105_v25 }
 0x166   : > { %v1160_v27 = vadd.f32 %v1159_v22, %v1141_v23 }
 0x168   : > { %v1170_v28 = vadd.f32 %v1160_v27, %v578_v24 }
 0x16a   : > { %1178 = vst [vmem:[%s2215_s25 + $0x18] sm:$0xff] %v1170_v28 }
 0x16b   : > { %v1143_v30 = vpop.f32.mrf.mxu2  ;;  %v1107_v35 = vpop.f32.mrf.mxu0 }
 0x16c   : > { %v1162_v31 = vpop.f32.mrf.mxu3  ;;  %v1144_v32 = vadd.f32 %v1143_v30, %v1125_v29  ;;  %v1126_v36 = vpop.f32.mrf.mxu1 }
 0x16d   : > { %v1127_v38 = vadd.f32 %v1126_v36, %v1107_v35 }
 0x16e   : > { %v1163_v34 = vadd.f32 %v1162_v31, %v1144_v32 }
 0x170   : > { %v1172_v37 = vadd.f32 %v1163_v34, %v580_v33 }
 0x172   : > { %1180 = vst [vmem:[%s2215_s25 + $0x28] sm:$0xff] %v1172_v37 }
 0x173   : > { %v1145_v39 = vpop.f32.mrf.mxu2 }
 0x174   : > { %v1146_v40 = vadd.f32 %v1145_v39, %v1127_v38  ;;  %v1164_v41 = vpop.f32.mrf.mxu3 }
 0x176   : > { %v1165_v62 = vadd.f32 %v1164_v41, %v1146_v40  ;;  %1186 = sbr.rel (%p1674_p5) target bundleno = 393 (0x189), region = 101 }
 0x178   : > { %v1174_v63 = vadd.f32 %v1165_v62, %v582_v57 }
 0x17a   : > { %1182 = vst [vmem:[%s2215_s25 + $0x38] sm:$0xff] %v1174_v63 }
 0x17b   : > { %v1187_v42 = vld [vmem:[%s2215_s25] sm:$0xff]  ;;  %v1188_v43 = vld [vmem:[%s2215_s25 + $0x8] sm:$0xff]  ;;  %v1189_v46 = vld [vmem:[%s2215_s25 + $0x10] sm:$0xff] }
 0x17c   : > { %v1195_v2 = vld [vmem:[%s559_s5] sm:$0x3]  ;;  %v1190_v47 = vld [vmem:[%s2215_s25 + $0x18] sm:$0xff]  ;;  %v1192_v52 = vld [vmem:[%s2215_s25 + $0x28] sm:$0xff] }
 0x17d   : > { %v1197_v44 = vperm.slane %v1195_v2, 0  ;;  %v1198_v45 = vperm.slane %v1195_v2, 1  ;;  %v1191_v48 = vld [vmem:[%s2215_s25 + $0x20] sm:$0xff]  ;;  %v1193_v54 = vld [vmem:[%s2215_s25 + $0x30] sm:$0xff] }
 0x17f   : > { %v1201_v49 = vadd.f32 %v1197_v44, %v1187_v42  ;;  %v1202_v50 = vadd.f32 %v1198_v45, %v1188_v43  ;;  %v1203_v51 = vadd.f32 %v1197_v44, %v1189_v46  ;;  %v1204_v53 = vadd.f32 %v1198_v45, %v1190_v47 }
 0x180   : > { %v1205_v55 = vadd.f32 %v1197_v44, %v1191_v48  ;;  %v1206_v58 = vadd.f32 %v1198_v45, %v1192_v52  ;;  %v1207_v59 = vadd.f32 %v1197_v44, %v1193_v54 }
 0x181   : > { %1209 = vst [vmem:[%s2215_s25] sm:$0xff] %v1201_v49  ;;  %v1194_v56 = vld [vmem:[%s2215_s25 + $0x38] sm:$0xff] }
 0x182   : > { %1210 = vst [vmem:[%s2215_s25 + $0x8] sm:$0xff] %v1202_v50  ;;  %v1208_v60 = vadd.f32 %v1198_v45, %v1194_v56 }
 0x183   : > { %1211 = vst [vmem:[%s2215_s25 + $0x10] sm:$0xff] %v1203_v51 }
 0x184   : > { %1212 = vst [vmem:[%s2215_s25 + $0x18] sm:$0xff] %v1204_v53 }
 0x185   : > { %1213 = vst [vmem:[%s2215_s25 + $0x20] sm:$0xff] %v1205_v55 }
 0x186   : > { %1214 = vst [vmem:[%s2215_s25 + $0x28] sm:$0xff] %v1206_v58 }
 0x187   : > { %1215 = vst [vmem:[%s2215_s25 + $0x30] sm:$0xff] %v1207_v59 }
 0x188   : > { %1216 = vst [vmem:[%s2215_s25 + $0x38] sm:$0xff] %v1208_v60 }
 0x189 PF: > { %1223 = sbr.rel (!%p2047_p12) target bundleno = 403 (0x193), region = 105  ;;  %s1754_s14 = sshll.u32 (%p2047_p12), %s1918_s19, 4  ;;  %v1242_v61 = vld [vmem:[%s2215_s25] sm:$0xff] (%p2047_p12)  ;;  %v1244_v0 = vld [vmem:[%s2215_s25 + $0x8] sm:$0xff] (%p2047_p12) }
 0x18a   : > { %s1229_s0 = scalar_lea.vmem (%p2047_p12), %s2486_s3, %s1754_s14  ;;  %v1246_v1 = vld [vmem:[%s2215_s25 + $0x10] sm:$0xff] (%p2047_p12) }
 0x18b   : > { %1243 = vst [vmem:[%s1229_s0] sm:$0xff] (%p2047_p12), %v1242_v61  ;;  %v1248_v3 = vld [vmem:[%s2215_s25 + $0x18] sm:$0xff] (%p2047_p12) }
 0x18c   : > { %1245 = vst [vmem:[%s1229_s0 + $0x8] sm:$0xff] (%p2047_p12), %v1244_v0  ;;  %v1250_v4 = vld [vmem:[%s2215_s25 + $0x20] sm:$0xff] (%p2047_p12) }
 0x18d   : > { %1247 = vst [vmem:[%s1229_s0 + $0x20] sm:$0xff] (%p2047_p12), %v1246_v1  ;;  %v1252_v5 = vld [vmem:[%s2215_s25 + $0x28] sm:$0xff] (%p2047_p12) }
 0x18e   : > { %1249 = vst [vmem:[%s1229_s0 + $0x28] sm:$0xff] %v1248_v3  ;;  %v1254_v6 = vld [vmem:[%s2215_s25 + $0x30] sm:$0xff] }
 0x18f   : > { %1251 = vst [vmem:[%s1229_s0 + $0x40] sm:$0xff] %v1250_v4  ;;  %v1256_v7 = vld [vmem:[%s2215_s25 + $0x38] sm:$0xff] }
 0x190   : > { %1253 = vst [vmem:[%s1229_s0 + $0x48] sm:$0xff] %v1252_v5 }
 0x191   : > { %1255 = vst [vmem:[%s1229_s0 + $0x60] sm:$0xff] %v1254_v6 }
 0x192   : > { %1257 = vst [vmem:[%s1229_s0 + $0x68] sm:$0xff] %v1256_v7 }
 0x193 PF: > { %s13_s22 = sadd.s32 1, %s1930_s22   ;;  %s2496_s10 = sld [smem:[#allocation5_spill]] }
 0x194   : > { %p10_p6 = scmp.ge.s32.totalorder %s13_s22, 18   ;;  %s2497_s12 = smov %s1894_s13 }
 0x195   : > { %s2498_s13 = smov %s2045_s9  ;;  %s2499_s14 = smov %s1902_s15 }
 0x196   : > { %s2500_s15 = smov %s2042_s8  ;;  %s2501_s16 = smov %s1910_s17 }
 0x197   : > { %s2502_s17 = smov %s2028_s30  ;;  %s2503_s18 = smov %s1922_s20 }
 0x198   : > { %s2504_s19 = smov %s1926_s21  ;;  %s2505_s20 = smov %s2508_s24 }
 0x199   : > { %s2506_s21 = smov %s2496_s10  ;;  %12 = sbr.rel (!%p10_p6) target bundleno = 9 (0x9), region = 170 }

// kernel: _lambda_.21
= control target key start
LH: loop header
LB: loop body
LE: loop exit
PB: predicated region body
PF: predicated region fallthrough
CT: control target
= control target key end

     0   :  { %s1268_s12 = smov 0   ;;  %s1270_s13 = smov 0   ;;  %s1505_s0 = inlined_call_operand.vmem [shape: bf16[56,8192], index: 0, kind: input, shape index: {}]   ;;  %s1506_s1 = inlined_call_operand.vmem [shape: bf16[8192,128], index: 1, kind: input, shape index: {}]   ;;  %s1507_s2 = inlined_call_operand.vmem [shape: f32[1,128], index: 2, kind: input, shape index: {}]   ;;  %s1508_s3 = inlined_call_operand.vmem [shape: f32[56,128], index: 3, kind: output, shape index: {}]  }
   0x1   :  { %s1272_s14 = smov 0   ;;  %s1274_s15 = smov 0  }
   0x2   :  { %s1276_s16 = smov 0  }
   0x3 LB: > { %s25_s17 = sadd.s32 1, %s1241_s15  ;;  %p48_p1 = scmp.ne.s32.totalorder %s1233_s13, %s1229_s12  ;;  %s1245_s16 = sphi %s1276_s16, %s13_s16   ;;  %s1241_s15 = sphi %s1274_s15, %s1512_s15   ;;  %s1237_s14 = sphi %s1272_s14, %s1511_s14   ;;  %s1233_s13 = sphi %s1270_s13, %s1510_s13   ;;  %s1229_s12 = sphi %s1268_s12, %s1509_s12  }
   0x4   : > { %p26_p0 = scmp.ge.s32.totalorder %s25_s17, 16  ;;  %p49_p2 = scmp.eq.s32.totalorder %s1245_s16, 0 }
   0x5   : > { %s41_s19 = sadd.s32 1, %s1233_s13  ;;  %p930_p5 = scmp.ge.s32.totalorder %s1245_s16, 16 }
   0x6   : > { %s1514_s17 = smov (%p26_p0, %s25_s17), 0  ;;  %p50_p3 = por %p49_p2, %p48_p1 }
   0x7   : > { %s37_s18 = ssub.s32 %s1241_s15, %s1514_s17  ;;  %162 = sbr.rel (%p930_p5) target bundleno = 30 (0x1e), region = 20 }
   0x8   : > { %p39_p4 = scmp.eq.s32.totalorder %s37_s18, 0 }
   0xa   : > { %s1303_s20 = scalar_select %p39_p4, %s1233_s13, %s41_s19  }
   0xc   : > { %165 = sbr.rel (!%p50_p3) target bundleno = 30 (0x1e), region = 24  ;;  %s167_s21 = sand.u32 (%p50_p3), 1, %s1233_s13  }
   0xd   : > { %s1118_s22 = sshll.u32 (%p50_p3), %s1241_s15, 4  ;;  %s1163_s23 = smul.u32 (%p50_p3), 112, %s167_s21 }
   0xe   : > { %s175_s26 = scalar_lea.vmem (%p50_p3), %s1505_s0, %s1118_s22 }
   0xf   : > { %v188_v0 = vld [vmem:[%s175_s26] sm:$0xff] (%p50_p3)  ;;  %v190_v1 = vld [vmem:[%s175_s26 + $0x8] sm:$0xff] (%p50_p3)  ;;  %s169_s27 = scalar_lea.vmem (%p50_p3), [#allocation2], %s1163_s23 }
  0x10   : > { %v192_v2 = vld [vmem:[%s175_s26 + $0x100] sm:$0xff] (%p50_p3)  ;;  %189 = vst [vmem:[%s169_s27] sm:$0xff] (%p50_p3), %v188_v0  ;;  %v194_v3 = vld [vmem:[%s175_s26 + $0x108] sm:$0xff] (%p50_p3) }
  0x11   : > { %191 = vst [vmem:[%s169_s27 + $0x8] sm:$0xff] %v190_v1  ;;  %v196_v4 = vld [vmem:[%s175_s26 + $0x200] sm:$0xff]  ;;  %v198_v5 = vld [vmem:[%s175_s26 + $0x208] sm:$0xff] }
  0x12   : > { %193 = vst [vmem:[%s169_s27 + $0x10] sm:$0xff] %v192_v2  ;;  %v200_v6 = vld [vmem:[%s175_s26 + $0x300] sm:$0xff]  ;;  %v202_v7 = vld [vmem:[%s175_s26 + $0x308] sm:$0xff] }
  0x13   : > { %195 = vst [vmem:[%s169_s27 + $0x18] sm:$0xff] %v194_v3  ;;  %v204_v8 = vld [vmem:[%s175_s26 + $0x400] sm:$0xff]  ;;  %v206_v9 = vld [vmem:[%s175_s26 + $0x408] sm:$0xff] }
  0x14   : > { %197 = vst [vmem:[%s169_s27 + $0x20] sm:$0xff] %v196_v4  ;;  %v208_v10 = vld [vmem:[%s175_s26 + $0x500] sm:$0xff]  ;;  %v210_v11 = vld [vmem:[%s175_s26 + $0x508] sm:$0xff] }
  0x15   : > { %199 = vst [vmem:[%s169_s27 + $0x28] sm:$0xff] %v198_v5  ;;  %v212_v12 = vld [vmem:[%s175_s26 + $0x600] sm:$0xff]  ;;  %v214_v13 = vld [vmem:[%s175_s26 + $0x608] sm:$0xff] }
  0x16   : > { %201 = vst [vmem:[%s169_s27 + $0x30] sm:$0xff] %v200_v6 }
  0x17   : > { %203 = vst [vmem:[%s169_s27 + $0x38] sm:$0xff] %v202_v7 }
  0x18   : > { %205 = vst [vmem:[%s169_s27 + $0x40] sm:$0xff] %v204_v8 }
  0x19   : > { %207 = vst [vmem:[%s169_s27 + $0x48] sm:$0xff] %v206_v9 }
  0x1a   : > { %209 = vst [vmem:[%s169_s27 + $0x50] sm:$0xff] %v208_v10 }
  0x1b   : > { %211 = vst [vmem:[%s169_s27 + $0x58] sm:$0xff] %v210_v11 }
  0x1c   : > { %213 = vst [vmem:[%s169_s27 + $0x60] sm:$0xff] %v212_v12 }
  0x1d   : > { %215 = vst [vmem:[%s169_s27 + $0x68] sm:$0xff] %v214_v13 }
  0x1e PF: > { %p933_p6 = scmp.ge.s32.totalorder %s1245_s16, 1  ;;  %p232_p7 = scmp.lt.s32.totalorder %s1245_s16, 17 }
  0x20   : > { %p233_p8 = pnand %p933_p6, %p232_p7 }
  0x21   : > { %s239_s28 = sand.u32 (!%p233_p8), 1, %s1229_s12   ;;  %s934_s29 = sshll.u32 (!%p233_p8), %s1237_s14, 6 }
  0x22   : > { %236 = sbr.rel (%p233_p8) target bundleno = 286 (0x11e), region = 51  ;;  %p279_p9 = scmp.lt.s32.totalorder (!%p233_p8), %s934_s29, 1023 }
  0x23   : > { %s1164_s30 = smul.u32 (!%p233_p8), 112, %s239_s28  ;;  %p936_p10 = scmp.ne.s32.totalorder (!%p233_p8), %s1237_s14, 0 }
  0x25   : > { %s1320_s8 = scalar_lea.vmem (!%p233_p8), [#allocation2], %s1164_s30 }
  0x27   : > { %s1516_s29 = smov (!%p279_p9, %s934_s29), 1023  ;;  %302 = sbr.rel (%p936_p10) target bundleno = 52 (0x34), region = 59 }
  0x28   : > { %s935_s4 = sshll.u32 %s1516_s29, 2 }
  0x29   : > { %s1318_s7 = scalar_lea.vmem %s1506_s1, %s935_s4 }
  0x2c   : > { %v1247_v14 = vmov 0.0  }
  0x2d   : > { %303 = vst [vmem:[%s1508_s3] sm:$0xff] %v1247_v14 }
  0x2e   : > { %304 = vst [vmem:[%s1508_s3 + $0x8] sm:$0xff] %v1247_v14 }
  0x2f   : > { %305 = vst [vmem:[%s1508_s3 + $0x10] sm:$0xff] %v1247_v14 }
  0x30   : > { %306 = vst [vmem:[%s1508_s3 + $0x18] sm:$0xff] %v1247_v14 }
  0x31   : > { %307 = vst [vmem:[%s1508_s3 + $0x20] sm:$0xff] %v1247_v14 }
  0x32   : > { %308 = vst [vmem:[%s1508_s3 + $0x28] sm:$0xff] %v1247_v14 }
  0x33   : > { %309 = vst [vmem:[%s1508_s3 + $0x30] sm:$0xff] %v1247_v14 }
  0x34 PF: > { %v1138_v15 = vld [vmem:[%s1318_s7 + $0x38] sm:$0xff]  ;;  %v1137_v19 = vld [vmem:[%s1318_s7 + $0x30] sm:$0xff]  ;;  %v1136_v23 = vld [vmem:[%s1318_s7 + $0x28] sm:$0xff]  ;;  %p1113_p11 = scmp.ne.s32.totalorder %s1237_s14, 15 }
  0x35   : > { %v1146_v16 = vld [vmem:[%s1318_s7 + $0x78] sm:$0xff]  ;;  %661 = vmatpush.bf16.msra.mxu0 %v1138_v15  ;;  %v1145_v20 = vld [vmem:[%s1318_s7 + $0x70] sm:$0xff]  ;;  %v1144_v24 = vld [vmem:[%s1318_s7 + $0x68] sm:$0xff] }
  0x36   : > { %v1154_v17 = vld [vmem:[%s1318_s7 + $0xb8] sm:$0xff]  ;;  %689 = vmatpush.bf16.msra.mxu1 %v1146_v16  ;;  %v1153_v21 = vld [vmem:[%s1318_s7 + $0xb0] sm:$0xff]  ;;  %v1152_v25 = vld [vmem:[%s1318_s7 + $0xa8] sm:$0xff] }
  0x37   : > { %v1162_v18 = vld [vmem:[%s1318_s7 + $0xf8] sm:$0xff]  ;;  %717 = vmatpush.bf16.msra.mxu2 %v1154_v17  ;;  %v1161_v22 = vld [vmem:[%s1318_s7 + $0xf0] sm:$0xff]  ;;  %v1160_v26 = vld [vmem:[%s1318_s7 + $0xe8] sm:$0xff] }
  0x38   : > { %745 = vmatpush.bf16.msra.mxu3 %v1162_v18  ;;  %v1135_v27 = vld [vmem:[%s1318_s7 + $0x20] sm:$0xff]  ;;  %v1134_v31 = vld [vmem:[%s1318_s7 + $0x18] sm:$0xff]  ;;  %v1133_v35 = vld [vmem:[%s1318_s7 + $0x10] sm:$0xff] }
  0x39   : > { %662 = vmatpush.bf16.msra.mxu0 %v1137_v19  ;;  %v1143_v28 = vld [vmem:[%s1318_s7 + $0x60] sm:$0xff]  ;;  %v1142_v32 = vld [vmem:[%s1318_s7 + $0x58] sm:$0xff]  ;;  %v1141_v36 = vld [vmem:[%s1318_s7 + $0x50] sm:$0xff] }
  0x3a   : > { %690 = vmatpush.bf16.msra.mxu1 %v1145_v20  ;;  %v1151_v29 = vld [vmem:[%s1318_s7 + $0xa0] sm:$0xff]  ;;  %v1150_v33 = vld [vmem:[%s1318_s7 + $0x98] sm:$0xff]  ;;  %v1149_v37 = vld [vmem:[%s1318_s7 + $0x90] sm:$0xff] }
  0x3b   : > { %718 = vmatpush.bf16.msra.mxu2 %v1153_v21  ;;  %v1159_v30 = vld [vmem:[%s1318_s7 + $0xe0] sm:$0xff]  ;;  %v1158_v34 = vld [vmem:[%s1318_s7 + $0xd8] sm:$0xff]  ;;  %v1157_v38 = vld [vmem:[%s1318_s7 + $0xd0] sm:$0xff] }
  0x3c   : > { %746 = vmatpush.bf16.msra.mxu3 %v1161_v22  ;;  %v1132_v39 = vld [vmem:[%s1318_s7 + $0x8] sm:$0xff]  ;;  %v1131_v43 = vld [vmem:[%s1318_s7] sm:$0xff] }
  0x3d   : > { %663 = vmatpush.bf16.msra.mxu0 %v1136_v23  ;;  %v1140_v40 = vld [vmem:[%s1318_s7 + $0x48] sm:$0xff]  ;;  %v1139_v44 = vld [vmem:[%s1318_s7 + $0x40] sm:$0xff] }
  0x3e   : > { %691 = vmatpush.bf16.msra.mxu1 %v1144_v24  ;;  %v1148_v41 = vld [vmem:[%s1318_s7 + $0x88] sm:$0xff]  ;;  %v1147_v45 = vld [vmem:[%s1318_s7 + $0x80] sm:$0xff] }
  0x3f   : > { %719 = vmatpush.bf16.msra.mxu2 %v1152_v25  ;;  %v1156_v42 = vld [vmem:[%s1318_s7 + $0xc8] sm:$0xff]  ;;  %v1155_v46 = vld [vmem:[%s1318_s7 + $0xc0] sm:$0xff] }
  0x40   : > { %747 = vmatpush.bf16.msra.mxu3 %v1160_v26  ;;  %v939_v47 = vld [vmem:[%s1320_s8] sm:$0xf]  ;;  %v1121_v48 = vld [vmem:[%s1320_s8 + $0xc] sm:$0xf0]  ;;  %v1119_v49 = vld [vmem:[%s1320_s8 + $0x4] sm:$0xf] }
  0x41   : > { %664 = vmatpush.bf16.msra.mxu0 %v1135_v27  ;;  %v941_v50 = vld [vmem:[%s1320_s8 + $0x10] sm:$0xf0]  ;;  %v947_v51 = vld [vmem:[%s1320_s8 + $0x8] sm:$0xf]  ;;  %v1122_v52 = vld [vmem:[%s1320_s8 + $0x14] sm:$0xf0]  ;;  %v940_v55 = vor.u32 %v1121_v48, %v939_v47 }
  0x42   : > { %692 = vmatpush.bf16.msra.mxu1 %v1143_v28  ;;  %v1120_v53 = vld [vmem:[%s1320_s8 + $0xc] sm:$0xf]  ;;  %v949_v54 = vld [vmem:[%s1320_s8 + $0x18] sm:$0xf0]  ;;  %v944_v56 = vor.u32 %v1119_v49, %v941_v50  ;;  %v948_v57 = vor.u32 %v1122_v52, %v947_v51  ;;  %v955_v59 = vld [vmem:[%s1320_s8 + $0x20] sm:$0xf] }
  0x43   : > { %720 = vmatpush.bf16.msra.mxu2 %v1151_v29  ;;  %v952_v58 = vor.u32 %v1120_v53, %v949_v54  ;;  %v1125_v60 = vld [vmem:[%s1320_s8 + $0x2c] sm:$0xf0]  ;;  %v1123_v61 = vld [vmem:[%s1320_s8 + $0x24] sm:$0xf]  ;;  %v957_v62 = vld [vmem:[%s1320_s8 + $0x30] sm:$0xf0] }
  0x44   : > { %748 = vmatpush.bf16.msra.mxu3 %v1159_v30  ;;  %v963_v63 = vld [vmem:[%s1320_s8 + $0x28] sm:$0xf]  ;;  %v1126_v0 = vld [vmem:[%s1320_s8 + $0x34] sm:$0xf0]  ;;  %v1124_v1 = vld [vmem:[%s1320_s8 + $0x2c] sm:$0xf]  ;;  %v956_v3 = vor.u32 %v1125_v60, %v955_v59  ;;  %v960_v4 = vor.u32 %v1123_v61, %v957_v62 }
  0x45   : > { %665 = vmatpush.bf16.msra.mxu0 %v1134_v31  ;;  %v965_v2 = vld [vmem:[%s1320_s8 + $0x38] sm:$0xf0]  ;;  %v964_v5 = vor.u32 %v1126_v0, %v963_v63  ;;  %v971_v7 = vld [vmem:[%s1320_s8 + $0x40] sm:$0xf]  ;;  %v1129_v8 = vld [vmem:[%s1320_s8 + $0x4c] sm:$0xf0] }
  0x46   : > { %693 = vmatpush.bf16.msra.mxu1 %v1142_v32  ;;  %v968_v6 = vor.u32 %v1124_v1, %v965_v2  ;;  %v1127_v9 = vld [vmem:[%s1320_s8 + $0x44] sm:$0xf]  ;;  %v973_v10 = vld [vmem:[%s1320_s8 + $0x50] sm:$0xf0]  ;;  %v979_v11 = vld [vmem:[%s1320_s8 + $0x48] sm:$0xf]  ;;  %v972_v15 = vor.u32 %v1129_v8, %v971_v7 }
  0x47   : > { %721 = vmatpush.bf16.msra.mxu2 %v1150_v33  ;;  %v1130_v12 = vld [vmem:[%s1320_s8 + $0x54] sm:$0xf0]  ;;  %v1128_v13 = vld [vmem:[%s1320_s8 + $0x4c] sm:$0xf]  ;;  %v981_v14 = vld [vmem:[%s1320_s8 + $0x58] sm:$0xf0]  ;;  %v976_v16 = vor.u32 %v1127_v9, %v973_v10 }
  0x48   : > { %749 = vmatpush.bf16.msra.mxu3 %v1158_v34  ;;  %v980_v17 = vor.u32 %v1130_v12, %v979_v11  ;;  %v984_v18 = vor.u32 %v1128_v13, %v981_v14  ;;  %v329_v19 = vld [vmem:[%s1320_s8 + $0x60] sm:$0xff]  ;;  %v330_v20 = vld [vmem:[%s1320_s8 + $0x68] sm:$0xff] }
  0x49   : > { %666 = vmatpush.bf16.msra.mxu0 %v1133_v35  ;;  %v433_v21 = vunpack.c.l.b16 %v329_v19  ;;  %v434_v22 = vunpack.c.h.b16 %v329_v19  ;;  %v435_v23 = vunpack.c.l.b16 %v330_v20  ;;  %v436_v24 = vunpack.c.h.b16 %v330_v20  ;;  %v313_v0 = vld [vmem:[%s1508_s3 + $0x18] sm:$0xff]  ;;  %v314_v9 = vld [vmem:[%s1508_s3 + $0x20] sm:$0xff] }
  0x4a   : > { %694 = vmatpush.bf16.msra.mxu1 %v1141_v36 }
  0x4b   : > { %722 = vmatpush.bf16.msra.mxu2 %v1149_v37  ;;  %v449_v25 = vpack.c.b16 %v433_v21, %v433_v21  ;;  %v450_v26 = vpack.c.b16 %v434_v22, %v434_v22  ;;  %v451_v27 = vpack.c.b16 %v435_v23, %v435_v23  ;;  %v452_v28 = vpack.c.b16 %v436_v24, %v436_v24  ;;  %v310_v37 = vld [vmem:[%s1508_s3] sm:$0xff] }
  0x4c   : > { %750 = vmatpush.bf16.msra.mxu3 %v1157_v38 }
  0x4d   : > { %667 = vmatpush.bf16.msra.mxu0 %v1132_v39 }
  0x4e   : > { %695 = vmatpush.bf16.msra.mxu1 %v1140_v40 }
  0x4f   : > { %723 = vmatpush.bf16.msra.mxu2 %v1148_v41 }
  0x50   : > { %751 = vmatpush.bf16.msra.mxu3 %v1156_v42 }
  0x51   : > { %668 = vmatpush.bf16.msra.mxu0 %v1131_v43 }
  0x52   : > { %696 = vmatpush.bf16.msra.mxu1 %v1139_v44 }
  0x53   : > { %724 = vmatpush.bf16.msra.mxu2 %v1147_v45 }
  0x54   : > { %752 = vmatpush.bf16.msra.mxu3 %v1155_v46  ;;  %669 = vmatmul.bf16.vlgmr.msra.gmra.mxu0 %v940_v55  ;;  %v311_v46 = vld [vmem:[%s1508_s3 + $0x8] sm:$0xff]  ;;  %v312_v55 = vld [vmem:[%s1508_s3 + $0x10] sm:$0xff] }
  0x55   : > { %697 = vmatmul.bf16.vlgmr.msra.gmra.mxu1 %v944_v56 }
  0x56   : > { %725 = vmatmul.bf16.vlgmr.msra.gmra.mxu2 %v948_v57 }
  0x57   : > { %753 = vmatmul.bf16.vlgmr.msra.gmra.mxu3 %v952_v58 }
  0x64   : > { %674 = vmatmul.bf16.gmra.mxu0 %v956_v3 }
  0x65   : > { %702 = vmatmul.bf16.gmra.mxu1 %v960_v4 }
  0x66   : > { %730 = vmatmul.bf16.gmra.mxu2 %v964_v5 }
  0x67   : > { %758 = vmatmul.bf16.gmra.mxu3 %v968_v6 }
  0x74   : > { %679 = vmatmul.bf16.gmra.mxu0 %v972_v15 }
  0x75   : > { %707 = vmatmul.bf16.gmra.mxu1 %v976_v16 }
  0x76   : > { %735 = vmatmul.bf16.gmra.mxu2 %v980_v17 }
  0x77   : > { %763 = vmatmul.bf16.gmra.mxu3 %v984_v18  ;;  %v315_v18 = vld [vmem:[%s1508_s3 + $0x28] sm:$0xff] }
  0x84   : > { %684 = vmatmul.bf16.gmra.mxu0 %v449_v25 }
  0x85   : > { %712 = vmatmul.bf16.gmra.mxu1 %v450_v26 }
  0x86   : > { %740 = vmatmul.bf16.gmra.mxu2 %v451_v27  ;;  %v316_v27 = vld [vmem:[%s1508_s3 + $0x30] sm:$0xff] }
  0x87   : > { %768 = vmatmul.bf16.gmra.mxu3 %v452_v28 }
  0xd1   : > { %v670_v29 = vpop.f32.mrf.mxu0 }
  0xd2   : > { %v698_v30 = vpop.f32.mrf.mxu1 }
  0xd3   : > { %v699_v31 = vadd.f32 %v698_v30, %v670_v29 }
  0xd9   : > { %v726_v32 = vpop.f32.mrf.mxu2  ;;  %v672_v35 = vpop.f32.mrf.mxu0 }
  0xda   : > { %v754_v33 = vpop.f32.mrf.mxu3  ;;  %v727_v34 = vadd.f32 %v726_v32, %v699_v31  ;;  %v700_v36 = vpop.f32.mrf.mxu1 }
  0xdb   : > { %v701_v40 = vadd.f32 %v700_v36, %v672_v35 }
  0xdc   : > { %v755_v38 = vadd.f32 %v754_v33, %v727_v34 }
  0xde   : > { %v773_v39 = vadd.f32 %v755_v38, %v310_v37 }
  0xe0   : > { %780 = vst [vmem:[%s1508_s3] sm:$0xff] %v773_v39 }
  0xe1   : > { %v728_v41 = vpop.f32.mrf.mxu2  ;;  %v675_v44 = vpop.f32.mrf.mxu0 }
  0xe2   : > { %v756_v42 = vpop.f32.mrf.mxu3  ;;  %v729_v43 = vadd.f32 %v728_v41, %v701_v40  ;;  %v703_v45 = vpop.f32.mrf.mxu1 }
  0xe3   : > { %v704_v49 = vadd.f32 %v703_v45, %v675_v44 }
  0xe4   : > { %v757_v47 = vadd.f32 %v756_v42, %v729_v43 }
  0xe6   : > { %v774_v48 = vadd.f32 %v757_v47, %v311_v46 }
  0xe8   : > { %781 = vst [vmem:[%s1508_s3 + $0x8] sm:$0xff] %v774_v48 }
  0xe9   : > { %v731_v50 = vpop.f32.mrf.mxu2  ;;  %v677_v53 = vpop.f32.mrf.mxu0 }
  0xea   : > { %v759_v51 = vpop.f32.mrf.mxu3  ;;  %v732_v52 = vadd.f32 %v731_v50, %v704_v49  ;;  %v705_v54 = vpop.f32.mrf.mxu1 }
  0xeb   : > { %v706_v58 = vadd.f32 %v705_v54, %v677_v53 }
  0xec   : > { %v760_v56 = vadd.f32 %v759_v51, %v732_v52 }
  0xee   : > { %v775_v57 = vadd.f32 %v760_v56, %v312_v55 }
  0xf0   : > { %782 = vst [vmem:[%s1508_s3 + $0x10] sm:$0xff] %v775_v57 }
  0xf1   : > { %v733_v59 = vpop.f32.mrf.mxu2  ;;  %v680_v62 = vpop.f32.mrf.mxu0 }
  0xf2   : > { %v761_v60 = vpop.f32.mrf.mxu3  ;;  %v734_v61 = vadd.f32 %v733_v59, %v706_v58  ;;  %v708_v63 = vpop.f32.mrf.mxu1 }
  0xf3   : > { %v709_v3 = vadd.f32 %v708_v63, %v680_v62 }
  0xf4   : > { %v762_v1 = vadd.f32 %v761_v60, %v734_v61 }
  0xf6   : > { %v776_v2 = vadd.f32 %v762_v1, %v313_v0 }
  0xf8   : > { %783 = vst [vmem:[%s1508_s3 + $0x18] sm:$0xff] %v776_v2 }
  0xf9   : > { %v736_v4 = vpop.f32.mrf.mxu2  ;;  %v682_v7 = vpop.f32.mrf.mxu0 }
  0xfa   : > { %v764_v5 = vpop.f32.mrf.mxu3  ;;  %v737_v6 = vadd.f32 %v736_v4, %v709_v3  ;;  %v710_v8 = vpop.f32.mrf.mxu1 }
  0xfb   : > { %v711_v12 = vadd.f32 %v710_v8, %v682_v7 }
  0xfc   : > { %v765_v10 = vadd.f32 %v764_v5, %v737_v6 }
  0xfe   : > { %v777_v11 = vadd.f32 %v765_v10, %v314_v9 }
 0x100   : > { %784 = vst [vmem:[%s1508_s3 + $0x20] sm:$0xff] %v777_v11 }
 0x101   : > { %v738_v13 = vpop.f32.mrf.mxu2  ;;  %v685_v16 = vpop.f32.mrf.mxu0 }
 0x102   : > { %v766_v14 = vpop.f32.mrf.mxu3  ;;  %v739_v15 = vadd.f32 %v738_v13, %v711_v12  ;;  %v713_v17 = vpop.f32.mrf.mxu1 }
 0x103   : > { %v714_v21 = vadd.f32 %v713_v17, %v685_v16 }
 0x104   : > { %v767_v19 = vadd.f32 %v766_v14, %v739_v15 }
 0x106   : > { %v778_v20 = vadd.f32 %v767_v19, %v315_v18 }
 0x108   : > { %785 = vst [vmem:[%s1508_s3 + $0x28] sm:$0xff] %v778_v20 }
 0x109   : > { %v741_v22 = vpop.f32.mrf.mxu2  ;;  %v687_v25 = vpop.f32.mrf.mxu0 }
 0x10a   : > { %v769_v23 = vpop.f32.mrf.mxu3  ;;  %v742_v24 = vadd.f32 %v741_v22, %v714_v21  ;;  %v715_v26 = vpop.f32.mrf.mxu1 }
 0x10c   : > { %v770_v28 = vadd.f32 %v769_v23, %v742_v24 }
 0x10e   : > { %v779_v29 = vadd.f32 %v770_v28, %v316_v27  ;;  %790 = sbr.rel (%p1113_p11) target bundleno = 286 (0x11e), region = 63 }
 0x110   : > { %786 = vst [vmem:[%s1508_s3 + $0x30] sm:$0xff] %v779_v29 }
 0x111   : > { %v743_v30 = vpop.f32.mrf.mxu2 }
 0x112   : > { %v771_v31 = vpop.f32.mrf.mxu3 }
 0x113   : > { %v791_v32 = vld [vmem:[%s1508_s3] sm:$0xff]  ;;  %v792_v34 = vld [vmem:[%s1508_s3 + $0x8] sm:$0xff]  ;;  %v793_v35 = vld [vmem:[%s1508_s3 + $0x10] sm:$0xff] }
 0x114   : > { %v1206_v33 = vld [vmem:[%s1507_s2] ss:$0 sm:$0xff]  ;;  %v794_v36 = vld [vmem:[%s1508_s3 + $0x18] sm:$0xff]  ;;  %v796_v41 = vld [vmem:[%s1508_s3 + $0x28] sm:$0xff] }
 0x115   : > { %v802_v37 = vadd.f32 %v1206_v33, %v791_v32  ;;  %v803_v38 = vadd.f32 %v1206_v33, %v792_v34  ;;  %v804_v39 = vadd.f32 %v1206_v33, %v793_v35  ;;  %v795_v40 = vld [vmem:[%s1508_s3 + $0x20] sm:$0xff]  ;;  %v805_v42 = vadd.f32 %v1206_v33, %v794_v36 }
 0x116   : > { %v806_v44 = vadd.f32 %v1206_v33, %v795_v40  ;;  %v807_v45 = vadd.f32 %v1206_v33, %v796_v41 }
 0x117   : > { %v797_v43 = vld [vmem:[%s1508_s3 + $0x30] sm:$0xff]  ;;  %809 = vst [vmem:[%s1508_s3] sm:$0xff] %v802_v37 }
 0x118   : > { %810 = vst [vmem:[%s1508_s3 + $0x8] sm:$0xff] %v803_v38  ;;  %v808_v46 = vadd.f32 %v1206_v33, %v797_v43 }
 0x119   : > { %811 = vst [vmem:[%s1508_s3 + $0x10] sm:$0xff] %v804_v39 }
 0x11a   : > { %812 = vst [vmem:[%s1508_s3 + $0x18] sm:$0xff] %v805_v42 }
 0x11b   : > { %813 = vst [vmem:[%s1508_s3 + $0x20] sm:$0xff] %v806_v44 }
 0x11c   : > { %814 = vst [vmem:[%s1508_s3 + $0x28] sm:$0xff] %v807_v45 }
 0x11d   : > { %815 = vst [vmem:[%s1508_s3 + $0x30] sm:$0xff] %v808_v46 }
 0x11e PF: > { %s13_s16 = sadd.s32 1, %s1245_s16   ;;  %s1509_s12 = smov %s1233_s13 }
 0x11f   : > { %p10_p12 = scmp.ge.s32.totalorder %s13_s16, 18   ;;  %s1510_s13 = smov %s1303_s20 }
 0x120   : > { %s1511_s14 = smov %s1241_s15  ;;  %s1512_s15 = smov %s1514_s17 }
 0x121   :  { %12 = sbr.rel (!%p10_p12) target bundleno = 3 (0x3), region = 104 }

</bundles_post_ra>
